<compile_context>
chip_gen: v6e
topology: v6e:2x2x1
jax: 0.10.0
libtpu: 0.0.40
codegen_flags: <defaults>
</compile_context>

<pallas_src>
import functools
import numpy as np

import jax
import jax.numpy as jnp
from jax.experimental import pallas as pl
from jax.experimental.pallas import tpu as pltpu

_SQRT2 = 1.4142135623730951


def _gelu_exact(x):
    # nn.GELU() default (exact erf form)
    return 0.5 * x * (1.0 + jax.lax.erf(x / _SQRT2))


def _round_up(n, m):
    return ((n + m - 1) // m) * m


def _cdiv(a, b):
    return (a + b - 1) // b


def _vmem_footprint_bytes(bb, tc, in_p, res_p, hid_p, out_p, what_bytes):
    """Conservative VMEM estimate (weights counted double-buffered)."""
    f = 4
    b = 2 * bb * tc * in_p * f            # x blocks (double-buffered)
    b += 2 * bb * tc * out_p * f          # y blocks (double-buffered)
    b += 2 * bb * res_p * f               # h0 blocks
    b += 2 * bb * res_p * f               # h_n blocks
    b += 2 * (in_p * res_p * f + res_p * res_p * what_bytes
              + res_p * hid_p * f + 8 * hid_p * f
              + hid_p * out_p * f + 8 * out_p * f)      # weights / biases
    b += bb * tc * res_p * f              # u / h chunk scratch
    b += bb * tc * (res_p + hid_p + out_p) * f          # live matmul results headroom
    return b


def esn_kernel(x_ref, h0_ref, win_ref, what_ref, w1_ref, b1_ref, w2_ref, b2_ref,
               out_ref, hn_ref, buf_ref, *, leaking_rate, t_chunk, seq_len, mask_tail):
    """One grid step = t_chunk timesteps for one batch block.

    Phases:
      1. chunk-wide input projection u = x @ W_in^T   (large-M MXU matmul)
      2. sequential reservoir recurrence (statically unrolled; only the small-M
         h @ W_hat^T + tanh + leaky blend stay on the serial critical path)
      3. chunk-wide readout Linear -> GELU -> Linear   (large-M MXU matmul)
    buf_ref is reused: it first holds u, then is overwritten in place with the
    per-step hidden states consumed by the readout (halves scratch VMEM and
    bounds live vreg ranges across the unrolled loop).
    """
    t = pl.program_id(1)

    # Resident final-hidden-state block (constant index over the time axis).
    @pl.when(t == 0)
    def _init():
        hn_ref[...] = h0_ref[...]

    bb = x_ref.shape[0]
    in_p = x_ref.shape[2]
    res_p = hn_ref.shape[1]
    out_p = out_ref.shape[2]
    f32 = jnp.float32

    # --- 1. input projection for the whole chunk, batch-major (M = bb * t_chunk) ---
    x_flat = x_ref[...].reshape(bb * t_chunk, in_p)
    u = jnp.dot(x_flat, win_ref[...], preferred_element_type=f32)
    buf_ref[...] = u.reshape(bb, t_chunk, res_p)

    # --- 2. sequential recurrence (per-step M = bb rows) ---
    w_hat = what_ref[...]          # optionally bf16 (MXU-native on v6e/v7x)
    lr = leaking_rate
    h = hn_ref[...]
    for i in range(t_chunk):
        pre = buf_ref[:, i, :] + jnp.dot(
            h.astype(w_hat.dtype), w_hat, preferred_element_type=f32)
        h_new = (1.0 - lr) * h + lr * jnp.tanh(pre)
        if mask_tail:
            # phantom (seq-padding) timesteps must not advance the state
            h_new = jnp.where(t * t_chunk + i < seq_len, h_new, h)
        h = h_new
        buf_ref[:, i, :] = h
    hn_ref[...] = h

    # --- 3. readout for the whole chunk (M = bb * t_chunk), emitted batch-major ---
    # TODO(synk): double-buffer buf_ref and run chunk t-1's readout here so its
    # MXU pushes hide inside the serial recurrence's idle MXU slots.
    h_flat = buf_ref[...].reshape(bb * t_chunk, res_p)
    y = jnp.dot(h_flat, w1_ref[...], preferred_element_type=f32) + b1_ref[...]
    y = _gelu_exact(y)
    y = jnp.dot(y, w2_ref[...], preferred_element_type=f32) + b2_ref[...]
    out_ref[...] = y.reshape(bb, t_chunk, out_p)


def esn_forward(x, h0, W_in, W_hat, W1, b1, W2, b2, *, leaking_rate,
                t_chunk_cap=64, recurrent_weight_dtype=jnp.float32):
    """x: (batch, seq, input_size) f32. Returns (outputs (b, seq, out), h_n (b, res))."""
    batch, seq, input_size = x.shape
    res = W_in.shape[0]
    hid = W1.shape[0]
    out_size = W2.shape[0]
    f32 = jnp.float32

    # Lane-dense padding for the big feature dims; the (tiny) input feature dim
    # only goes to a multiple of 8 sublanes so x's HBM traffic isn't inflated.
    in_p = _round_up(input_size, 8)
    res_p = _round_up(res, 128)
    hid_p = _round_up(hid, 128)
    out_p = _round_up(out_size, 128)

    # Batch blocking: split into two blocks when the batch is large enough so the
    # "parallel" grid axis can feed v7x's two TensorCores (neutral on v5e/v6e).
    batch_p = _round_up(batch, 8)
    if batch_p >= 16:
        bb = _round_up(_cdiv(batch_p, 2), 8)
        nb = 2
        batch_p = nb * bb
    else:
        bb, nb = batch_p, 1

    # Chunk size from the VMEM budget; vmem_limit_bytes from the footprint.
    try:
        vmem_cap = int(pltpu.get_tpu_info().vmem_capacity_bytes)
    except Exception:  # pragma: no cover - conservative default (v7x per-core VMEM)
        vmem_cap = 64 * 1024 * 1024
    what_bytes = jnp.dtype(recurrent_weight_dtype).itemsize
    budget = int(0.7 * vmem_cap)

    def footprint(tc_):
        return _vmem_footprint_bytes(bb, tc_, in_p, res_p, hid_p, out_p, what_bytes)

    # t_chunk: multiple of 8 (keeps every reshape layout-trivial), capped by the
    # user cap, the (padded) sequence length and the VMEM budget.
    tc = max(8, (min(int(t_chunk_cap), _round_up(seq, 8)) // 8) * 8)
    while tc > 8 and footprint(tc) > budget:
        tc -= 8
    seq_p = _cdiv(seq, tc) * tc
    nt = seq_p // tc
    mask_tail = seq_p != seq

    vmem_limit = int(min(max(32 << 20, 2 * footprint(tc)), int(0.9 * vmem_cap)))

    # Parameter plumbing in plain JAX: batch-major padded input, padded
    # pre-transposed weights.  Zero padding leaves the real lanes exact.
    def pad2(a, r, c, dtype=f32):
        a = a.astype(f32)
        a = jnp.pad(a, ((0, r - a.shape[0]), (0, c - a.shape[1])))
        return a.astype(dtype)

    x_p = jnp.pad(x.astype(f32), ((0, batch_p - batch), (0, seq_p - seq),
                                  (0, in_p - input_size)))           # (batch_p, seq_p, in_p)
    win_t = pad2(W_in.T, in_p, res_p)                                # (in_p, res_p)
    what_t = pad2(W_hat.T, res_p, res_p, dtype=recurrent_weight_dtype)
    w1_t = pad2(W1.T, res_p, hid_p)                                  # (res_p, hid_p)
    w2_t = pad2(W2.T, hid_p, out_p)                                  # (hid_p, out_p)
    b1_p = jnp.pad(b1.astype(f32), (0, hid_p - hid)).reshape(1, hid_p)
    b2_p = jnp.pad(b2.astype(f32), (0, out_p - out_size)).reshape(1, out_p)
    h0_p = jnp.pad(h0.astype(f32), ((0, batch_p - batch), (0, res_p - res)))

    kernel = functools.partial(esn_kernel, leaking_rate=float(leaking_rate),
                               t_chunk=tc, seq_len=seq, mask_tail=mask_tail)

    out_shape = (jax.ShapeDtypeStruct((batch_p, seq_p, out_p), f32),
                 jax.ShapeDtypeStruct((batch_p, res_p), f32))

    def build_call(single_buffer_consts):
        def const_spec(shape):
            # Constant index map -> the DMA only runs once; a second buffer is
            # pure VMEM waste, so request single buffering.
            if single_buffer_consts:
                return pl.BlockSpec(shape, lambda b, t: (0, 0),
                                    pipeline_mode=pl.Buffered(1))
            return pl.BlockSpec(shape, lambda b, t: (0, 0))

        in_specs = [
            pl.BlockSpec((bb, tc, in_p), lambda b, t: (b, t, 0)),    # x chunk (batch-major)
            pl.BlockSpec((bb, res_p), lambda b, t: (b, 0)),          # h0 per batch block
            const_spec((in_p, res_p)),                               # W_in^T
            const_spec((res_p, res_p)),                              # W_hat^T
            const_spec((res_p, hid_p)),                              # W1^T
            const_spec((1, hid_p)),                                  # b1
            const_spec((hid_p, out_p)),                              # W2^T
            const_spec((1, out_p)),                                  # b2
        ]
        out_specs = (
            pl.BlockSpec((bb, tc, out_p), lambda b, t: (b, t, 0)),   # y chunk (batch-major)
            pl.BlockSpec((bb, res_p), lambda b, t: (b, 0)),          # resident h_n
        )
        return pl.pallas_call(
            kernel,
            grid_spec=pltpu.PrefetchScalarGridSpec(
                num_scalar_prefetch=0,
                grid=(nb, nt),
                in_specs=in_specs,
                out_specs=out_specs,
                scratch_shapes=[pltpu.VMEM((bb, tc, res_p), f32)],   # u / chunk hidden states
            ),
            out_shape=out_shape,
            compiler_params=pltpu.CompilerParams(
                dimension_semantics=("parallel", "arbitrary"),       # batch || , time sequential
                vmem_limit_bytes=vmem_limit,
            ),
        )

    args = (x_p, h0_p, win_t, what_t, w1_t, b1_p, w2_t, b2_p)
    try:
        y_p, hn_p = build_call(True)(*args)
    except Exception:
        # pipeline_mode=pl.Buffered(1) unsupported on this jax version: fall back
        # to default double buffering (identical results, just more VMEM).
        y_p, hn_p = build_call(False)(*args)

    # Output is already batch-major: only slice off padding (no HBM transpose pass).
    outputs = y_p[:batch, :seq, :out_size]
    h_n = hn_p[:batch, :res]
    return outputs, h_n


def esn_reference(x, h0, W_in, W_hat, W1, b1, W2, b2, *, leaking_rate):
    """Pure-JAX reference matching the PyTorch ESN.forward semantics."""
    def step(h, x_t):
        h_tilde = jnp.tanh(x_t @ W_in.T + h @ W_hat.T)
        h_new = (1.0 - leaking_rate) * h + leaking_rate * h_tilde
        y = _gelu_exact(h_new @ W1.T + b1)
        y = y @ W2.T + b2
        return h_new, y

    h_n, ys = jax.lax.scan(step, h0, jnp.transpose(x, (1, 0, 2)))
    return jnp.transpose(ys, (1, 0, 2)), h_n


if __name__ == "__main__":
    # Small, deterministic configuration.
    batch, seq = 2, 8
    input_size, reservoir_size = 4, 32
    hidden_size = [32]           # DenseStack hidden layer widths
    output_size = 8
    scale_rec = 1.0 / 1.1
    scale_in = 1.0 / 40.0
    leaking_rate = 0.5

    key = jax.random.PRNGKey(0)
    k_x, k_x2, k_win, k_what, k_w1, k_b1, k_w2, k_b2 = jax.random.split(key, 8)

    # ESN buffers (match torch init distributions deterministically with JAX RNG).
    W_in = (jax.random.uniform(k_win, (reservoir_size, input_size), jnp.float32) - 0.5) * scale_in
    W_hat_raw = jax.random.normal(k_what, (reservoir_size, reservoir_size), jnp.float32)
    # specrad rescaling (torch.linalg.eig equivalent, done on host with numpy at init time).
    spec_rad = float(np.max(np.abs(np.linalg.eigvals(np.asarray(W_hat_raw, dtype=np.float64)))))
    W_hat = W_hat_raw * (scale_rec / spec_rad)

    # Readout DenseStack: Linear(res -> hidden[0]) -> GELU -> Linear(hidden[0] -> out)
    hid = hidden_size[0]
    W1 = jax.random.normal(k_w1, (hid, reservoir_size), jnp.float32) / np.sqrt(reservoir_size)
    b1 = jax.random.normal(k_b1, (hid,), jnp.float32) * 0.01
    W2 = jax.random.normal(k_w2, (output_size, hid), jnp.float32) / np.sqrt(hid)
    b2 = jax.random.normal(k_b2, (output_size,), jnp.float32) * 0.01

    x = jax.random.normal(k_x, (batch, seq, input_size), jnp.float32)
    h0 = jnp.zeros((batch, reservoir_size), jnp.float32)   # default h_0 = zeros

    # 1) f32 weights, seq divisible by the chunk.
    outs, h_n = esn_forward(x, h0, W_in, W_hat, W1, b1, W2, b2, leaking_rate=leaking_rate)
    outs = jax.block_until_ready(outs)
    h_n = jax.block_until_ready(h_n)
    ref_outs, ref_hn = esn_reference(x, h0, W_in, W_hat, W1, b1, W2, b2, leaking_rate=leaking_rate)
    np.testing.assert_allclose(np.asarray(outs), np.asarray(ref_outs), rtol=1e-3, atol=1e-3)
    np.testing.assert_allclose(np.asarray(h_n), np.asarray(ref_hn), rtol=1e-3, atol=1e-3)
    assert outs.shape == (batch, seq, output_size)
    assert h_n.shape == (batch, reservoir_size)

    # 2) Ragged sequence length (tail-masked final chunk, multi-chunk grid).
    seq2 = 13
    x2 = jax.random.normal(k_x2, (batch, seq2, input_size), jnp.float32)
    outs2, h_n2 = esn_forward(x2, h0, W_in, W_hat, W1, b1, W2, b2,
                              leaking_rate=leaking_rate, t_chunk_cap=8)
    outs2 = jax.block_until_ready(outs2)
    ref_outs2, ref_hn2 = esn_reference(x2, h0, W_in, W_hat, W1, b1, W2, b2,
                                       leaking_rate=leaking_rate)
    np.testing.assert_allclose(np.asarray(outs2), np.asarray(ref_outs2), rtol=1e-3, atol=1e-3)
    np.testing.assert_allclose(np.asarray(h_n2), np.asarray(ref_hn2), rtol=1e-3, atol=1e-3)

    # 3) bf16 recurrent weight (MXU-native path for v6e/v7x); slightly looser tolerance.
    outs3, h_n3 = esn_forward(x, h0, W_in, W_hat, W1, b1, W2, b2,
                              leaking_rate=leaking_rate,
                              recurrent_weight_dtype=jnp.bfloat16)
    outs3 = jax.block_until_ready(outs3)
    np.testing.assert_allclose(np.asarray(outs3), np.asarray(ref_outs), rtol=1e-2, atol=1e-2)

    print("KERNEL_OK")
</pallas_src>

<mosaic_0001>
module attributes {stable_mosaic.version = 11 : i64} {
  func.func @esn_kernel(%arg0: i32, %arg1: i32, %arg2: memref<8x8x8xf32, #tpu.memory_space<vmem>>, %arg3: memref<8x128xf32, #tpu.memory_space<vmem>>, %arg4: memref<8x128xf32, #tpu.memory_space<vmem>>, %arg5: memref<128x128xf32, #tpu.memory_space<vmem>>, %arg6: memref<128x128xf32, #tpu.memory_space<vmem>>, %arg7: memref<1x128xf32, #tpu.memory_space<vmem>>, %arg8: memref<128x128xf32, #tpu.memory_space<vmem>>, %arg9: memref<1x128xf32, #tpu.memory_space<vmem>>, %arg10: memref<8x8x128xf32, #tpu.memory_space<vmem>>, %arg11: memref<8x128xf32, #tpu.memory_space<vmem>>, %arg12: memref<8x8x128xf32, #tpu.memory_space<vmem>>) attributes {dimension_semantics = [#tpu.dimension_semantics<parallel>, #tpu.dimension_semantics<arbitrary>], iteration_bounds = array<i64: 1, 1>, scalar_prefetch = 0 : i64, scratch_operands = 1 : i64, tpu.core_type = #tpu.core_type<tc>, window_params = [{transform_indices = @transform_0, window_bounds = array<i64: 8, 8, 8>}, {transform_indices = @transform_1, window_bounds = array<i64: 8, 128>}, {pipeline_mode = #tpu.pipeline_mode<synchronous>, transform_indices = @transform_2, window_bounds = array<i64: 8, 128>}, {pipeline_mode = #tpu.pipeline_mode<synchronous>, transform_indices = @transform_3, window_bounds = array<i64: 128, 128>}, {pipeline_mode = #tpu.pipeline_mode<synchronous>, transform_indices = @transform_4, window_bounds = array<i64: 128, 128>}, {pipeline_mode = #tpu.pipeline_mode<synchronous>, transform_indices = @transform_5, window_bounds = array<i64: 1, 128>}, {pipeline_mode = #tpu.pipeline_mode<synchronous>, transform_indices = @transform_6, window_bounds = array<i64: 128, 128>}, {pipeline_mode = #tpu.pipeline_mode<synchronous>, transform_indices = @transform_7, window_bounds = array<i64: 1, 128>}, {transform_indices = @transform_8, window_bounds = array<i64: 8, 8, 128>}, {transform_indices = @transform_9, window_bounds = array<i64: 8, 128>}]} {
    %c0_i32 = arith.constant 0 : i32
    %0 = arith.cmpi eq, %arg1, %c0_i32 : i32
    %1 = arith.extui %0 : i1 to i32
    %c0_i32_0 = arith.constant 0 : i32
    %2 = arith.cmpi ne, %1, %c0_i32_0 : i32
    scf.if %2 {
      %c0_98 = arith.constant 0 : index
      %c0_99 = arith.constant 0 : index
      %138 = vector.load %arg3[%c0_98, %c0_99] : memref<8x128xf32, #tpu.memory_space<vmem>>, vector<8x128xf32>
      %c0_100 = arith.constant 0 : index
      %c0_101 = arith.constant 0 : index
      %139 = vector.load %arg11[%c0_100, %c0_101] : memref<8x128xf32, #tpu.memory_space<vmem>>, vector<8x128xf32>
      tpu.vector_store %arg11[%c0_100, %c0_101], %138 {strides = array<i32>} : memref<8x128xf32, #tpu.memory_space<vmem>>, vector<8x128xf32>,
    } else {
    }
    %c0 = arith.constant 0 : index
    %c0_1 = arith.constant 0 : index
    %c0_2 = arith.constant 0 : index
    %3 = vector.load %arg2[%c0, %c0_1, %c0_2] : memref<8x8x8xf32, #tpu.memory_space<vmem>>, vector<8x8x8xf32>
    %4 = vector.shape_cast %3 : vector<8x8x8xf32> to vector<64x8xf32>
    %c0_3 = arith.constant 0 : index
    %c0_4 = arith.constant 0 : index
    %5 = vector.load %arg4[%c0_3, %c0_4] : memref<8x128xf32, #tpu.memory_space<vmem>>, vector<8x128xf32>
    %cst = arith.constant dense<0.000000e+00> : vector<64x128xf32>
    %6 = tpu.matmul %4, %5, %cst {dimension_numbers = #tpu.dot_dimension_numbers<[1], [0], [0], [1], [0, 0, 1, 1], [], []>} : vector<64x8xf32>, vector<8x128xf32>, vector<64x128xf32> -> vector<64x128xf32>
    %7 = vector.shape_cast %6 : vector<64x128xf32> to vector<8x8x128xf32>
    %c0_5 = arith.constant 0 : index
    %c0_6 = arith.constant 0 : index
    %c0_7 = arith.constant 0 : index
    %8 = vector.load %arg12[%c0_5, %c0_6, %c0_7] : memref<8x8x128xf32, #tpu.memory_space<vmem>>, vector<8x8x128xf32>
    tpu.vector_store %arg12[%c0_5, %c0_6, %c0_7], %7 {strides = array<i32>} : memref<8x8x128xf32, #tpu.memory_space<vmem>>, vector<8x8x128xf32>,
    %c0_8 = arith.constant 0 : index
    %c0_9 = arith.constant 0 : index
    %9 = vector.load %arg5[%c0_8, %c0_9] : memref<128x128xf32, #tpu.memory_space<vmem>>, vector<128x128xf32>
    %c0_10 = arith.constant 0 : index
    %c0_11 = arith.constant 0 : index
    %10 = vector.load %arg11[%c0_10, %c0_11] : memref<8x128xf32, #tpu.memory_space<vmem>>, vector<8x128xf32>
    %c0_12 = arith.constant 0 : index
    %c0_13 = arith.constant 0 : index
    %c0_14 = arith.constant 0 : index
    %11 = vector.load %arg12[%c0_12, %c0_13, %c0_14] : memref<8x8x128xf32, #tpu.memory_space<vmem>>, vector<8x1x128xf32>
    %12 = vector.shape_cast %11 : vector<8x1x128xf32> to vector<8x128xf32>
    %cst_15 = arith.constant dense<0.000000e+00> : vector<8x128xf32>
    %13 = tpu.matmul %10, %9, %cst_15 {dimension_numbers = #tpu.dot_dimension_numbers<[1], [0], [0], [1], [0, 0, 1, 1], [], []>} : vector<8x128xf32>, vector<128x128xf32>, vector<8x128xf32> -> vector<8x128xf32>
    %14 = arith.addf %12, %13 : vector<8x128xf32>
    %cst_16 = arith.constant 5.000000e-01 : f32
    %15 = vector.broadcast %cst_16 : f32 to vector<8x128xf32>
    %16 = arith.mulf %15, %10 : vector<8x128xf32>
    %17 = math.tanh %14 : vector<8x128xf32>
    %cst_17 = arith.constant 5.000000e-01 : f32
    %18 = vector.broadcast %cst_17 : f32 to vector<8x128xf32>
    %19 = arith.mulf %18, %17 : vector<8x128xf32>
    %20 = arith.addf %16, %19 : vector<8x128xf32>
    %c0_18 = arith.constant 0 : index
    %c0_19 = arith.constant 0 : index
    %c0_20 = arith.constant 0 : index
    %21 = vector.load %arg12[%c0_18, %c0_19, %c0_20] : memref<8x8x128xf32, #tpu.memory_space<vmem>>, vector<8x1x128xf32>
    %22 = vector.shape_cast %21 : vector<8x1x128xf32> to vector<8x128xf32>
    %23 = vector.shape_cast %20 : vector<8x128xf32> to vector<8x1x128xf32>
    tpu.vector_store %arg12[%c0_18, %c0_19, %c0_20], %23 {strides = array<i32>} : memref<8x8x128xf32, #tpu.memory_space<vmem>>, vector<8x1x128xf32>,
    %c0_21 = arith.constant 0 : index
    %c1 = arith.constant 1 : index
    %c0_22 = arith.constant 0 : index
    %24 = vector.load %arg12[%c0_21, %c1, %c0_22] : memref<8x8x128xf32, #tpu.memory_space<vmem>>, vector<8x1x128xf32>
    %25 = vector.shape_cast %24 : vector<8x1x128xf32> to vector<8x128xf32>
    %cst_23 = arith.constant dense<0.000000e+00> : vector<8x128xf32>
    %26 = tpu.matmul %20, %9, %cst_23 {dimension_numbers = #tpu.dot_dimension_numbers<[1], [0], [0], [1], [0, 0, 1, 1], [], []>} : vector<8x128xf32>, vector<128x128xf32>, vector<8x128xf32> -> vector<8x128xf32>
    %27 = arith.addf %25, %26 : vector<8x128xf32>
    %cst_24 = arith.constant 5.000000e-01 : f32
    %28 = vector.broadcast %cst_24 : f32 to vector<8x128xf32>
    %29 = arith.mulf %28, %20 : vector<8x128xf32>
    %30 = math.tanh %27 : vector<8x128xf32>
    %cst_25 = arith.constant 5.000000e-01 : f32
    %31 = vector.broadcast %cst_25 : f32 to vector<8x128xf32>
    %32 = arith.mulf %31, %30 : vector<8x128xf32>
    %33 = arith.addf %29, %32 : vector<8x128xf32>
    %c0_26 = arith.constant 0 : index
    %c1_27 = arith.constant 1 : index
    %c0_28 = arith.constant 0 : index
    %34 = vector.load %arg12[%c0_26, %c1_27, %c0_28] : memref<8x8x128xf32, #tpu.memory_space<vmem>>, vector<8x1x128xf32>
    %35 = vector.shape_cast %34 : vector<8x1x128xf32> to vector<8x128xf32>
    %36 = vector.shape_cast %33 : vector<8x128xf32> to vector<8x1x128xf32>
    tpu.vector_store %arg12[%c0_26, %c1_27, %c0_28], %36 {strides = array<i32>} : memref<8x8x128xf32, #tpu.memory_space<vmem>>, vector<8x1x128xf32>,
    %c0_29 = arith.constant 0 : index
    %c2 = arith.constant 2 : index
    %c0_30 = arith.constant 0 : index
    %37 = vector.load %arg12[%c0_29, %c2, %c0_30] : memref<8x8x128xf32, #tpu.memory_space<vmem>>, vector<8x1x128xf32>
    %38 = vector.shape_cast %37 : vector<8x1x128xf32> to vector<8x128xf32>
    %cst_31 = arith.constant dense<0.000000e+00> : vector<8x128xf32>
    %39 = tpu.matmul %33, %9, %cst_31 {dimension_numbers = #tpu.dot_dimension_numbers<[1], [0], [0], [1], [0, 0, 1, 1], [], []>} : vector<8x128xf32>, vector<128x128xf32>, vector<8x128xf32> -> vector<8x128xf32>
    %40 = arith.addf %38, %39 : vector<8x128xf32>
    %cst_32 = arith.constant 5.000000e-01 : f32
    %41 = vector.broadcast %cst_32 : f32 to vector<8x128xf32>
    %42 = arith.mulf %41, %33 : vector<8x128xf32>
    %43 = math.tanh %40 : vector<8x128xf32>
    %cst_33 = arith.constant 5.000000e-01 : f32
    %44 = vector.broadcast %cst_33 : f32 to vector<8x128xf32>
    %45 = arith.mulf %44, %43 : vector<8x128xf32>
    %46 = arith.addf %42, %45 : vector<8x128xf32>
    %c0_34 = arith.constant 0 : index
    %c2_35 = arith.constant 2 : index
    %c0_36 = arith.constant 0 : index
    %47 = vector.load %arg12[%c0_34, %c2_35, %c0_36] : memref<8x8x128xf32, #tpu.memory_space<vmem>>, vector<8x1x128xf32>
    %48 = vector.shape_cast %47 : vector<8x1x128xf32> to vector<8x128xf32>
    %49 = vector.shape_cast %46 : vector<8x128xf32> to vector<8x1x128xf32>
    tpu.vector_store %arg12[%c0_34, %c2_35, %c0_36], %49 {strides = array<i32>} : memref<8x8x128xf32, #tpu.memory_space<vmem>>, vector<8x1x128xf32>,
    %c0_37 = arith.constant 0 : index
    %c3 = arith.constant 3 : index
    %c0_38 = arith.constant 0 : index
    %50 = vector.load %arg12[%c0_37, %c3, %c0_38] : memref<8x8x128xf32, #tpu.memory_space<vmem>>, vector<8x1x128xf32>
    %51 = vector.shape_cast %50 : vector<8x1x128xf32> to vector<8x128xf32>
    %cst_39 = arith.constant dense<0.000000e+00> : vector<8x128xf32>
    %52 = tpu.matmul %46, %9, %cst_39 {dimension_numbers = #tpu.dot_dimension_numbers<[1], [0], [0], [1], [0, 0, 1, 1], [], []>} : vector<8x128xf32>, vector<128x128xf32>, vector<8x128xf32> -> vector<8x128xf32>
    %53 = arith.addf %51, %52 : vector<8x128xf32>
    %cst_40 = arith.constant 5.000000e-01 : f32
    %54 = vector.broadcast %cst_40 : f32 to vector<8x128xf32>
    %55 = arith.mulf %54, %46 : vector<8x128xf32>
    %56 = math.tanh %53 : vector<8x128xf32>
    %cst_41 = arith.constant 5.000000e-01 : f32
    %57 = vector.broadcast %cst_41 : f32 to vector<8x128xf32>
    %58 = arith.mulf %57, %56 : vector<8x128xf32>
    %59 = arith.addf %55, %58 : vector<8x128xf32>
    %c0_42 = arith.constant 0 : index
    %c3_43 = arith.constant 3 : index
    %c0_44 = arith.constant 0 : index
    %60 = vector.load %arg12[%c0_42, %c3_43, %c0_44] : memref<8x8x128xf32, #tpu.memory_space<vmem>>, vector<8x1x128xf32>
    %61 = vector.shape_cast %60 : vector<8x1x128xf32> to vector<8x128xf32>
    %62 = vector.shape_cast %59 : vector<8x128xf32> to vector<8x1x128xf32>
    tpu.vector_store %arg12[%c0_42, %c3_43, %c0_44], %62 {strides = array<i32>} : memref<8x8x128xf32, #tpu.memory_space<vmem>>, vector<8x1x128xf32>,
    %c0_45 = arith.constant 0 : index
    %c4 = arith.constant 4 : index
    %c0_46 = arith.constant 0 : index
    %63 = vector.load %arg12[%c0_45, %c4, %c0_46] : memref<8x8x128xf32, #tpu.memory_space<vmem>>, vector<8x1x128xf32>
    %64 = vector.shape_cast %63 : vector<8x1x128xf32> to vector<8x128xf32>
    %cst_47 = arith.constant dense<0.000000e+00> : vector<8x128xf32>
    %65 = tpu.matmul %59, %9, %cst_47 {dimension_numbers = #tpu.dot_dimension_numbers<[1], [0], [0], [1], [0, 0, 1, 1], [], []>} : vector<8x128xf32>, vector<128x128xf32>, vector<8x128xf32> -> vector<8x128xf32>
    %66 = arith.addf %64, %65 : vector<8x128xf32>
    %cst_48 = arith.constant 5.000000e-01 : f32
    %67 = vector.broadcast %cst_48 : f32 to vector<8x128xf32>
    %68 = arith.mulf %67, %59 : vector<8x128xf32>
    %69 = math.tanh %66 : vector<8x128xf32>
    %cst_49 = arith.constant 5.000000e-01 : f32
    %70 = vector.broadcast %cst_49 : f32 to vector<8x128xf32>
    %71 = arith.mulf %70, %69 : vector<8x128xf32>
    %72 = arith.addf %68, %71 : vector<8x128xf32>
    %c0_50 = arith.constant 0 : index
    %c4_51 = arith.constant 4 : index
    %c0_52 = arith.constant 0 : index
    %73 = vector.load %arg12[%c0_50, %c4_51, %c0_52] : memref<8x8x128xf32, #tpu.memory_space<vmem>>, vector<8x1x128xf32>
    %74 = vector.shape_cast %73 : vector<8x1x128xf32> to vector<8x128xf32>
    %75 = vector.shape_cast %72 : vector<8x128xf32> to vector<8x1x128xf32>
    tpu.vector_store %arg12[%c0_50, %c4_51, %c0_52], %75 {strides = array<i32>} : memref<8x8x128xf32, #tpu.memory_space<vmem>>, vector<8x1x128xf32>,
    %c0_53 = arith.constant 0 : index
    %c5 = arith.constant 5 : index
    %c0_54 = arith.constant 0 : index
    %76 = vector.load %arg12[%c0_53, %c5, %c0_54] : memref<8x8x128xf32, #tpu.memory_space<vmem>>, vector<8x1x128xf32>
    %77 = vector.shape_cast %76 : vector<8x1x128xf32> to vector<8x128xf32>
    %cst_55 = arith.constant dense<0.000000e+00> : vector<8x128xf32>
    %78 = tpu.matmul %72, %9, %cst_55 {dimension_numbers = #tpu.dot_dimension_numbers<[1], [0], [0], [1], [0, 0, 1, 1], [], []>} : vector<8x128xf32>, vector<128x128xf32>, vector<8x128xf32> -> vector<8x128xf32>
    %79 = arith.addf %77, %78 : vector<8x128xf32>
    %cst_56 = arith.constant 5.000000e-01 : f32
    %80 = vector.broadcast %cst_56 : f32 to vector<8x128xf32>
    %81 = arith.mulf %80, %72 : vector<8x128xf32>
    %82 = math.tanh %79 : vector<8x128xf32>
    %cst_57 = arith.constant 5.000000e-01 : f32
    %83 = vector.broadcast %cst_57 : f32 to vector<8x128xf32>
    %84 = arith.mulf %83, %82 : vector<8x128xf32>
    %85 = arith.addf %81, %84 : vector<8x128xf32>
    %c0_58 = arith.constant 0 : index
    %c5_59 = arith.constant 5 : index
    %c0_60 = arith.constant 0 : index
    %86 = vector.load %arg12[%c0_58, %c5_59, %c0_60] : memref<8x8x128xf32, #tpu.memory_space<vmem>>, vector<8x1x128xf32>
    %87 = vector.shape_cast %86 : vector<8x1x128xf32> to vector<8x128xf32>
    %88 = vector.shape_cast %85 : vector<8x128xf32> to vector<8x1x128xf32>
    tpu.vector_store %arg12[%c0_58, %c5_59, %c0_60], %88 {strides = array<i32>} : memref<8x8x128xf32, #tpu.memory_space<vmem>>, vector<8x1x128xf32>,
    %c0_61 = arith.constant 0 : index
    %c6 = arith.constant 6 : index
    %c0_62 = arith.constant 0 : index
    %89 = vector.load %arg12[%c0_61, %c6, %c0_62] : memref<8x8x128xf32, #tpu.memory_space<vmem>>, vector<8x1x128xf32>
    %90 = vector.shape_cast %89 : vector<8x1x128xf32> to vector<8x128xf32>
    %cst_63 = arith.constant dense<0.000000e+00> : vector<8x128xf32>
    %91 = tpu.matmul %85, %9, %cst_63 {dimension_numbers = #tpu.dot_dimension_numbers<[1], [0], [0], [1], [0, 0, 1, 1], [], []>} : vector<8x128xf32>, vector<128x128xf32>, vector<8x128xf32> -> vector<8x128xf32>
    %92 = arith.addf %90, %91 : vector<8x128xf32>
    %cst_64 = arith.constant 5.000000e-01 : f32
    %93 = vector.broadcast %cst_64 : f32 to vector<8x128xf32>
    %94 = arith.mulf %93, %85 : vector<8x128xf32>
    %95 = math.tanh %92 : vector<8x128xf32>
    %cst_65 = arith.constant 5.000000e-01 : f32
    %96 = vector.broadcast %cst_65 : f32 to vector<8x128xf32>
    %97 = arith.mulf %96, %95 : vector<8x128xf32>
    %98 = arith.addf %94, %97 : vector<8x128xf32>
    %c0_66 = arith.constant 0 : index
    %c6_67 = arith.constant 6 : index
    %c0_68 = arith.constant 0 : index
    %99 = vector.load %arg12[%c0_66, %c6_67, %c0_68] : memref<8x8x128xf32, #tpu.memory_space<vmem>>, vector<8x1x128xf32>
    %100 = vector.shape_cast %99 : vector<8x1x128xf32> to vector<8x128xf32>
    %101 = vector.shape_cast %98 : vector<8x128xf32> to vector<8x1x128xf32>
    tpu.vector_store %arg12[%c0_66, %c6_67, %c0_68], %101 {strides = array<i32>} : memref<8x8x128xf32, #tpu.memory_space<vmem>>, vector<8x1x128xf32>,
    %c0_69 = arith.constant 0 : index
    %c7 = arith.constant 7 : index
    %c0_70 = arith.constant 0 : index
    %102 = vector.load %arg12[%c0_69, %c7, %c0_70] : memref<8x8x128xf32, #tpu.memory_space<vmem>>, vector<8x1x128xf32>
    %103 = vector.shape_cast %102 : vector<8x1x128xf32> to vector<8x128xf32>
    %cst_71 = arith.constant dense<0.000000e+00> : vector<8x128xf32>
    %104 = tpu.matmul %98, %9, %cst_71 {dimension_numbers = #tpu.dot_dimension_numbers<[1], [0], [0], [1], [0, 0, 1, 1], [], []>} : vector<8x128xf32>, vector<128x128xf32>, vector<8x128xf32> -> vector<8x128xf32>
    %105 = arith.addf %103, %104 : vector<8x128xf32>
    %cst_72 = arith.constant 5.000000e-01 : f32
    %106 = vector.broadcast %cst_72 : f32 to vector<8x128xf32>
    %107 = arith.mulf %106, %98 : vector<8x128xf32>
    %108 = math.tanh %105 : vector<8x128xf32>
    %cst_73 = arith.constant 5.000000e-01 : f32
    %109 = vector.broadcast %cst_73 : f32 to vector<8x128xf32>
    %110 = arith.mulf %109, %108 : vector<8x128xf32>
    %111 = arith.addf %107, %110 : vector<8x128xf32>
    %c0_74 = arith.constant 0 : index
    %c7_75 = arith.constant 7 : index
    %c0_76 = arith.constant 0 : index
    %112 = vector.load %arg12[%c0_74, %c7_75, %c0_76] : memref<8x8x128xf32, #tpu.memory_space<vmem>>, vector<8x1x128xf32>
    %113 = vector.shape_cast %112 : vector<8x1x128xf32> to vector<8x128xf32>
    %114 = vector.shape_cast %111 : vector<8x128xf32> to vector<8x1x128xf32>
    tpu.vector_store %arg12[%c0_74, %c7_75, %c0_76], %114 {strides = array<i32>} : memref<8x8x128xf32, #tpu.memory_space<vmem>>, vector<8x1x128xf32>,
    %c0_77 = arith.constant 0 : index
    %c0_78 = arith.constant 0 : index
    %115 = vector.load %arg11[%c0_77, %c0_78] : memref<8x128xf32, #tpu.memory_space<vmem>>, vector<8x128xf32>
    tpu.vector_store %arg11[%c0_77, %c0_78], %111 {strides = array<i32>} : memref<8x128xf32, #tpu.memory_space<vmem>>, vector<8x128xf32>,
    %c0_79 = arith.constant 0 : index
    %c0_80 = arith.constant 0 : index
    %c0_81 = arith.constant 0 : index
    %116 = vector.load %arg12[%c0_79, %c0_80, %c0_81] : memref<8x8x128xf32, #tpu.memory_space<vmem>>, vector<8x8x128xf32>
    %117 = vector.shape_cast %116 : vector<8x8x128xf32> to vector<64x128xf32>
    %c0_82 = arith.constant 0 : index
    %c0_83 = arith.constant 0 : index
    %118 = vector.load %arg6[%c0_82, %c0_83] : memref<128x128xf32, #tpu.memory_space<vmem>>, vector<128x128xf32>
    %cst_84 = arith.constant dense<0.000000e+00> : vector<64x128xf32>
    %119 = tpu.matmul %117, %118, %cst_84 {dimension_numbers = #tpu.dot_dimension_numbers<[1], [0], [0], [1], [0, 0, 1, 1], [], []>} : vector<64x128xf32>, vector<128x128xf32>, vector<64x128xf32> -> vector<64x128xf32>
    %c0_85 = arith.constant 0 : index
    %c0_86 = arith.constant 0 : index
    %120 = vector.load %arg7[%c0_85, %c0_86] : memref<1x128xf32, #tpu.memory_space<vmem>>, vector<1x128xf32>
    %121 = vector.broadcast %120 : vector<1x128xf32> to vector<64x128xf32>
    %122 = arith.addf %119, %121 : vector<64x128xf32>
    %cst_87 = arith.constant 5.000000e-01 : f32
    %123 = vector.broadcast %cst_87 : f32 to vector<64x128xf32>
    %124 = arith.mulf %123, %122 : vector<64x128xf32>
    %cst_88 = arith.constant 1.41421354 : f32
    %125 = vector.broadcast %cst_88 : f32 to vector<64x128xf32>
    %126 = arith.divf %122, %125 : vector<64x128xf32>
    %127 = math.erf %126 : vector<64x128xf32>
    %cst_89 = arith.constant 1.000000e+00 : f32
    %128 = vector.broadcast %cst_89 : f32 to vector<64x128xf32>
    %129 = arith.addf %128, %127 : vector<64x128xf32>
    %130 = arith.mulf %124, %129 : vector<64x128xf32>
    %c0_90 = arith.constant 0 : index
    %c0_91 = arith.constant 0 : index
    %131 = vector.load %arg8[%c0_90, %c0_91] : memref<128x128xf32, #tpu.memory_space<vmem>>, vector<128x128xf32>
    %cst_92 = arith.constant dense<0.000000e+00> : vector<64x128xf32>
    %132 = tpu.matmul %130, %131, %cst_92 {dimension_numbers = #tpu.dot_dimension_numbers<[1], [0], [0], [1], [0, 0, 1, 1], [], []>} : vector<64x128xf32>, vector<128x128xf32>, vector<64x128xf32> -> vector<64x128xf32>
    %c0_93 = arith.constant 0 : index
    %c0_94 = arith.constant 0 : index
    %133 = vector.load %arg9[%c0_93, %c0_94] : memref<1x128xf32, #tpu.memory_space<vmem>>, vector<1x128xf32>
    %134 = vector.broadcast %133 : vector<1x128xf32> to vector<64x128xf32>
    %135 = arith.addf %132, %134 : vector<64x128xf32>
    %136 = vector.shape_cast %135 : vector<64x128xf32> to vector<8x8x128xf32>
    %c0_95 = arith.constant 0 : index
    %c0_96 = arith.constant 0 : index
    %c0_97 = arith.constant 0 : index
    %137 = vector.load %arg10[%c0_95, %c0_96, %c0_97] : memref<8x8x128xf32, #tpu.memory_space<vmem>>, vector<8x8x128xf32>
    tpu.vector_store %arg10[%c0_95, %c0_96, %c0_97], %136 {strides = array<i32>} : memref<8x8x128xf32, #tpu.memory_space<vmem>>, vector<8x8x128xf32>,
    return
  }
  func.func @transform_0(%arg0: i32, %arg1: i32) -> (i32, i32, i32) {
    %c0_i32 = arith.constant 0 : i32
    %c0_i32_0 = arith.constant 0 : i32
    return %arg0, %arg1, %c0_i32 : i32, i32, i32
  }
  func.func @transform_1(%arg0: i32, %arg1: i32) -> (i32, i32) {
    %c0_i32 = arith.constant 0 : i32
    %c0_i32_0 = arith.constant 0 : i32
    return %arg0, %c0_i32 : i32, i32
  }
  func.func @transform_2(%arg0: i32, %arg1: i32) -> (i32, i32) {
    %c0_i32 = arith.constant 0 : i32
    %c0_i32_0 = arith.constant 0 : i32
    %c0_i32_1 = arith.constant 0 : i32
    return %c0_i32, %c0_i32_0 : i32, i32
  }
  func.func @transform_3(%arg0: i32, %arg1: i32) -> (i32, i32) {
    %c0_i32 = arith.constant 0 : i32
    %c0_i32_0 = arith.constant 0 : i32
    %c0_i32_1 = arith.constant 0 : i32
    return %c0_i32, %c0_i32_0 : i32, i32
  }
  func.func @transform_4(%arg0: i32, %arg1: i32) -> (i32, i32) {
    %c0_i32 = arith.constant 0 : i32
    %c0_i32_0 = arith.constant 0 : i32
    %c0_i32_1 = arith.constant 0 : i32
    return %c0_i32, %c0_i32_0 : i32, i32
  }
  func.func @transform_5(%arg0: i32, %arg1: i32) -> (i32, i32) {
    %c0_i32 = arith.constant 0 : i32
    %c0_i32_0 = arith.constant 0 : i32
    %c0_i32_1 = arith.constant 0 : i32
    return %c0_i32, %c0_i32_0 : i32, i32
  }
  func.func @transform_6(%arg0: i32, %arg1: i32) -> (i32, i32) {
    %c0_i32 = arith.constant 0 : i32
    %c0_i32_0 = arith.constant 0 : i32
    %c0_i32_1 = arith.constant 0 : i32
    return %c0_i32, %c0_i32_0 : i32, i32
  }
  func.func @transform_7(%arg0: i32, %arg1: i32) -> (i32, i32) {
    %c0_i32 = arith.constant 0 : i32
    %c0_i32_0 = arith.constant 0 : i32
    %c0_i32_1 = arith.constant 0 : i32
    return %c0_i32, %c0_i32_0 : i32, i32
  }
  func.func @transform_8(%arg0: i32, %arg1: i32) -> (i32, i32, i32) {
    %c0_i32 = arith.constant 0 : i32
    %c0_i32_0 = arith.constant 0 : i32
    return %arg0, %arg1, %c0_i32 : i32, i32, i32
  }
  func.func @transform_9(%arg0: i32, %arg1: i32) -> (i32, i32) {
    %c0_i32 = arith.constant 0 : i32
    %c0_i32_0 = arith.constant 0 : i32
    return %arg0, %c0_i32 : i32, i32
  }
}

module attributes {stable_mosaic.version = 11 : i64} {
  func.func @esn_kernel(%arg0: i32, %arg1: i32, %arg2: memref<8x8x8xf32, #tpu.memory_space<vmem>>, %arg3: memref<8x128xf32, #tpu.memory_space<vmem>>, %arg4: memref<8x128xf32, #tpu.memory_space<vmem>>, %arg5: memref<128x128xf32, #tpu.memory_space<vmem>>, %arg6: memref<128x128xf32, #tpu.memory_space<vmem>>, %arg7: memref<1x128xf32, #tpu.memory_space<vmem>>, %arg8: memref<128x128xf32, #tpu.memory_space<vmem>>, %arg9: memref<1x128xf32, #tpu.memory_space<vmem>>, %arg10: memref<8x8x128xf32, #tpu.memory_space<vmem>>, %arg11: memref<8x128xf32, #tpu.memory_space<vmem>>, %arg12: memref<8x8x128xf32, #tpu.memory_space<vmem>>) attributes {dimension_semantics = [#tpu.dimension_semantics<parallel>, #tpu.dimension_semantics<arbitrary>], iteration_bounds = array<i64: 1, 1>, scalar_prefetch = 0 : i64, scratch_operands = 1 : i64, tpu.core_type = #tpu.core_type<tc>, window_params = [{transform_indices = @transform_0, window_bounds = array<i64: 8, 8, 8>}, {transform_indices = @transform_1, window_bounds = array<i64: 8, 128>}, {pipeline_mode = #tpu.pipeline_mode<synchronous>, transform_indices = @transform_2, window_bounds = array<i64: 8, 128>}, {pipeline_mode = #tpu.pipeline_mode<synchronous>, transform_indices = @transform_3, window_bounds = array<i64: 128, 128>}, {pipeline_mode = #tpu.pipeline_mode<synchronous>, transform_indices = @transform_4, window_bounds = array<i64: 128, 128>}, {pipeline_mode = #tpu.pipeline_mode<synchronous>, transform_indices = @transform_5, window_bounds = array<i64: 1, 128>}, {pipeline_mode = #tpu.pipeline_mode<synchronous>, transform_indices = @transform_6, window_bounds = array<i64: 128, 128>}, {pipeline_mode = #tpu.pipeline_mode<synchronous>, transform_indices = @transform_7, window_bounds = array<i64: 1, 128>}, {transform_indices = @transform_8, window_bounds = array<i64: 8, 8, 128>}, {transform_indices = @transform_9, window_bounds = array<i64: 8, 128>}]} {
    %c0_i32 = arith.constant 0 : i32
    %0 = arith.cmpi eq, %arg1, %c0_i32 : i32
    %1 = arith.extui %0 : i1 to i32
    %c0_i32_0 = arith.constant 0 : i32
    %2 = arith.cmpi ne, %1, %c0_i32_0 : i32
    scf.if %2 {
      %c0_98 = arith.constant 0 : index
      %c0_99 = arith.constant 0 : index
      %138 = vector.load %arg3[%c0_98, %c0_99] : memref<8x128xf32, #tpu.memory_space<vmem>>, vector<8x128xf32>
      %c0_100 = arith.constant 0 : index
      %c0_101 = arith.constant 0 : index
      %139 = vector.load %arg11[%c0_100, %c0_101] : memref<8x128xf32, #tpu.memory_space<vmem>>, vector<8x128xf32>
      tpu.vector_store %arg11[%c0_100, %c0_101], %138 {strides = array<i32>} : memref<8x128xf32, #tpu.memory_space<vmem>>, vector<8x128xf32>,
    } else {
    }
    %c0 = arith.constant 0 : index
    %c0_1 = arith.constant 0 : index
    %c0_2 = arith.constant 0 : index
    %3 = vector.load %arg2[%c0, %c0_1, %c0_2] : memref<8x8x8xf32, #tpu.memory_space<vmem>>, vector<8x8x8xf32>
    %4 = vector.shape_cast %3 : vector<8x8x8xf32> to vector<64x8xf32>
    %c0_3 = arith.constant 0 : index
    %c0_4 = arith.constant 0 : index
    %5 = vector.load %arg4[%c0_3, %c0_4] : memref<8x128xf32, #tpu.memory_space<vmem>>, vector<8x128xf32>
    %cst = arith.constant dense<0.000000e+00> : vector<64x128xf32>
    %6 = tpu.matmul %4, %5, %cst {dimension_numbers = #tpu.dot_dimension_numbers<[1], [0], [0], [1], [0, 0, 1, 1], [], []>} : vector<64x8xf32>, vector<8x128xf32>, vector<64x128xf32> -> vector<64x128xf32>
    %7 = vector.shape_cast %6 : vector<64x128xf32> to vector<8x8x128xf32>
    %c0_5 = arith.constant 0 : index
    %c0_6 = arith.constant 0 : index
    %c0_7 = arith.constant 0 : index
    %8 = vector.load %arg12[%c0_5, %c0_6, %c0_7] : memref<8x8x128xf32, #tpu.memory_space<vmem>>, vector<8x8x128xf32>
    tpu.vector_store %arg12[%c0_5, %c0_6, %c0_7], %7 {strides = array<i32>} : memref<8x8x128xf32, #tpu.memory_space<vmem>>, vector<8x8x128xf32>,
    %c0_8 = arith.constant 0 : index
    %c0_9 = arith.constant 0 : index
    %9 = vector.load %arg5[%c0_8, %c0_9] : memref<128x128xf32, #tpu.memory_space<vmem>>, vector<128x128xf32>
    %c0_10 = arith.constant 0 : index
    %c0_11 = arith.constant 0 : index
    %10 = vector.load %arg11[%c0_10, %c0_11] : memref<8x128xf32, #tpu.memory_space<vmem>>, vector<8x128xf32>
    %c0_12 = arith.constant 0 : index
    %c0_13 = arith.constant 0 : index
    %c0_14 = arith.constant 0 : index
    %11 = vector.load %arg12[%c0_12, %c0_13, %c0_14] : memref<8x8x128xf32, #tpu.memory_space<vmem>>, vector<8x1x128xf32>
    %12 = vector.shape_cast %11 : vector<8x1x128xf32> to vector<8x128xf32>
    %cst_15 = arith.constant dense<0.000000e+00> : vector<8x128xf32>
    %13 = tpu.matmul %10, %9, %cst_15 {dimension_numbers = #tpu.dot_dimension_numbers<[1], [0], [0], [1], [0, 0, 1, 1], [], []>} : vector<8x128xf32>, vector<128x128xf32>, vector<8x128xf32> -> vector<8x128xf32>
    %14 = arith.addf %12, %13 : vector<8x128xf32>
    %cst_16 = arith.constant 5.000000e-01 : f32
    %15 = vector.broadcast %cst_16 : f32 to vector<8x128xf32>
    %16 = arith.mulf %15, %10 : vector<8x128xf32>
    %17 = math.tanh %14 : vector<8x128xf32>
    %cst_17 = arith.constant 5.000000e-01 : f32
    %18 = vector.broadcast %cst_17 : f32 to vector<8x128xf32>
    %19 = arith.mulf %18, %17 : vector<8x128xf32>
    %20 = arith.addf %16, %19 : vector<8x128xf32>
    %c0_18 = arith.constant 0 : index
    %c0_19 = arith.constant 0 : index
    %c0_20 = arith.constant 0 : index
    %21 = vector.load %arg12[%c0_18, %c0_19, %c0_20] : memref<8x8x128xf32, #tpu.memory_space<vmem>>, vector<8x1x128xf32>
    %22 = vector.shape_cast %21 : vector<8x1x128xf32> to vector<8x128xf32>
    %23 = vector.shape_cast %20 : vector<8x128xf32> to vector<8x1x128xf32>
    tpu.vector_store %arg12[%c0_18, %c0_19, %c0_20], %23 {strides = array<i32>} : memref<8x8x128xf32, #tpu.memory_space<vmem>>, vector<8x1x128xf32>,
    %c0_21 = arith.constant 0 : index
    %c1 = arith.constant 1 : index
    %c0_22 = arith.constant 0 : index
    %24 = vector.load %arg12[%c0_21, %c1, %c0_22] : memref<8x8x128xf32, #tpu.memory_space<vmem>>, vector<8x1x128xf32>
    %25 = vector.shape_cast %24 : vector<8x1x128xf32> to vector<8x128xf32>
    %cst_23 = arith.constant dense<0.000000e+00> : vector<8x128xf32>
    %26 = tpu.matmul %20, %9, %cst_23 {dimension_numbers = #tpu.dot_dimension_numbers<[1], [0], [0], [1], [0, 0, 1, 1], [], []>} : vector<8x128xf32>, vector<128x128xf32>, vector<8x128xf32> -> vector<8x128xf32>
    %27 = arith.addf %25, %26 : vector<8x128xf32>
    %cst_24 = arith.constant 5.000000e-01 : f32
    %28 = vector.broadcast %cst_24 : f32 to vector<8x128xf32>
    %29 = arith.mulf %28, %20 : vector<8x128xf32>
    %30 = math.tanh %27 : vector<8x128xf32>
    %cst_25 = arith.constant 5.000000e-01 : f32
    %31 = vector.broadcast %cst_25 : f32 to vector<8x128xf32>
    %32 = arith.mulf %31, %30 : vector<8x128xf32>
    %33 = arith.addf %29, %32 : vector<8x128xf32>
    %c0_26 = arith.constant 0 : index
    %c1_27 = arith.constant 1 : index
    %c0_28 = arith.constant 0 : index
    %34 = vector.load %arg12[%c0_26, %c1_27, %c0_28] : memref<8x8x128xf32, #tpu.memory_space<vmem>>, vector<8x1x128xf32>
    %35 = vector.shape_cast %34 : vector<8x1x128xf32> to vector<8x128xf32>
    %36 = vector.shape_cast %33 : vector<8x128xf32> to vector<8x1x128xf32>
    tpu.vector_store %arg12[%c0_26, %c1_27, %c0_28], %36 {strides = array<i32>} : memref<8x8x128xf32, #tpu.memory_space<vmem>>, vector<8x1x128xf32>,
    %c0_29 = arith.constant 0 : index
    %c2 = arith.constant 2 : index
    %c0_30 = arith.constant 0 : index
    %37 = vector.load %arg12[%c0_29, %c2, %c0_30] : memref<8x8x128xf32, #tpu.memory_space<vmem>>, vector<8x1x128xf32>
    %38 = vector.shape_cast %37 : vector<8x1x128xf32> to vector<8x128xf32>
    %cst_31 = arith.constant dense<0.000000e+00> : vector<8x128xf32>
    %39 = tpu.matmul %33, %9, %cst_31 {dimension_numbers = #tpu.dot_dimension_numbers<[1], [0], [0], [1], [0, 0, 1, 1], [], []>} : vector<8x128xf32>, vector<128x128xf32>, vector<8x128xf32> -> vector<8x128xf32>
    %40 = arith.addf %38, %39 : vector<8x128xf32>
    %cst_32 = arith.constant 5.000000e-01 : f32
    %41 = vector.broadcast %cst_32 : f32 to vector<8x128xf32>
    %42 = arith.mulf %41, %33 : vector<8x128xf32>
    %43 = math.tanh %40 : vector<8x128xf32>
    %cst_33 = arith.constant 5.000000e-01 : f32
    %44 = vector.broadcast %cst_33 : f32 to vector<8x128xf32>
    %45 = arith.mulf %44, %43 : vector<8x128xf32>
    %46 = arith.addf %42, %45 : vector<8x128xf32>
    %c0_34 = arith.constant 0 : index
    %c2_35 = arith.constant 2 : index
    %c0_36 = arith.constant 0 : index
    %47 = vector.load %arg12[%c0_34, %c2_35, %c0_36] : memref<8x8x128xf32, #tpu.memory_space<vmem>>, vector<8x1x128xf32>
    %48 = vector.shape_cast %47 : vector<8x1x128xf32> to vector<8x128xf32>
    %49 = vector.shape_cast %46 : vector<8x128xf32> to vector<8x1x128xf32>
    tpu.vector_store %arg12[%c0_34, %c2_35, %c0_36], %49 {strides = array<i32>} : memref<8x8x128xf32, #tpu.memory_space<vmem>>, vector<8x1x128xf32>,
    %c0_37 = arith.constant 0 : index
    %c3 = arith.constant 3 : index
    %c0_38 = arith.constant 0 : index
    %50 = vector.load %arg12[%c0_37, %c3, %c0_38] : memref<8x8x128xf32, #tpu.memory_space<vmem>>, vector<8x1x128xf32>
    %51 = vector.shape_cast %50 : vector<8x1x128xf32> to vector<8x128xf32>
    %cst_39 = arith.constant dense<0.000000e+00> : vector<8x128xf32>
    %52 = tpu.matmul %46, %9, %cst_39 {dimension_numbers = #tpu.dot_dimension_numbers<[1], [0], [0], [1], [0, 0, 1, 1], [], []>} : vector<8x128xf32>, vector<128x128xf32>, vector<8x128xf32> -> vector<8x128xf32>
    %53 = arith.addf %51, %52 : vector<8x128xf32>
    %cst_40 = arith.constant 5.000000e-01 : f32
    %54 = vector.broadcast %cst_40 : f32 to vector<8x128xf32>
    %55 = arith.mulf %54, %46 : vector<8x128xf32>
    %56 = math.tanh %53 : vector<8x128xf32>
    %cst_41 = arith.constant 5.000000e-01 : f32
    %57 = vector.broadcast %cst_41 : f32 to vector<8x128xf32>
    %58 = arith.mulf %57, %56 : vector<8x128xf32>
    %59 = arith.addf %55, %58 : vector<8x128xf32>
    %c0_42 = arith.constant 0 : index
    %c3_43 = arith.constant 3 : index
    %c0_44 = arith.constant 0 : index
    %60 = vector.load %arg12[%c0_42, %c3_43, %c0_44] : memref<8x8x128xf32, #tpu.memory_space<vmem>>, vector<8x1x128xf32>
    %61 = vector.shape_cast %60 : vector<8x1x128xf32> to vector<8x128xf32>
    %62 = vector.shape_cast %59 : vector<8x128xf32> to vector<8x1x128xf32>
    tpu.vector_store %arg12[%c0_42, %c3_43, %c0_44], %62 {strides = array<i32>} : memref<8x8x128xf32, #tpu.memory_space<vmem>>, vector<8x1x128xf32>,
    %c0_45 = arith.constant 0 : index
    %c4 = arith.constant 4 : index
    %c0_46 = arith.constant 0 : index
    %63 = vector.load %arg12[%c0_45, %c4, %c0_46] : memref<8x8x128xf32, #tpu.memory_space<vmem>>, vector<8x1x128xf32>
    %64 = vector.shape_cast %63 : vector<8x1x128xf32> to vector<8x128xf32>
    %cst_47 = arith.constant dense<0.000000e+00> : vector<8x128xf32>
    %65 = tpu.matmul %59, %9, %cst_47 {dimension_numbers = #tpu.dot_dimension_numbers<[1], [0], [0], [1], [0, 0, 1, 1], [], []>} : vector<8x128xf32>, vector<128x128xf32>, vector<8x128xf32> -> vector<8x128xf32>
    %66 = arith.addf %64, %65 : vector<8x128xf32>
    %cst_48 = arith.constant 5.000000e-01 : f32
    %67 = vector.broadcast %cst_48 : f32 to vector<8x128xf32>
    %68 = arith.mulf %67, %59 : vector<8x128xf32>
    %69 = math.tanh %66 : vector<8x128xf32>
    %cst_49 = arith.constant 5.000000e-01 : f32
    %70 = vector.broadcast %cst_49 : f32 to vector<8x128xf32>
    %71 = arith.mulf %70, %69 : vector<8x128xf32>
    %72 = arith.addf %68, %71 : vector<8x128xf32>
    %c0_50 = arith.constant 0 : index
    %c4_51 = arith.constant 4 : index
    %c0_52 = arith.constant 0 : index
    %73 = vector.load %arg12[%c0_50, %c4_51, %c0_52] : memref<8x8x128xf32, #tpu.memory_space<vmem>>, vector<8x1x128xf32>
    %74 = vector.shape_cast %73 : vector<8x1x128xf32> to vector<8x128xf32>
    %75 = vector.shape_cast %72 : vector<8x128xf32> to vector<8x1x128xf32>
    tpu.vector_store %arg12[%c0_50, %c4_51, %c0_52], %75 {strides = array<i32>} : memref<8x8x128xf32, #tpu.memory_space<vmem>>, vector<8x1x128xf32>,
    %c0_53 = arith.constant 0 : index
    %c5 = arith.constant 5 : index
    %c0_54 = arith.constant 0 : index
    %76 = vector.load %arg12[%c0_53, %c5, %c0_54] : memref<8x8x128xf32, #tpu.memory_space<vmem>>, vector<8x1x128xf32>
    %77 = vector.shape_cast %76 : vector<8x1x128xf32> to vector<8x128xf32>
    %cst_55 = arith.constant dense<0.000000e+00> : vector<8x128xf32>
    %78 = tpu.matmul %72, %9, %cst_55 {dimension_numbers = #tpu.dot_dimension_numbers<[1], [0], [0], [1], [0, 0, 1, 1], [], []>} : vector<8x128xf32>, vector<128x128xf32>, vector<8x128xf32> -> vector<8x128xf32>
    %79 = arith.addf %77, %78 : vector<8x128xf32>
    %cst_56 = arith.constant 5.000000e-01 : f32
    %80 = vector.broadcast %cst_56 : f32 to vector<8x128xf32>
    %81 = arith.mulf %80, %72 : vector<8x128xf32>
    %82 = math.tanh %79 : vector<8x128xf32>
    %cst_57 = arith.constant 5.000000e-01 : f32
    %83 = vector.broadcast %cst_57 : f32 to vector<8x128xf32>
    %84 = arith.mulf %83, %82 : vector<8x128xf32>
    %85 = arith.addf %81, %84 : vector<8x128xf32>
    %c0_58 = arith.constant 0 : index
    %c5_59 = arith.constant 5 : index
    %c0_60 = arith.constant 0 : index
    %86 = vector.load %arg12[%c0_58, %c5_59, %c0_60] : memref<8x8x128xf32, #tpu.memory_space<vmem>>, vector<8x1x128xf32>
    %87 = vector.shape_cast %86 : vector<8x1x128xf32> to vector<8x128xf32>
    %88 = vector.shape_cast %85 : vector<8x128xf32> to vector<8x1x128xf32>
    tpu.vector_store %arg12[%c0_58, %c5_59, %c0_60], %88 {strides = array<i32>} : memref<8x8x128xf32, #tpu.memory_space<vmem>>, vector<8x1x128xf32>,
    %c0_61 = arith.constant 0 : index
    %c6 = arith.constant 6 : index
    %c0_62 = arith.constant 0 : index
    %89 = vector.load %arg12[%c0_61, %c6, %c0_62] : memref<8x8x128xf32, #tpu.memory_space<vmem>>, vector<8x1x128xf32>
    %90 = vector.shape_cast %89 : vector<8x1x128xf32> to vector<8x128xf32>
    %cst_63 = arith.constant dense<0.000000e+00> : vector<8x128xf32>
    %91 = tpu.matmul %85, %9, %cst_63 {dimension_numbers = #tpu.dot_dimension_numbers<[1], [0], [0], [1], [0, 0, 1, 1], [], []>} : vector<8x128xf32>, vector<128x128xf32>, vector<8x128xf32> -> vector<8x128xf32>
    %92 = arith.addf %90, %91 : vector<8x128xf32>
    %cst_64 = arith.constant 5.000000e-01 : f32
    %93 = vector.broadcast %cst_64 : f32 to vector<8x128xf32>
    %94 = arith.mulf %93, %85 : vector<8x128xf32>
    %95 = math.tanh %92 : vector<8x128xf32>
    %cst_65 = arith.constant 5.000000e-01 : f32
    %96 = vector.broadcast %cst_65 : f32 to vector<8x128xf32>
    %97 = arith.mulf %96, %95 : vector<8x128xf32>
    %98 = arith.addf %94, %97 : vector<8x128xf32>
    %c0_66 = arith.constant 0 : index
    %c6_67 = arith.constant 6 : index
    %c0_68 = arith.constant 0 : index
    %99 = vector.load %arg12[%c0_66, %c6_67, %c0_68] : memref<8x8x128xf32, #tpu.memory_space<vmem>>, vector<8x1x128xf32>
    %100 = vector.shape_cast %99 : vector<8x1x128xf32> to vector<8x128xf32>
    %101 = vector.shape_cast %98 : vector<8x128xf32> to vector<8x1x128xf32>
    tpu.vector_store %arg12[%c0_66, %c6_67, %c0_68], %101 {strides = array<i32>} : memref<8x8x128xf32, #tpu.memory_space<vmem>>, vector<8x1x128xf32>,
    %c0_69 = arith.constant 0 : index
    %c7 = arith.constant 7 : index
    %c0_70 = arith.constant 0 : index
    %102 = vector.load %arg12[%c0_69, %c7, %c0_70] : memref<8x8x128xf32, #tpu.memory_space<vmem>>, vector<8x1x128xf32>
    %103 = vector.shape_cast %102 : vector<8x1x128xf32> to vector<8x128xf32>
    %cst_71 = arith.constant dense<0.000000e+00> : vector<8x128xf32>
    %104 = tpu.matmul %98, %9, %cst_71 {dimension_numbers = #tpu.dot_dimension_numbers<[1], [0], [0], [1], [0, 0, 1, 1], [], []>} : vector<8x128xf32>, vector<128x128xf32>, vector<8x128xf32> -> vector<8x128xf32>
    %105 = arith.addf %103, %104 : vector<8x128xf32>
    %cst_72 = arith.constant 5.000000e-01 : f32
    %106 = vector.broadcast %cst_72 : f32 to vector<8x128xf32>
    %107 = arith.mulf %106, %98 : vector<8x128xf32>
    %108 = math.tanh %105 : vector<8x128xf32>
    %cst_73 = arith.constant 5.000000e-01 : f32
    %109 = vector.broadcast %cst_73 : f32 to vector<8x128xf32>
    %110 = arith.mulf %109, %108 : vector<8x128xf32>
    %111 = arith.addf %107, %110 : vector<8x128xf32>
    %c0_74 = arith.constant 0 : index
    %c7_75 = arith.constant 7 : index
    %c0_76 = arith.constant 0 : index
    %112 = vector.load %arg12[%c0_74, %c7_75, %c0_76] : memref<8x8x128xf32, #tpu.memory_space<vmem>>, vector<8x1x128xf32>
    %113 = vector.shape_cast %112 : vector<8x1x128xf32> to vector<8x128xf32>
    %114 = vector.shape_cast %111 : vector<8x128xf32> to vector<8x1x128xf32>
    tpu.vector_store %arg12[%c0_74, %c7_75, %c0_76], %114 {strides = array<i32>} : memref<8x8x128xf32, #tpu.memory_space<vmem>>, vector<8x1x128xf32>,
    %c0_77 = arith.constant 0 : index
    %c0_78 = arith.constant 0 : index
    %115 = vector.load %arg11[%c0_77, %c0_78] : memref<8x128xf32, #tpu.memory_space<vmem>>, vector<8x128xf32>
    tpu.vector_store %arg11[%c0_77, %c0_78], %111 {strides = array<i32>} : memref<8x128xf32, #tpu.memory_space<vmem>>, vector<8x128xf32>,
    %c0_79 = arith.constant 0 : index
    %c0_80 = arith.constant 0 : index
    %c0_81 = arith.constant 0 : index
    %116 = vector.load %arg12[%c0_79, %c0_80, %c0_81] : memref<8x8x128xf32, #tpu.memory_space<vmem>>, vector<8x8x128xf32>
    %117 = vector.shape_cast %116 : vector<8x8x128xf32> to vector<64x128xf32>
    %c0_82 = arith.constant 0 : index
    %c0_83 = arith.constant 0 : index
    %118 = vector.load %arg6[%c0_82, %c0_83] : memref<128x128xf32, #tpu.memory_space<vmem>>, vector<128x128xf32>
    %cst_84 = arith.constant dense<0.000000e+00> : vector<64x128xf32>
    %119 = tpu.matmul %117, %118, %cst_84 {dimension_numbers = #tpu.dot_dimension_numbers<[1], [0], [0], [1], [0, 0, 1, 1], [], []>} : vector<64x128xf32>, vector<128x128xf32>, vector<64x128xf32> -> vector<64x128xf32>
    %c0_85 = arith.constant 0 : index
    %c0_86 = arith.constant 0 : index
    %120 = vector.load %arg7[%c0_85, %c0_86] : memref<1x128xf32, #tpu.memory_space<vmem>>, vector<1x128xf32>
    %121 = vector.broadcast %120 : vector<1x128xf32> to vector<64x128xf32>
    %122 = arith.addf %119, %121 : vector<64x128xf32>
    %cst_87 = arith.constant 5.000000e-01 : f32
    %123 = vector.broadcast %cst_87 : f32 to vector<64x128xf32>
    %124 = arith.mulf %123, %122 : vector<64x128xf32>
    %cst_88 = arith.constant 1.41421354 : f32
    %125 = vector.broadcast %cst_88 : f32 to vector<64x128xf32>
    %126 = arith.divf %122, %125 : vector<64x128xf32>
    %127 = math.erf %126 : vector<64x128xf32>
    %cst_89 = arith.constant 1.000000e+00 : f32
    %128 = vector.broadcast %cst_89 : f32 to vector<64x128xf32>
    %129 = arith.addf %128, %127 : vector<64x128xf32>
    %130 = arith.mulf %124, %129 : vector<64x128xf32>
    %c0_90 = arith.constant 0 : index
    %c0_91 = arith.constant 0 : index
    %131 = vector.load %arg8[%c0_90, %c0_91] : memref<128x128xf32, #tpu.memory_space<vmem>>, vector<128x128xf32>
    %cst_92 = arith.constant dense<0.000000e+00> : vector<64x128xf32>
    %132 = tpu.matmul %130, %131, %cst_92 {dimension_numbers = #tpu.dot_dimension_numbers<[1], [0], [0], [1], [0, 0, 1, 1], [], []>} : vector<64x128xf32>, vector<128x128xf32>, vector<64x128xf32> -> vector<64x128xf32>
    %c0_93 = arith.constant 0 : index
    %c0_94 = arith.constant 0 : index
    %133 = vector.load %arg9[%c0_93, %c0_94] : memref<1x128xf32, #tpu.memory_space<vmem>>, vector<1x128xf32>
    %134 = vector.broadcast %133 : vector<1x128xf32> to vector<64x128xf32>
    %135 = arith.addf %132, %134 : vector<64x128xf32>
    %136 = vector.shape_cast %135 : vector<64x128xf32> to vector<8x8x128xf32>
    %c0_95 = arith.constant 0 : index
    %c0_96 = arith.constant 0 : index
    %c0_97 = arith.constant 0 : index
    %137 = vector.load %arg10[%c0_95, %c0_96, %c0_97] : memref<8x8x128xf32, #tpu.memory_space<vmem>>, vector<8x8x128xf32>
    tpu.vector_store %arg10[%c0_95, %c0_96, %c0_97], %136 {strides = array<i32>} : memref<8x8x128xf32, #tpu.memory_space<vmem>>, vector<8x8x128xf32>,
    return
  }
  func.func @transform_0(%arg0: i32, %arg1: i32) -> (i32, i32, i32) {
    %c0_i32 = arith.constant 0 : i32
    %c0_i32_0 = arith.constant 0 : i32
    return %arg0, %arg1, %c0_i32 : i32, i32, i32
  }
  func.func @transform_1(%arg0: i32, %arg1: i32) -> (i32, i32) {
    %c0_i32 = arith.constant 0 : i32
    %c0_i32_0 = arith.constant 0 : i32
    return %arg0, %c0_i32 : i32, i32
  }
  func.func @transform_2(%arg0: i32, %arg1: i32) -> (i32, i32) {
    %c0_i32 = arith.constant 0 : i32
    %c0_i32_0 = arith.constant 0 : i32
    %c0_i32_1 = arith.constant 0 : i32
    return %c0_i32, %c0_i32_0 : i32, i32
  }
  func.func @transform_3(%arg0: i32, %arg1: i32) -> (i32, i32) {
    %c0_i32 = arith.constant 0 : i32
    %c0_i32_0 = arith.constant 0 : i32
    %c0_i32_1 = arith.constant 0 : i32
    return %c0_i32, %c0_i32_0 : i32, i32
  }
  func.func @transform_4(%arg0: i32, %arg1: i32) -> (i32, i32) {
    %c0_i32 = arith.constant 0 : i32
    %c0_i32_0 = arith.constant 0 : i32
    %c0_i32_1 = arith.constant 0 : i32
    return %c0_i32, %c0_i32_0 : i32, i32
  }
  func.func @transform_5(%arg0: i32, %arg1: i32) -> (i32, i32) {
    %c0_i32 = arith.constant 0 : i32
    %c0_i32_0 = arith.constant 0 : i32
    %c0_i32_1 = arith.constant 0 : i32
    return %c0_i32, %c0_i32_0 : i32, i32
  }
  func.func @transform_6(%arg0: i32, %arg1: i32) -> (i32, i32) {
    %c0_i32 = arith.constant 0 : i32
    %c0_i32_0 = arith.constant 0 : i32
    %c0_i32_1 = arith.constant 0 : i32
    return %c0_i32, %c0_i32_0 : i32, i32
  }
  func.func @transform_7(%arg0: i32, %arg1: i32) -> (i32, i32) {
    %c0_i32 = arith.constant 0 : i32
    %c0_i32_0 = arith.constant 0 : i32
    %c0_i32_1 = arith.constant 0 : i32
    return %c0_i32, %c0_i32_0 : i32, i32
  }
  func.func @transform_8(%arg0: i32, %arg1: i32) -> (i32, i32, i32) {
    %c0_i32 = arith.constant 0 : i32
    %c0_i32_0 = arith.constant 0 : i32
    return %arg0, %arg1, %c0_i32 : i32, i32, i32
  }
  func.func @transform_9(%arg0: i32, %arg1: i32) -> (i32, i32) {
    %c0_i32 = arith.constant 0 : i32
    %c0_i32_0 = arith.constant 0 : i32
    return %arg0, %c0_i32 : i32, i32
  }
}

</mosaic_0001>

<bundles_post_ra>
// kernel: tpu_custom_call.1
= control target key start
LH: loop header
LB: loop body
LE: loop exit
PB: predicated region body
PF: predicated region fallthrough
CT: control target
= control target key end

     0   :  { %15 = vsyncpa [#allocation4], 0  ;;  %s3881_s0 = inlined_call_operand.hbm [shape: f32[8,8,8], index: 0, kind: input, shape index: {}]   ;;  %s3882_s1 = inlined_call_operand.hbm [shape: f32[8,128], index: 1, kind: input, shape index: {}]   ;;  %s3883_s2 = inlined_call_operand.hbm [shape: f32[8,128], index: 2, kind: input, shape index: {}]   ;;  %s3884_s3 = inlined_call_operand.hbm [shape: f32[128,128], index: 3, kind: input, shape index: {}]   ;;  %s3885_s4 = inlined_call_operand.hbm [shape: f32[128,128], index: 4, kind: input, shape index: {}]   ;;  %s3886_s5 = inlined_call_operand.vmem [shape: f32[1,128], index: 5, kind: input, shape index: {}]   ;;  %s3887_s6 = inlined_call_operand.hbm [shape: f32[128,128], index: 6, kind: input, shape index: {}]   ;;  %s3888_s7 = inlined_call_operand.vmem [shape: f32[1,128], index: 7, kind: input, shape index: {}]   ;;  %s3889_s8 = inlined_call_operand.hbm [shape: f32[8,8,128], index: 8, kind: output, shape index: {0}]   ;;  %s3890_s9 = inlined_call_operand.hbm [shape: f32[8,128], index: 9, kind: output, shape index: {1}]  }
   0x1   :  { %16 = vsyncpa [#allocation7], 0 }
   0x2   :  { %17 = vsyncpa [#allocation10], 0 }
   0x3   :  { %18 = vsyncpa [#allocation13], 0 }
   0x4   :  { %19 = vsyncpa [#allocation5], 0 }
   0x5   :  { %20 = vsyncpa [#allocation16], 0  ;;  %s3270_s30 = smov [#allocation6]  }
   0x6   :  { %s39_s10 = sshll.u32 %s3270_s30, 4  ;;  %s40_s10 = int_to_ptr.vmem [resolvable:$true] %s39_s10 }
   0x7   :  { %s3106_s11 = scalar_lea.vmem %s40_s10, 128  ;;  %p3111_p1 = scmp.lt.s32.totalorder %s40_s10, %s40_s10 }
   0x8   :  { %p3107_p0 = scmp.ne.s32.totalorder %s40_s10, %s3106_s11  ;;  %p3112_p2 = scmp.lt.s32.totalorder %s3106_s11, %s3106_s11 }
   0xa   :  { %p3113_p3 = por %p3112_p2, %p3111_p1 }
   0xc   :  { %p3114_p4 = pnand %p3113_p3, %p3107_p0 }
   0xe   :  { %3117 = shalt.err (!%p3114_p4)
}
   0xf   :  { %42 = dma.hbm_to_vmem [thread:$0]  %s3882_s1, 128, %s40_s10, [#allocation7]  }
  0x10   :  { %s3271_s14 = smov [#allocation9]   ;;  %s3272_s16 = smov [#allocation3]  }
  0x11   :  { %s58_s15 = sshll.u32 %s3271_s14, 4  ;;  %s26_s17 = sshll.u32 %s3272_s16, 4  ;;  %s59_s15 = int_to_ptr.vmem [resolvable:$true] %s58_s15  ;;  %s27_s17 = int_to_ptr.vmem [resolvable:$true] %s26_s17 }
  0x12   :  { %s3126_s18 = scalar_lea.vmem %s59_s15, 2048  ;;  %p3131_p6 = scmp.lt.s32.totalorder %s59_s15, %s59_s15 }
  0x13   :  { %p3127_p5 = scmp.ne.s32.totalorder %s59_s15, %s3126_s18  ;;  %p3132_p7 = scmp.lt.s32.totalorder %s3126_s18, %s3126_s18 }
  0x15   :  { %p3133_p8 = por %p3132_p7, %p3131_p6 }
  0x17   :  { %p3134_p9 = pnand %p3133_p8, %p3127_p5 }
  0x19   :  { %3137 = shalt.err (!%p3134_p9)
}
  0x1a   :  { %s3273_s19 = smov 128   ;;  %s3274_s20 = smov 8  }
  0x1b   :  { %64 = dma.hbm_to_vmem [thread:$0]  %s3884_s3, 2048, %s59_s15, [#allocation10], %s3273_s19, %s3273_s19, %s3274_s20  }
  0x1c   :  { %s3146_s1 = scalar_lea.vmem %s27_s17, 1024  ;;  %p3151_p11 = scmp.lt.s32.totalorder %s27_s17, %s27_s17 }
  0x1d   :  { %p3147_p10 = scmp.ne.s32.totalorder %s27_s17, %s3146_s1  ;;  %p3152_p12 = scmp.lt.s32.totalorder %s3146_s1, %s3146_s1 }
  0x1f   :  { %p3153_p13 = por %p3152_p12, %p3151_p11 }
  0x21   :  { %p3154_p0 = pnand %p3153_p13, %p3147_p10 }
  0x23   :  { %3157 = shalt.err (!%p3154_p0)
}
  0x24   :  { %32 = dma.hbm_to_vmem [thread:$0]  %s3881_s0, 1024, %s27_s17, [#allocation4], %s3273_s19, %s3273_s19, %s3274_s20  }
  0x25   :  { %s3275_s25 = smov [#allocation8]   ;;  %s3276_s27 = smov [#allocation11]  }
  0x26   :  { %s49_s26 = sshll.u32 %s3275_s25, 4  ;;  %s70_s3 = sshll.u32 %s3276_s27, 4  ;;  %s50_s26 = int_to_ptr.vmem [resolvable:$true] %s49_s26  ;;  %s71_s3 = int_to_ptr.vmem [resolvable:$true] %s70_s3 }
  0x27   :  { %s3166_s28 = scalar_lea.vmem %s50_s26, 128  ;;  %p3171_p2 = scmp.lt.s32.totalorder %s50_s26, %s50_s26 }
  0x28   :  { %p3167_p1 = scmp.ne.s32.totalorder %s50_s26, %s3166_s28  ;;  %p3172_p3 = scmp.lt.s32.totalorder %s3166_s28, %s3166_s28 }
  0x2a   :  { %p3173_p4 = por %p3172_p3, %p3171_p2 }
  0x2c   :  { %p3174_p5 = pnand %p3173_p4, %p3167_p1 }
  0x2e   :  { %3177 = shalt.err (!%p3174_p5)
}
  0x2f   :  { %52 = dma.hbm_to_vmem [thread:$0]  %s3883_s2, 128, %s50_s26, [#allocation7]  }
  0x30   :  { %s3186_s10 = scalar_lea.vmem %s71_s3, 2048  ;;  %p3191_p7 = scmp.lt.s32.totalorder %s71_s3, %s71_s3 }
  0x31   :  { %p3187_p6 = scmp.ne.s32.totalorder %s71_s3, %s3186_s10  ;;  %p3192_p8 = scmp.lt.s32.totalorder %s3186_s10, %s3186_s10 }
  0x33   :  { %p3193_p9 = por %p3192_p8, %p3191_p7 }
  0x35   :  { %p3194_p10 = pnand %p3193_p9, %p3187_p6 }
  0x37   :  { %3197 = shalt.err (!%p3194_p10)
}
  0x38   :  { %76 = dma.hbm_to_vmem [thread:$0]  %s3885_s4, 2048, %s71_s3, [#allocation10], %s3273_s19, %s3273_s19, %s3274_s20  }
  0x39   :  { %s3277_s12 = smov [#allocation12]  }
  0x3a   :  { %s84_s13 = sshll.u32 %s3277_s12, 4  ;;  %s85_s13 = int_to_ptr.vmem [resolvable:$true] %s84_s13 }
  0x3b   :  { %s3206_s14 = scalar_lea.vmem %s85_s13, 2048  ;;  %p3211_p12 = scmp.lt.s32.totalorder %s85_s13, %s85_s13 }
  0x3c   :  { %p3207_p11 = scmp.ne.s32.totalorder %s85_s13, %s3206_s14  ;;  %p3212_p13 = scmp.lt.s32.totalorder %s3206_s14, %s3206_s14 }
  0x3e   :  { %p3213_p0 = por %p3212_p13, %p3211_p12 }
  0x40   :  { %p3214_p1 = pnand %p3213_p0, %p3207_p11 }
  0x42   :  { %3217 = shalt.err (!%p3214_p1)
}
  0x43   :  { %90 = dma.hbm_to_vmem [thread:$0]  %s3887_s6, 2048, %s85_s13, [#allocation13], %s3273_s19, %s3273_s19, %s3274_s20  }
  0x44   :  { %3258 = dma.done.wait [#allocation4], 1024  }
  0x45   :  { %3259 = vsyncadd [#allocation4], 4294966272 }
  0x46   :  { %3260 = dma.done.wait [#allocation7], 256  }
  0x47   :  { %3261 = vsyncadd [#allocation7], 4294967040 }
  0x48   :  { %3262 = dma.done.wait [#allocation10], 4096  }
  0x49   :  { %3263 = vsyncadd [#allocation10], 4294963200 }
  0x4a   :  { %3264 = dma.done.wait [#allocation13], 2048  }
  0x4b   :  { %3265 = vsyncadd [#allocation13], 4294965248  ;;  %v3278_v0 = vmov 0.0   ;;  %vm3279_vm0 = vmmov 0   ;;  %v3366_v1 = vld [vmem:[#allocation9 + $0x78] sm:$0xff]  ;;  %v3368_v2 = vld [vmem:[#allocation9 + $0x70] sm:$0xff] }
  0x4c   :  { %2557 = vmatprep.subr.mxu1 %v3278_v0  ;;  %2589 = vmatprep.mubr.msk.f32.mxu1 %vm3279_vm0, %v3278_v0  ;;  %v125_v3 = vld [vmem:[#allocation8] sm:$0xff]  ;;  %vm126_vm1 = vcmask 64512   ;;  %v3372_v4 = vld [vmem:[#allocation9 + $0x68] sm:$0xff]  ;;  %v117_v5 = vld [vmem:[#allocation3] sm:$0xff]  ;;  %vm409_vm2 = vcmask 1041409   ;;  %vm412_vm3 = vcmask 1042434  }
  0x4d   :  { %2558 = vmatpush3.msra.mxu1 %v3366_v1  ;;  %2543 = vmatprep.subr.mxu0 %v125_v3  ;;  %v118_v6 = vld [vmem:[#allocation3 + $0x8] sm:$0xff]  ;;  %v119_v7 = vld [vmem:[#allocation3 + $0x10] sm:$0xff]  ;;  %v120_v10 = vld [vmem:[#allocation3 + $0x18] sm:$0xff]  ;;  %vm415_vm4 = vcmask 1043459   ;;  %vm418_vm5 = vcmask 1044484   ;;  %vm421_vm6 = vcmask 1045509  }
  0x4e   :  { %2559 = vmatprep.subr.mxu1 %v3278_v0  ;;  %2544 = vmatpush3.msra.mxu0 %v125_v3  ;;  %v3376_v8 = vld [vmem:[#allocation9 + $0x60] sm:$0xff]  ;;  %v3382_v9 = vld [vmem:[#allocation9 + $0x58] sm:$0xff]  ;;  %v121_v11 = vld [vmem:[#allocation3 + $0x20] sm:$0xff]  ;;  %v3280_v3 = vmov 1966171168   ;;  %vm424_vm7 = vcmask 1046534  }
  0x4f   :  { %2560 = vmatpush3.msra.mxu1 %v3368_v2  ;;  %2545 = vmatprep.mubr.msk.f32.mxu0 %vm126_vm1, %v117_v5  ;;  %v3388_v12 = vld [vmem:[#allocation9 + $0x50] sm:$0xff]  ;;  %v3394_v13 = vld [vmem:[#allocation9 + $0x48] sm:$0xff]  ;;  %v122_v14 = vld [vmem:[#allocation3 + $0x28] sm:$0xff]  ;;  %v434_v5 = vunpack.c.l.s4 %v3280_v3  ;;  %vm427_vm8 = vcmask 1047559  }
  0x50   :  { %2561 = vmatprep.subr.mxu1 %v3278_v0  ;;  %2546 = vmatmul.mubr.msk.f32.vlgmr.msra.gmra.mxu0 %vm126_vm1, %v118_v6  ;;  %v123_v15 = vld [vmem:[#allocation3 + $0x30] sm:$0xff]  ;;  %v3406_v17 = vld [vmem:[#allocation9 + $0x38] sm:$0xff]  ;;  %v124_v18 = vld [vmem:[#allocation3 + $0x38] sm:$0xff] }
  0x51   :  { %2562 = vmatpush3.msra.mxu1 %v3372_v4  ;;  %2548 = vmatprep.mubr.msk.f32.mxu0 %vm126_vm1, %v119_v7  ;;  %v3400_v16 = vld [vmem:[#allocation9 + $0x40] sm:$0xff]  ;;  %v3412_v19 = vld [vmem:[#allocation9 + $0x30] sm:$0xff]  ;;  %v3418_v20 = vld [vmem:[#allocation9 + $0x28] sm:$0xff] }
  0x52   :  { %2563 = vmatprep.subr.mxu1 %v3278_v0  ;;  %2592 = vmatprep.subr.mxu0 %v3278_v0  ;;  %v3424_v21 = vld [vmem:[#allocation9 + $0x20] sm:$0xff]  ;;  %v3430_v22 = vld [vmem:[#allocation9 + $0x18] sm:$0xff]  ;;  %v3436_v23 = vld [vmem:[#allocation9 + $0x10] sm:$0xff] }
  0x53   :  { %2564 = vmatpush3.msra.mxu1 %v3376_v8  ;;  %2593 = vmatpush3.msra.mxu0 %v3366_v1  ;;  %v3442_v24 = vld [vmem:[#allocation9 + $0x8] sm:$0xff]  ;;  %v3448_v25 = vld [vmem:[#allocation9] sm:$0xff]  ;;  %v3452_v26 = vld [vmem:[#allocation6] sm:$0xff] }
  0x54   :  { %2565 = vmatprep.subr.mxu1 %v3278_v0  ;;  %2549 = vmatmul.mubr.msk.f32.gmra.mxu0 %vm126_vm1, %v120_v10  ;;  %v436_v10 = vlaneseq }
  0x55   :  { %2566 = vmatpush3.msra.mxu1 %v3382_v9  ;;  %2551 = vmatprep.mubr.msk.f32.mxu0 %vm126_vm1, %v121_v11 }
  0x56   :  { %2567 = vmatprep.subr.mxu1 %v3278_v0  ;;  %2594 = vmatprep.subr.mxu0 %v3278_v0 }
  0x57   :  { %2568 = vmatpush3.msra.mxu1 %v3388_v12  ;;  %2595 = vmatpush3.msra.mxu0 %v3368_v2 }
  0x58   :  { %2569 = vmatprep.subr.mxu1 %v3278_v0  ;;  %2552 = vmatmul.mubr.msk.f32.gmra.mxu0 %vm126_vm1, %v122_v14 }
  0x59   :  { %2570 = vmatpush3.msra.mxu1 %v3394_v13  ;;  %2554 = vmatprep.mubr.msk.f32.mxu0 %vm126_vm1, %v123_v15 }
  0x5a   :  { %2571 = vmatprep.subr.mxu1 %v3278_v0  ;;  %2596 = vmatprep.subr.mxu0 %v3278_v0 }
  0x5b   :  { %2572 = vmatpush3.msra.mxu1 %v3400_v16  ;;  %2597 = vmatpush3.msra.mxu0 %v3372_v4 }
  0x5c   :  { %2573 = vmatprep.subr.mxu1 %v3278_v0  ;;  %2555 = vmatmul.mubr.msk.f32.gmra.mxu0 %vm126_vm1, %v124_v18 }
  0x5d   :  { %2574 = vmatpush3.msra.mxu1 %v3406_v17  ;;  %2598 = vmatprep.subr.mxu0 %v3278_v0 }
  0x5e   :  { %2575 = vmatprep.subr.mxu1 %v3278_v0  ;;  %2599 = vmatpush3.msra.mxu0 %v3376_v8 }
  0x5f   :  { %2576 = vmatpush3.msra.mxu1 %v3412_v19  ;;  %2600 = vmatprep.subr.mxu0 %v3278_v0 }
  0x60   :  { %2577 = vmatprep.subr.mxu1 %v3278_v0  ;;  %2601 = vmatpush3.msra.mxu0 %v3382_v9 }
  0x61   :  { %2578 = vmatpush3.msra.mxu1 %v3418_v20  ;;  %2602 = vmatprep.subr.mxu0 %v3278_v0 }
  0x62   :  { %2579 = vmatprep.subr.mxu1 %v3278_v0  ;;  %2603 = vmatpush3.msra.mxu0 %v3388_v12 }
  0x63   :  { %2580 = vmatpush3.msra.mxu1 %v3424_v21  ;;  %2604 = vmatprep.subr.mxu0 %v3278_v0 }
  0x64   :  { %2581 = vmatprep.subr.mxu1 %v3278_v0  ;;  %2605 = vmatpush3.msra.mxu0 %v3394_v13 }
  0x65   :  { %2582 = vmatpush3.msra.mxu1 %v3430_v22  ;;  %2606 = vmatprep.subr.mxu0 %v3278_v0 }
  0x66   :  { %2583 = vmatprep.subr.mxu1 %v3278_v0  ;;  %2607 = vmatpush3.msra.mxu0 %v3400_v16 }
  0x67   :  { %2584 = vmatpush3.msra.mxu1 %v3436_v23  ;;  %2608 = vmatprep.subr.mxu0 %v3278_v0 }
  0x68   :  { %2585 = vmatprep.subr.mxu1 %v3278_v0  ;;  %2609 = vmatpush3.msra.mxu0 %v3406_v17 }
  0x69   :  { %2586 = vmatpush3.msra.mxu1 %v3442_v24  ;;  %2610 = vmatprep.subr.mxu0 %v3278_v0 }
  0x6a   :  { %2587 = vmatprep.subr.mxu1 %v3278_v0  ;;  %2611 = vmatpush3.msra.mxu0 %v3412_v19 }
  0x6b   :  { %2588 = vmatpush3.msra.mxu1 %v3448_v25  ;;  %2612 = vmatprep.subr.mxu0 %v3278_v0 }
  0x6c   :  { %2590 = vmatmul.mubr.f32.vlgmr.msra.gmra.mxu1 %v3452_v26  ;;  %2613 = vmatpush3.msra.mxu0 %v3418_v20 }
  0x6d   :  { %2624 = vmatprep.mubr.msk.f32.mxu0 %vm3279_vm0, %v3278_v0  ;;  %2614 = vmatprep.subr.mxu0 %v3278_v0 }
  0x6e   :  { %2627 = vmatprep.subr.mxu1 %v3278_v0  ;;  %2615 = vmatpush3.msra.mxu0 %v3424_v21 }
  0x6f   :  { %2628 = vmatpush3.msra.mxu1 %v3366_v1  ;;  %2616 = vmatprep.subr.mxu0 %v3278_v0 }
  0x70   :  { %2629 = vmatprep.subr.mxu1 %v3278_v0  ;;  %2617 = vmatpush3.msra.mxu0 %v3430_v22 }
  0x71   :  { %2630 = vmatpush3.msra.mxu1 %v3368_v2  ;;  %2618 = vmatprep.subr.mxu0 %v3278_v0 }
  0x72   :  { %2631 = vmatprep.subr.mxu1 %v3278_v0  ;;  %2619 = vmatpush3.msra.mxu0 %v3436_v23 }
  0x73   :  { %2632 = vmatpush3.msra.mxu1 %v3372_v4  ;;  %2620 = vmatprep.subr.mxu0 %v3278_v0 }
  0x74   :  { %2633 = vmatprep.subr.mxu1 %v3278_v0  ;;  %2621 = vmatpush3.msra.mxu0 %v3442_v24 }
  0x75   :  { %2634 = vmatpush3.msra.mxu1 %v3376_v8  ;;  %2622 = vmatprep.subr.mxu0 %v3278_v0 }
  0x76   :  { %2635 = vmatprep.subr.mxu1 %v3278_v0  ;;  %2623 = vmatpush3.msra.mxu0 %v3448_v25 }
  0x77   :  { %2636 = vmatpush3.msra.mxu1 %v3382_v9  ;;  %2659 = vmatprep.mubr.msk.f32.mxu1 %vm3279_vm0, %v3278_v0 }
  0x78   :  { %2637 = vmatprep.subr.mxu1 %v3278_v0  ;;  %2662 = vmatprep.subr.mxu0 %v3278_v0 }
  0x79   :  { %2638 = vmatpush3.msra.mxu1 %v3388_v12 }
  0x7a   :  { %2639 = vmatprep.subr.mxu1 %v3278_v0 }
  0x7b   :  { %2640 = vmatpush3.msra.mxu1 %v3394_v13 }
  0x7c   :  { %2641 = vmatprep.subr.mxu1 %v3278_v0 }
  0x7d   :  { %2642 = vmatpush3.msra.mxu1 %v3400_v16 }
  0x7e   :  { %2643 = vmatprep.subr.mxu1 %v3278_v0 }
  0x7f   :  { %2644 = vmatpush3.msra.mxu1 %v3406_v17 }
  0x80   :  { %2645 = vmatprep.subr.mxu1 %v3278_v0 }
  0x81   :  { %2646 = vmatpush3.msra.mxu1 %v3412_v19 }
  0x82   :  { %2647 = vmatprep.subr.mxu1 %v3278_v0 }
  0x83   :  { %2648 = vmatpush3.msra.mxu1 %v3418_v20 }
  0x84   :  { %2649 = vmatprep.subr.mxu1 %v3278_v0 }
  0x85   :  { %2650 = vmatpush3.msra.mxu1 %v3424_v21 }
  0x86   :  { %2651 = vmatprep.subr.mxu1 %v3278_v0 }
  0x87   :  { %2652 = vmatpush3.msra.mxu1 %v3430_v22 }
  0x88   :  { %2653 = vmatprep.subr.mxu1 %v3278_v0 }
  0x89   :  { %2654 = vmatpush3.msra.mxu1 %v3436_v23 }
  0x8a   :  { %2655 = vmatprep.subr.mxu1 %v3278_v0 }
  0x8b   :  { %2656 = vmatpush3.msra.mxu1 %v3442_v24 }
  0x8c   :  { %2657 = vmatprep.subr.mxu1 %v3278_v0 }
  0x8d   :  { %2658 = vmatpush3.msra.mxu1 %v3448_v25 }
  0x8e   :  { %2697 = vmatprep.subr.mxu1 %v3278_v0 }
 0x110   :  { %v2547_v27 = vpop.f32.mrf.mxu0 }
 0x111   :  { %257 = vst [vmem:[#allocation2 + $0x8] sm:$0xff] %v2547_v27 }
 0x112   :  { %v217_v28 = vpop.f32.mrf.mxu0 }
 0x113   :  { %256 = vst [vmem:[#allocation2] sm:$0xff] %v217_v28 }
 0x114   :  { %v2550_v29 = vpop.f32.mrf.mxu0 }
 0x115   :  { %259 = vst [vmem:[#allocation2 + $0x18] sm:$0xff] %v2550_v29 }
 0x116   :  { %v227_v30 = vpop.f32.mrf.mxu0 }
 0x117   :  { %258 = vst [vmem:[#allocation2 + $0x10] sm:$0xff] %v227_v30 }
 0x118   :  { %v2553_v31 = vpop.f32.mrf.mxu0  ;;  %v282_v36 = vld [vmem:[#allocation2 + $0x8] sm:$0x1]  ;;  %v498_v3 = vld [vmem:[#allocation2 + $0x9] sm:$0x1] }
 0x119   :  { %261 = vst [vmem:[#allocation2 + $0x28] sm:$0xff] %v2553_v31 }
 0x11a   :  { %v237_v32 = vpop.f32.mrf.mxu0  ;;  %v281_v35 = vld [vmem:[#allocation2] sm:$0x1] }
 0x11b   :  { %260 = vst [vmem:[#allocation2 + $0x20] sm:$0xff] %v237_v32 }
 0x11c   :  { %v2556_v33 = vpop.f32.mrf.mxu0  ;;  %v284_v37 = vld [vmem:[#allocation2 + $0x18] sm:$0x1] }
 0x11d   :  { %263 = vst [vmem:[#allocation2 + $0x38] sm:$0xff] %v2556_v33 }
 0x11e   :  { %v247_v34 = vpop.f32.mrf.mxu0  ;;  %v283_v44 = vld [vmem:[#allocation2 + $0x10] sm:$0x1] }
 0x11f   :  { %262 = vst [vmem:[#allocation2 + $0x30] sm:$0xff] %v247_v34  ;;  %v435_v34 = vunpack.c.0.s8 %v434_v5 }
 0x120   :  { %v286_v45 = vld [vmem:[#allocation2 + $0x28] sm:$0x1] }
 0x122   :  { %v285_v39 = vld [vmem:[#allocation2 + $0x20] sm:$0x1] }
 0x124   :  { %v288_v55 = vld [vmem:[#allocation2 + $0x38] sm:$0x1] }
 0x126   :  { %v287_v50 = vld [vmem:[#allocation2 + $0x30] sm:$0x1] }
 0x12c   :  { %v355_v38 = vpop.f32.mrf.mxu1 }
 0x12d   :  { %v360_v40 = vrot.slane %v355_v38, 1  ;;  %v361_v41 = vrot.slane %v355_v38, 2  ;;  %v362_v42 = vrot.slane %v355_v38, 3  ;;  %v363_v43 = vrot.slane %v355_v38, 4 }
 0x12e   :  { %v364_v46 = vrot.slane %v355_v38, 5  ;;  %v365_v47 = vrot.slane %v355_v38, 6  ;;  %v375_v48 = vadd.f32 %v355_v38, %v281_v35  ;;  %v2591_v49 = vpop.f32.mrf.mxu1  ;;  %v366_v51 = vrot.slane %v355_v38, 7 }
 0x12f   :  { %v376_v52 = vadd.f32 %v360_v40, %v282_v36  ;;  %v377_v53 = vadd.f32 %v361_v41, %v283_v44  ;;  %v378_v54 = vadd.f32 %v362_v42, %v284_v37  ;;  %v379_v56 = vadd.f32 %v363_v43, %v285_v39 }
 0x130   :  { %2938 = vtanh.f32 %v375_v48  ;;  %v380_v57 = vadd.f32 %v364_v46, %v286_v45  ;;  %v381_v58 = vadd.f32 %v365_v47, %v287_v50  ;;  %v382_v59 = vadd.f32 %v366_v51, %v288_v55 }
 0x131   :  { %2940 = vtanh.f32 %v376_v52  ;;  %v437_v39 = vshrl.u32 %v436_v10, 7  ;;  %v383_v43 = vmul.f32 0.5, %v3452_v26 }
 0x132   :  { %2942 = vtanh.f32 %v377_v53 }
 0x133   :  { %2944 = vtanh.f32 %v378_v54  ;;  %v3517_v49 = vsub.s32 %v435_v34, %v437_v39  ;;  %v503_v39 = vld [vmem:[#allocation2 + $0x31] sm:$0x1] }
 0x134   :  { %2946 = vtanh.f32 %v379_v56 }
 0x135   :  { %2948 = vtanh.f32 %v380_v57 }
 0x136   :  { %2950 = vtanh.f32 %v381_v58 }
 0x137   :  { %2952 = vtanh.f32 %v382_v59 }
 0x13d   :  { %v2939_v60 = vpop.eup %2938 }
 0x13e   :  { %v2941_v61 = vpop.eup %2940  ;;  %v392_v14 = vmul.f32 0.5, %v2939_v60 }
 0x13f   :  { %v2943_v62 = vpop.eup %2942  ;;  %v393_v63 = vmul.f32 0.5, %v2941_v61 }
 0x140   :  { %v2945_v6 = vpop.eup %2944  ;;  %v394_v7 = vmul.f32 0.5, %v2943_v62 }
 0x141   :  { %v2947_v11 = vpop.eup %2946  ;;  %v395_v15 = vmul.f32 0.5, %v2945_v6  ;;  %v408_v18 = vrot.slane %v393_v63, 7  ;;  %v497_v6 = vld [vmem:[#allocation2 + $0x1] sm:$0x1] }
 0x142   :  { %v2949_v27 = vpop.eup %2948  ;;  %v411_v28 = vrot.slane %v394_v7, 6  ;;  %v396_v29 = vmul.f32 0.5, %v2947_v11 }
 0x143   :  { %v2951_v30 = vpop.eup %2950  ;;  %v414_v31 = vrot.slane %v395_v15, 5  ;;  %v397_v32 = vmul.f32 0.5, %v2949_v27  ;;  %v410_v33 = vsel %vm409_vm2, %v408_v18, %v392_v14  ;;  %v499_v15 = vld [vmem:[#allocation2 + $0x11] sm:$0x1]  ;;  %v500_v18 = vld [vmem:[#allocation2 + $0x19] sm:$0x1] }
 0x144   :  { %v2953_v35 = vpop.eup %2952  ;;  %v398_v36 = vmul.f32 0.5, %v2951_v30  ;;  %v413_v37 = vsel %vm412_vm3, %v411_v28, %v410_v33  ;;  %v417_v38 = vrot.slane %v396_v29, 4 }
 0x145   :  { %v399_v40 = vmul.f32 0.5, %v2953_v35  ;;  %v416_v41 = vsel %vm415_vm4, %v414_v31, %v413_v37  ;;  %v420_v42 = vrot.slane %v397_v32, 3  ;;  %v501_v31 = vld [vmem:[#allocation2 + $0x21] sm:$0x1] }
 0x146   :  { %v419_v44 = vsel %vm418_vm5, %v417_v38, %v416_v41  ;;  %v423_v45 = vrot.slane %v398_v36, 2  ;;  %v502_v36 = vld [vmem:[#allocation2 + $0x29] sm:$0x1] }
 0x147   :  { %v422_v46 = vsel %vm421_vm6, %v420_v42, %v419_v44  ;;  %v426_v47 = vrot.slane %v399_v40, 1  ;;  %v504_v40 = vld [vmem:[#allocation2 + $0x39] sm:$0x1] }
 0x148   :  { %v425_v48 = vsel %vm424_vm7, %v423_v45, %v422_v46 }
 0x149   :  { %v428_v50 = vsel %vm427_vm8, %v426_v47, %v425_v48 }
 0x14a   :  { %v3520_v51 = vadd.f32 %v428_v50, %v383_v43 }
 0x14c   :  { %v432_v52 = vcombine.high %v3520_v51, %v3520_v51  ;;  %v439_v26 = vrot.slane %v3520_v51, %v3517_v49  ;;  %2625 = vmatmul.mubr.f32.vlgmr.msra.gmra.mxu0 %v3520_v51 }
 0x14d   :  { %2663 = vmatpush3.msra.mxu0 %v3366_v1  ;;  %2694 = vmatprep.mubr.msk.f32.mxu0 %vm3279_vm0, %v3278_v0 }
 0x14e   :  { %v446_v53 = vrot.slane %v432_v52, %v3517_v49  ;;  %v447_v54 = vcombine.high %v439_v26, %v439_v26  ;;  %v455_v55 = vrot.slane %v439_v26, %v3517_v49  ;;  %2316 = vst.sshfl [vmem:[#allocation2] sm:$0x1 pattern:$0x73625140] %v439_v26  ;;  %2664 = vmatprep.subr.mxu0 %v3278_v0 }
 0x14f   :  { %2665 = vmatpush3.msra.mxu0 %v3368_v2 }
 0x150   :  { %v448_v56 = vcombine.high %v446_v53, %v446_v53  ;;  %v462_v57 = vrot.slane %v446_v53, %v3517_v49  ;;  %v469_v58 = vrot.slane %v447_v54, %v3517_v49  ;;  %v477_v59 = vcombine.high %v455_v55, %v455_v55  ;;  %2317 = vst.sshfl [vmem:[#allocation2 + $0x8] sm:$0x1 pattern:$0x73625140] %v447_v54 }
 0x151   :  { %2318 = vst.sshfl [vmem:[#allocation2 + $0x20] sm:$0x1 pattern:$0x73625140] %v446_v53  ;;  %2666 = vmatprep.subr.mxu0 %v3278_v0 }
 0x152   :  { %2667 = vmatpush3.msra.mxu0 %v3372_v4  ;;  %v476_v60 = vrot.slane %v448_v56, %v3517_v49  ;;  %v478_v61 = vcombine.high %v462_v57, %v462_v57  ;;  %v479_v62 = vcombine.high %v469_v58, %v469_v58  ;;  %491 = vst [vmem:[#allocation2 + $0x10] sm:$0x1] %v477_v59  ;;  %2319 = vst.sshfl [vmem:[#allocation2 + $0x28] sm:$0x1 pattern:$0x73625140] %v448_v56 }
 0x153   :  { %2668 = vmatprep.subr.mxu0 %v3278_v0 }
 0x154   :  { %2669 = vmatpush3.msra.mxu0 %v3376_v8  ;;  %v480_v63 = vcombine.high %v476_v60, %v476_v60  ;;  %492 = vst [vmem:[#allocation2 + $0x18] sm:$0x1] %v479_v62  ;;  %495 = vst [vmem:[#allocation2 + $0x30] sm:$0x1] %v478_v61 }
 0x155   :  { %2670 = vmatprep.subr.mxu0 %v3278_v0 }
 0x156   :  { %2671 = vmatpush3.msra.mxu0 %v3382_v9  ;;  %496 = vst [vmem:[#allocation2 + $0x38] sm:$0x1] %v480_v63 }
 0x157   :  { %2672 = vmatprep.subr.mxu0 %v3278_v0 }
 0x158   :  { %2673 = vmatpush3.msra.mxu0 %v3388_v12 }
 0x159   :  { %2674 = vmatprep.subr.mxu0 %v3278_v0 }
 0x15a   :  { %2675 = vmatpush3.msra.mxu0 %v3394_v13 }
 0x15b   :  { %2676 = vmatprep.subr.mxu0 %v3278_v0 }
 0x15c   :  { %2677 = vmatpush3.msra.mxu0 %v3400_v16 }
 0x15d   :  { %2678 = vmatprep.subr.mxu0 %v3278_v0 }
 0x15e   :  { %2679 = vmatpush3.msra.mxu0 %v3406_v17 }
 0x15f   :  { %2680 = vmatprep.subr.mxu0 %v3278_v0 }
 0x160   :  { %2681 = vmatpush3.msra.mxu0 %v3412_v19 }
 0x161   :  { %2682 = vmatprep.subr.mxu0 %v3278_v0 }
 0x162   :  { %2683 = vmatpush3.msra.mxu0 %v3418_v20 }
 0x163   :  { %2684 = vmatprep.subr.mxu0 %v3278_v0 }
 0x164   :  { %2685 = vmatpush3.msra.mxu0 %v3424_v21 }
 0x165   :  { %2686 = vmatprep.subr.mxu0 %v3278_v0 }
 0x166   :  { %2687 = vmatpush3.msra.mxu0 %v3430_v22 }
 0x167   :  { %2688 = vmatprep.subr.mxu0 %v3278_v0 }
 0x168   :  { %2689 = vmatpush3.msra.mxu0 %v3436_v23 }
 0x169   :  { %2690 = vmatprep.subr.mxu0 %v3278_v0 }
 0x16a   :  { %2691 = vmatpush3.msra.mxu0 %v3442_v24 }
 0x16b   :  { %2692 = vmatprep.subr.mxu0 %v3278_v0 }
 0x16c   :  { %2693 = vmatpush3.msra.mxu0 %v3448_v25 }
 0x16d   :  { %2732 = vmatprep.subr.mxu0 %v3278_v0 }
 0x20c   :  { %v571_v5 = vpop.f32.mrf.mxu0 }
 0x20d   :  { %v576_v7 = vrot.slane %v571_v5, 1  ;;  %v577_v10 = vrot.slane %v571_v5, 2  ;;  %v578_v11 = vrot.slane %v571_v5, 3  ;;  %v579_v14 = vrot.slane %v571_v5, 4 }
 0x20e   :  { %v580_v27 = vrot.slane %v571_v5, 5  ;;  %v581_v28 = vrot.slane %v571_v5, 6  ;;  %v591_v29 = vadd.f32 %v571_v5, %v497_v6  ;;  %v2626_v30 = vpop.f32.mrf.mxu0  ;;  %v582_v35 = vrot.slane %v571_v5, 7 }
 0x20f   :  { %v592_v32 = vadd.f32 %v576_v7, %v498_v3  ;;  %v593_v33 = vadd.f32 %v577_v10, %v499_v15  ;;  %v594_v34 = vadd.f32 %v578_v11, %v500_v18  ;;  %v595_v37 = vadd.f32 %v579_v14, %v501_v31 }
 0x210   :  { %2954 = vtanh.f32 %v591_v29  ;;  %v596_v38 = vadd.f32 %v580_v27, %v502_v36  ;;  %v597_v41 = vadd.f32 %v581_v28, %v503_v39  ;;  %v598_v42 = vadd.f32 %v582_v35, %v504_v40 }
 0x211   :  { %2956 = vtanh.f32 %v592_v32  ;;  %v599_v18 = vmul.f32 0.5, %v3520_v51 }
 0x212   :  { %2958 = vtanh.f32 %v593_v33 }
 0x213   :  { %2960 = vtanh.f32 %v594_v34 }
 0x214   :  { %2962 = vtanh.f32 %v595_v37 }
 0x215   :  { %2964 = vtanh.f32 %v596_v38 }
 0x216   :  { %2966 = vtanh.f32 %v597_v41 }
 0x217   :  { %2968 = vtanh.f32 %v598_v42  ;;  %v707_v42 = vld [vmem:[#allocation2 + $0xa] sm:$0x1] }
 0x21d   :  { %v2955_v43 = vpop.eup %2954 }
 0x21e   :  { %v2957_v44 = vpop.eup %2956  ;;  %v608_v52 = vmul.f32 0.5, %v2955_v43 }
 0x21f   :  { %v2959_v45 = vpop.eup %2958  ;;  %v609_v46 = vmul.f32 0.5, %v2957_v44  ;;  %v706_v44 = vld [vmem:[#allocation2 + $0x2] sm:$0x1] }
 0x220   :  { %v2961_v47 = vpop.eup %2960  ;;  %v610_v48 = vmul.f32 0.5, %v2959_v45 }
 0x221   :  { %v2963_v50 = vpop.eup %2962  ;;  %v624_v26 = vrot.slane %v609_v46, 7  ;;  %v611_v53 = vmul.f32 0.5, %v2961_v47 }
 0x222   :  { %v2965_v54 = vpop.eup %2964  ;;  %v612_v55 = vmul.f32 0.5, %v2963_v50  ;;  %v626_v56 = vrot.slane %v610_v48, 6  ;;  %v708_v50 = vld [vmem:[#allocation2 + $0x12] sm:$0x1] }
 0x223   :  { %v2967_v57 = vpop.eup %2966  ;;  %v613_v58 = vmul.f32 0.5, %v2965_v54  ;;  %v625_v59 = vsel %vm409_vm2, %v624_v26, %v608_v52  ;;  %v628_v60 = vrot.slane %v611_v53, 5  ;;  %v709_v52 = vld [vmem:[#allocation2 + $0x1a] sm:$0x1] }
 0x224   :  { %v2969_v61 = vpop.eup %2968  ;;  %v614_v62 = vmul.f32 0.5, %v2967_v57  ;;  %v627_v63 = vsel %vm412_vm3, %v626_v56, %v625_v59  ;;  %v630_v3 = vrot.slane %v612_v55, 4  ;;  %v710_v56 = vld [vmem:[#allocation2 + $0x22] sm:$0x1] }
 0x225   :  { %v615_v5 = vmul.f32 0.5, %v2969_v61  ;;  %v629_v6 = vsel %vm415_vm4, %v628_v60, %v627_v63  ;;  %v632_v7 = vrot.slane %v613_v58, 3  ;;  %v711_v61 = vld [vmem:[#allocation2 + $0x2a] sm:$0x1] }
 0x226   :  { %v631_v10 = vsel %vm418_vm5, %v630_v3, %v629_v6  ;;  %v634_v11 = vrot.slane %v614_v62, 2  ;;  %v712_v3 = vld [vmem:[#allocation2 + $0x32] sm:$0x1] }
 0x227   :  { %v633_v14 = vsel %vm421_vm6, %v632_v7, %v631_v10  ;;  %v636_v15 = vrot.slane %v615_v5, 1  ;;  %v713_v5 = vld [vmem:[#allocation2 + $0x3a] sm:$0x1] }
 0x228   :  { %v635_v27 = vsel %vm424_vm7, %v634_v11, %v633_v14 }
 0x229   :  { %v637_v28 = vsel %vm427_vm8, %v636_v15, %v635_v27 }
 0x22a   :  { %v3574_v29 = vadd.f32 %v637_v28, %v599_v18 }
 0x22c   :  { %v641_v30 = vcombine.high %v3574_v29, %v3574_v29  ;;  %v648_v31 = vrot.slane %v3574_v29, %v3517_v49  ;;  %2660 = vmatmul.mubr.f32.vlgmr.msra.gmra.mxu1 %v3574_v29 }
 0x22d   :  { %2698 = vmatpush3.msra.mxu1 %v3366_v1  ;;  %2729 = vmatprep.mubr.msk.f32.mxu1 %vm3279_vm0, %v3278_v0 }
 0x22e   :  { %v655_v51 = vrot.slane %v641_v30, %v3517_v49  ;;  %v656_v32 = vcombine.high %v648_v31, %v648_v31  ;;  %v664_v33 = vrot.slane %v648_v31, %v3517_v49  ;;  %2320 = vst.sshfl [vmem:[#allocation2 + $0x1] sm:$0x1 pattern:$0x73625140] %v648_v31  ;;  %2699 = vmatprep.subr.mxu1 %v3278_v0 }
 0x22f   :  { %2700 = vmatpush3.msra.mxu1 %v3368_v2 }
 0x230   :  { %v657_v34 = vcombine.high %v655_v51, %v655_v51  ;;  %v671_v35 = vrot.slane %v655_v51, %v3517_v49  ;;  %v678_v36 = vrot.slane %v656_v32, %v3517_v49  ;;  %v686_v37 = vcombine.high %v664_v33, %v664_v33  ;;  %2321 = vst.sshfl [vmem:[#allocation2 + $0x9] sm:$0x1 pattern:$0x73625140] %v656_v32 }
 0x231   :  { %2322 = vst.sshfl [vmem:[#allocation2 + $0x21] sm:$0x1 pattern:$0x73625140] %v655_v51  ;;  %2701 = vmatprep.subr.mxu1 %v3278_v0 }
 0x232   :  { %2702 = vmatpush3.msra.mxu1 %v3372_v4  ;;  %v685_v38 = vrot.slane %v657_v34, %v3517_v49  ;;  %v687_v39 = vcombine.high %v671_v35, %v671_v35  ;;  %v688_v40 = vcombine.high %v678_v36, %v678_v36  ;;  %700 = vst [vmem:[#allocation2 + $0x11] sm:$0x1] %v686_v37  ;;  %2323 = vst.sshfl [vmem:[#allocation2 + $0x29] sm:$0x1 pattern:$0x73625140] %v657_v34 }
 0x233   :  { %2703 = vmatprep.subr.mxu1 %v3278_v0 }
 0x234   :  { %2704 = vmatpush3.msra.mxu1 %v3376_v8  ;;  %v689_v41 = vcombine.high %v685_v38, %v685_v38  ;;  %701 = vst [vmem:[#allocation2 + $0x19] sm:$0x1] %v688_v40  ;;  %704 = vst [vmem:[#allocation2 + $0x31] sm:$0x1] %v687_v39 }
 0x235   :  { %2705 = vmatprep.subr.mxu1 %v3278_v0 }
 0x236   :  { %2706 = vmatpush3.msra.mxu1 %v3382_v9  ;;  %705 = vst [vmem:[#allocation2 + $0x39] sm:$0x1] %v689_v41 }
 0x237   :  { %2707 = vmatprep.subr.mxu1 %v3278_v0 }
 0x238   :  { %2708 = vmatpush3.msra.mxu1 %v3388_v12 }
 0x239   :  { %2709 = vmatprep.subr.mxu1 %v3278_v0 }
 0x23a   :  { %2710 = vmatpush3.msra.mxu1 %v3394_v13 }
 0x23b   :  { %2711 = vmatprep.subr.mxu1 %v3278_v0 }
 0x23c   :  { %2712 = vmatpush3.msra.mxu1 %v3400_v16 }
 0x23d   :  { %2713 = vmatprep.subr.mxu1 %v3278_v0 }
 0x23e   :  { %2714 = vmatpush3.msra.mxu1 %v3406_v17 }
 0x23f   :  { %2715 = vmatprep.subr.mxu1 %v3278_v0 }
 0x240   :  { %2716 = vmatpush3.msra.mxu1 %v3412_v19 }
 0x241   :  { %2717 = vmatprep.subr.mxu1 %v3278_v0 }
 0x242   :  { %2718 = vmatpush3.msra.mxu1 %v3418_v20 }
 0x243   :  { %2719 = vmatprep.subr.mxu1 %v3278_v0 }
 0x244   :  { %2720 = vmatpush3.msra.mxu1 %v3424_v21 }
 0x245   :  { %2721 = vmatprep.subr.mxu1 %v3278_v0 }
 0x246   :  { %2722 = vmatpush3.msra.mxu1 %v3430_v22 }
 0x247   :  { %2723 = vmatprep.subr.mxu1 %v3278_v0 }
 0x248   :  { %2724 = vmatpush3.msra.mxu1 %v3436_v23 }
 0x249   :  { %2725 = vmatprep.subr.mxu1 %v3278_v0 }
 0x24a   :  { %2726 = vmatpush3.msra.mxu1 %v3442_v24 }
 0x24b   :  { %2727 = vmatprep.subr.mxu1 %v3278_v0 }
 0x24c   :  { %2728 = vmatpush3.msra.mxu1 %v3448_v25 }
 0x24d   :  { %2767 = vmatprep.subr.mxu1 %v3278_v0 }
 0x2ec   :  { %v780_v43 = vpop.f32.mrf.mxu1 }
 0x2ed   :  { %v785_v45 = vrot.slane %v780_v43, 1  ;;  %v786_v46 = vrot.slane %v780_v43, 2  ;;  %v787_v47 = vrot.slane %v780_v43, 3  ;;  %v788_v48 = vrot.slane %v780_v43, 4 }
 0x2ee   :  { %v789_v26 = vrot.slane %v780_v43, 5  ;;  %v790_v53 = vrot.slane %v780_v43, 6  ;;  %v800_v54 = vadd.f32 %v780_v43, %v706_v44  ;;  %v2661_v55 = vpop.f32.mrf.mxu1  ;;  %v791_v60 = vrot.slane %v780_v43, 7 }
 0x2ef   :  { %v801_v57 = vadd.f32 %v785_v45, %v707_v42  ;;  %v802_v58 = vadd.f32 %v786_v46, %v708_v50  ;;  %v803_v59 = vadd.f32 %v787_v47, %v709_v52  ;;  %v804_v62 = vadd.f32 %v788_v48, %v710_v56 }
 0x2f0   :  { %2970 = vtanh.f32 %v800_v54  ;;  %v805_v63 = vadd.f32 %v789_v26, %v711_v61  ;;  %v806_v6 = vadd.f32 %v790_v53, %v712_v3  ;;  %v807_v7 = vadd.f32 %v791_v60, %v713_v5 }
 0x2f1   :  { %2972 = vtanh.f32 %v801_v57  ;;  %v808_v52 = vmul.f32 0.5, %v3574_v29 }
 0x2f2   :  { %2974 = vtanh.f32 %v802_v58 }
 0x2f3   :  { %2976 = vtanh.f32 %v803_v59 }
 0x2f4   :  { %2978 = vtanh.f32 %v804_v62 }
 0x2f5   :  { %2980 = vtanh.f32 %v805_v63 }
 0x2f6   :  { %2982 = vtanh.f32 %v806_v6 }
 0x2f7   :  { %2984 = vtanh.f32 %v807_v7 }
 0x2fd   :  { %v2971_v10 = vpop.eup %2970 }
 0x2fe   :  { %v2973_v11 = vpop.eup %2972  ;;  %v817_v30 = vmul.f32 0.5, %v2971_v10 }
 0x2ff   :  { %v2975_v14 = vpop.eup %2974  ;;  %v818_v15 = vmul.f32 0.5, %v2973_v11  ;;  %v920_v11 = vld [vmem:[#allocation2 + $0x2b] sm:$0x1] }
 0x300   :  { %v2977_v18 = vpop.eup %2976  ;;  %v819_v27 = vmul.f32 0.5, %v2975_v14 }
 0x301   :  { %v2979_v28 = vpop.eup %2978  ;;  %v833_v31 = vrot.slane %v818_v15, 7  ;;  %v820_v51 = vmul.f32 0.5, %v2977_v18  ;;  %v921_v18 = vld [vmem:[#allocation2 + $0x33] sm:$0x1] }
 0x302   :  { %v2981_v32 = vpop.eup %2980  ;;  %v821_v33 = vmul.f32 0.5, %v2979_v28  ;;  %v835_v34 = vrot.slane %v819_v27, 6  ;;  %v922_v27 = vld [vmem:[#allocation2 + $0x3b] sm:$0x1] }
 0x303   :  { %v2983_v35 = vpop.eup %2982  ;;  %v822_v36 = vmul.f32 0.5, %v2981_v32  ;;  %v834_v37 = vsel %vm409_vm2, %v833_v31, %v817_v30  ;;  %v837_v38 = vrot.slane %v820_v51, 5 }
 0x304   :  { %v2985_v39 = vpop.eup %2984  ;;  %v823_v40 = vmul.f32 0.5, %v2983_v35  ;;  %v836_v41 = vsel %vm412_vm3, %v835_v34, %v834_v37  ;;  %v839_v42 = vrot.slane %v821_v33, 4 }
 0x305   :  { %v824_v43 = vmul.f32 0.5, %v2985_v39  ;;  %v838_v44 = vsel %vm415_vm4, %v837_v38, %v836_v41  ;;  %v841_v45 = vrot.slane %v822_v36, 3 }
 0x306   :  { %v840_v46 = vsel %vm418_vm5, %v839_v42, %v838_v44  ;;  %v843_v47 = vrot.slane %v823_v40, 2 }
 0x307   :  { %v842_v48 = vsel %vm421_vm6, %v841_v45, %v840_v46  ;;  %v845_v50 = vrot.slane %v824_v43, 1 }
 0x308   :  { %v844_v26 = vsel %vm424_vm7, %v843_v47, %v842_v48 }
 0x309   :  { %v846_v53 = vsel %vm427_vm8, %v845_v50, %v844_v26 }
 0x30a   :  { %v3628_v54 = vadd.f32 %v846_v53, %v808_v52 }
 0x30c   :  { %v850_v55 = vcombine.high %v3628_v54, %v3628_v54  ;;  %v857_v56 = vrot.slane %v3628_v54, %v3517_v49  ;;  %2695 = vmatmul.mubr.f32.vlgmr.msra.gmra.mxu0 %v3628_v54 }
 0x30d   :  { %2733 = vmatpush3.msra.mxu0 %v3366_v1  ;;  %2764 = vmatprep.mubr.msk.f32.mxu0 %vm3279_vm0, %v3278_v0 }
 0x30e   :  { %v864_v29 = vrot.slane %v850_v55, %v3517_v49  ;;  %v865_v57 = vcombine.high %v857_v56, %v857_v56  ;;  %v873_v58 = vrot.slane %v857_v56, %v3517_v49  ;;  %2324 = vst.sshfl [vmem:[#allocation2 + $0x2] sm:$0x1 pattern:$0x73625140] %v857_v56  ;;  %2734 = vmatprep.subr.mxu0 %v3278_v0 }
 0x30f   :  { %2735 = vmatpush3.msra.mxu0 %v3368_v2 }
 0x310   :  { %v866_v59 = vcombine.high %v864_v29, %v864_v29  ;;  %v880_v60 = vrot.slane %v864_v29, %v3517_v49  ;;  %v887_v61 = vrot.slane %v865_v57, %v3517_v49  ;;  %v895_v62 = vcombine.high %v873_v58, %v873_v58  ;;  %2325 = vst.sshfl [vmem:[#allocation2 + $0xa] sm:$0x1 pattern:$0x73625140] %v865_v57 }
 0x311   :  { %2326 = vst.sshfl [vmem:[#allocation2 + $0x22] sm:$0x1 pattern:$0x73625140] %v864_v29  ;;  %2736 = vmatprep.subr.mxu0 %v3278_v0 }
 0x312   :  { %2737 = vmatpush3.msra.mxu0 %v3372_v4  ;;  %v894_v1 = vrot.slane %v866_v59, %v3517_v49  ;;  %v896_v63 = vcombine.high %v880_v60, %v880_v60  ;;  %v897_v3 = vcombine.high %v887_v61, %v887_v61  ;;  %909 = vst [vmem:[#allocation2 + $0x12] sm:$0x1] %v895_v62  ;;  %2327 = vst.sshfl [vmem:[#allocation2 + $0x2a] sm:$0x1 pattern:$0x73625140] %v866_v59 }
 0x313   :  { %2738 = vmatprep.subr.mxu0 %v3278_v0  ;;  %v916_v4 = vld [vmem:[#allocation2 + $0xb] sm:$0x1]  ;;  %v1017_v59 = vmul.f32 0.5, %v3628_v54 }
 0x314   :  { %2739 = vmatpush3.msra.mxu0 %v3376_v8  ;;  %v898_v2 = vcombine.high %v894_v1, %v894_v1  ;;  %910 = vst [vmem:[#allocation2 + $0x1a] sm:$0x1] %v897_v3  ;;  %913 = vst [vmem:[#allocation2 + $0x32] sm:$0x1] %v896_v63  ;;  %v3689_v3 = vld [vmem:[#allocation9 + $0x78] sm:$0xff] }
 0x315   :  { %2740 = vmatprep.subr.mxu0 %v3278_v0 }
 0x316   :  { %2741 = vmatpush3.msra.mxu0 %v3382_v9  ;;  %914 = vst [vmem:[#allocation2 + $0x3a] sm:$0x1] %v898_v2  ;;  %v915_v9 = vld [vmem:[#allocation2 + $0x3] sm:$0x1] }
 0x317   :  { %2742 = vmatprep.subr.mxu0 %v3278_v0 }
 0x318   :  { %2743 = vmatpush3.msra.mxu0 %v3388_v12 }
 0x319   :  { %2744 = vmatprep.subr.mxu0 %v3278_v0 }
 0x31a   :  { %2745 = vmatpush3.msra.mxu0 %v3394_v13 }
 0x31b   :  { %2746 = vmatprep.subr.mxu0 %v3278_v0 }
 0x31c   :  { %2747 = vmatpush3.msra.mxu0 %v3400_v16 }
 0x31d   :  { %2748 = vmatprep.subr.mxu0 %v3278_v0 }
 0x31e   :  { %2749 = vmatpush3.msra.mxu0 %v3406_v17 }
 0x31f   :  { %2750 = vmatprep.subr.mxu0 %v3278_v0 }
 0x320   :  { %2751 = vmatpush3.msra.mxu0 %v3412_v19  ;;  %v917_v19 = vld [vmem:[#allocation2 + $0x13] sm:$0x1] }
 0x321   :  { %2752 = vmatprep.subr.mxu0 %v3278_v0 }
 0x322   :  { %2753 = vmatpush3.msra.mxu0 %v3418_v20  ;;  %v918_v20 = vld [vmem:[#allocation2 + $0x1b] sm:$0x1] }
 0x323   :  { %2754 = vmatprep.subr.mxu0 %v3278_v0 }
 0x324   :  { %2755 = vmatpush3.msra.mxu0 %v3424_v21 }
 0x325   :  { %2756 = vmatprep.subr.mxu0 %v3278_v0 }
 0x326   :  { %2757 = vmatpush3.msra.mxu0 %v3430_v22 }
 0x327   :  { %2758 = vmatprep.subr.mxu0 %v3278_v0 }
 0x328   :  { %2759 = vmatpush3.msra.mxu0 %v3436_v23 }
 0x329   :  { %2760 = vmatprep.subr.mxu0 %v3278_v0 }
 0x32a   :  { %2761 = vmatpush3.msra.mxu0 %v3442_v24  ;;  %v919_v24 = vld [vmem:[#allocation2 + $0x23] sm:$0x1] }
 0x32b   :  { %2762 = vmatprep.subr.mxu0 %v3278_v0 }
 0x32c   :  { %2763 = vmatpush3.msra.mxu0 %v3448_v25 }
 0x32d   :  { %2802 = vmatprep.subr.mxu0 %v3278_v0 }
 0x3cc   :  { %v989_v8 = vpop.f32.mrf.mxu0 }
 0x3cd   :  { %v994_v12 = vrot.slane %v989_v8, 1  ;;  %v995_v13 = vrot.slane %v989_v8, 2  ;;  %v996_v16 = vrot.slane %v989_v8, 3  ;;  %v997_v17 = vrot.slane %v989_v8, 4 }
 0x3ce   :  { %v998_v21 = vrot.slane %v989_v8, 5  ;;  %v999_v22 = vrot.slane %v989_v8, 6  ;;  %v1009_v23 = vadd.f32 %v989_v8, %v915_v9  ;;  %v2696_v5 = vpop.f32.mrf.mxu0  ;;  %v1000_v25 = vrot.slane %v989_v8, 7  ;;  %v3697_v8 = vld [vmem:[#allocation9 + $0x70] sm:$0xff] }
 0x3cf   :  { %v1010_v6 = vadd.f32 %v994_v12, %v916_v4  ;;  %v1011_v7 = vadd.f32 %v995_v13, %v917_v19  ;;  %v1012_v10 = vadd.f32 %v996_v16, %v918_v20  ;;  %v1013_v14 = vadd.f32 %v997_v17, %v919_v24  ;;  %v3703_v17 = vld [vmem:[#allocation9 + $0x68] sm:$0xff]  ;;  %v3712_v5 = vld [vmem:[#allocation9 + $0x58] sm:$0xff]  ;;  %v3716_v24 = vld [vmem:[#allocation9 + $0x50] sm:$0xff] }
 0x3d0   :  { %2986 = vtanh.f32 %v1009_v23  ;;  %v1014_v15 = vadd.f32 %v998_v21, %v920_v11  ;;  %v1015_v28 = vadd.f32 %v999_v22, %v921_v18  ;;  %v1016_v30 = vadd.f32 %v1000_v25, %v922_v27  ;;  %v3708_v22 = vld [vmem:[#allocation9 + $0x60] sm:$0xff]  ;;  %v3732_v25 = vld [vmem:[#allocation9 + $0x30] sm:$0xff]  ;;  %v3736_v11 = vld [vmem:[#allocation9 + $0x28] sm:$0xff] }
 0x3d1   :  { %2988 = vtanh.f32 %v1010_v6  ;;  %v3720_v6 = vld [vmem:[#allocation9 + $0x48] sm:$0xff]  ;;  %v3748_v18 = vld [vmem:[#allocation9 + $0x10] sm:$0xff] }
 0x3d2   :  { %2990 = vtanh.f32 %v1011_v7  ;;  %v3724_v7 = vld [vmem:[#allocation9 + $0x40] sm:$0xff]  ;;  %v3752_v27 = vld [vmem:[#allocation9 + $0x8] sm:$0xff] }
 0x3d3   :  { %2992 = vtanh.f32 %v1012_v10  ;;  %v3728_v10 = vld [vmem:[#allocation9 + $0x38] sm:$0xff] }
 0x3d4   :  { %2994 = vtanh.f32 %v1013_v14  ;;  %v3740_v14 = vld [vmem:[#allocation9 + $0x20] sm:$0xff] }
 0x3d5   :  { %2996 = vtanh.f32 %v1014_v15  ;;  %v3744_v15 = vld [vmem:[#allocation9 + $0x18] sm:$0xff] }
 0x3d6   :  { %2998 = vtanh.f32 %v1015_v28  ;;  %v3756_v28 = vld [vmem:[#allocation9] sm:$0xff] }
 0x3d7   :  { %3000 = vtanh.f32 %v1016_v30  ;;  %v1125_v30 = vld [vmem:[#allocation2 + $0xc] sm:$0x1] }
 0x3dd   :  { %v2987_v31 = vpop.eup %2986 }
 0x3de   :  { %v2989_v51 = vpop.eup %2988  ;;  %v1026_v37 = vmul.f32 0.5, %v2987_v31 }
 0x3df   :  { %v2991_v32 = vpop.eup %2990  ;;  %v1027_v33 = vmul.f32 0.5, %v2989_v51  ;;  %v1124_v51 = vld [vmem:[#allocation2 + $0x4] sm:$0x1] }
 0x3e0   :  { %v2993_v34 = vpop.eup %2992  ;;  %v1028_v35 = vmul.f32 0.5, %v2991_v32 }
 0x3e1   :  { %v2995_v36 = vpop.eup %2994  ;;  %v1042_v38 = vrot.slane %v1027_v33, 7  ;;  %v1029_v39 = vmul.f32 0.5, %v2993_v34 }
 0x3e2   :  { %v2997_v40 = vpop.eup %2996  ;;  %v1030_v41 = vmul.f32 0.5, %v2995_v36  ;;  %v1044_v42 = vrot.slane %v1028_v35, 6  ;;  %v1126_v36 = vld [vmem:[#allocation2 + $0x14] sm:$0x1] }
 0x3e3   :  { %v2999_v43 = vpop.eup %2998  ;;  %v1031_v44 = vmul.f32 0.5, %v2997_v40  ;;  %v1043_v45 = vsel %vm409_vm2, %v1042_v38, %v1026_v37  ;;  %v1046_v46 = vrot.slane %v1029_v39, 5  ;;  %v1127_v37 = vld [vmem:[#allocation2 + $0x1c] sm:$0x1] }
 0x3e4   :  { %v3001_v47 = vpop.eup %3000  ;;  %v1032_v48 = vmul.f32 0.5, %v2999_v43  ;;  %v1045_v50 = vsel %vm412_vm3, %v1044_v42, %v1043_v45  ;;  %v1048_v52 = vrot.slane %v1030_v41, 4  ;;  %v1128_v42 = vld [vmem:[#allocation2 + $0x24] sm:$0x1] }
 0x3e5   :  { %v1033_v26 = vmul.f32 0.5, %v3001_v47  ;;  %v1047_v53 = vsel %vm415_vm4, %v1046_v46, %v1045_v50  ;;  %v1050_v55 = vrot.slane %v1031_v44, 3  ;;  %v1129_v47 = vld [vmem:[#allocation2 + $0x2c] sm:$0x1] }
 0x3e6   :  { %v1049_v56 = vsel %vm418_vm5, %v1048_v52, %v1047_v53  ;;  %v1052_v29 = vrot.slane %v1032_v48, 2  ;;  %v1130_v52 = vld [vmem:[#allocation2 + $0x34] sm:$0x1] }
 0x3e7   :  { %v1051_v57 = vsel %vm421_vm6, %v1050_v55, %v1049_v56  ;;  %v1054_v58 = vrot.slane %v1033_v26, 1  ;;  %v1131_v26 = vld [vmem:[#allocation2 + $0x3c] sm:$0x1] }
 0x3e8   :  { %v1053_v60 = vsel %vm424_vm7, %v1052_v29, %v1051_v57 }
 0x3e9   :  { %v1055_v61 = vsel %vm427_vm8, %v1054_v58, %v1053_v60 }
 0x3ea   :  { %v3682_v62 = vadd.f32 %v1055_v61, %v1017_v59 }
 0x3ec   :  { %v1059_v1 = vcombine.high %v3682_v62, %v3682_v62  ;;  %v1066_v63 = vrot.slane %v3682_v62, %v3517_v49  ;;  %2730 = vmatmul.mubr.f32.vlgmr.msra.gmra.mxu1 %v3682_v62 }
 0x3ed   :  { %2768 = vmatpush3.msra.mxu1 %v3689_v3  ;;  %2799 = vmatprep.mubr.msk.f32.mxu1 %vm3279_vm0, %v3278_v0 }
 0x3ee   :  { %v1073_v54 = vrot.slane %v1059_v1, %v3517_v49  ;;  %v1074_v2 = vcombine.high %v1066_v63, %v1066_v63  ;;  %v1082_v4 = vrot.slane %v1066_v63, %v3517_v49  ;;  %2328 = vst.sshfl [vmem:[#allocation2 + $0x3] sm:$0x1 pattern:$0x73625140] %v1066_v63  ;;  %2769 = vmatprep.subr.mxu1 %v3278_v0 }
 0x3ef   :  { %2770 = vmatpush3.msra.mxu1 %v3697_v8 }
 0x3f0   :  { %v1075_v9 = vcombine.high %v1073_v54, %v1073_v54  ;;  %v1089_v12 = vrot.slane %v1073_v54, %v3517_v49  ;;  %v1096_v13 = vrot.slane %v1074_v2, %v3517_v49  ;;  %v1104_v16 = vcombine.high %v1082_v4, %v1082_v4  ;;  %2329 = vst.sshfl [vmem:[#allocation2 + $0xb] sm:$0x1 pattern:$0x73625140] %v1074_v2 }
 0x3f1   :  { %2330 = vst.sshfl [vmem:[#allocation2 + $0x23] sm:$0x1 pattern:$0x73625140] %v1073_v54  ;;  %2771 = vmatprep.subr.mxu1 %v3278_v0 }
 0x3f2   :  { %2772 = vmatpush3.msra.mxu1 %v3703_v17  ;;  %v1103_v19 = vrot.slane %v1075_v9, %v3517_v49  ;;  %v1105_v20 = vcombine.high %v1089_v12, %v1089_v12  ;;  %v1106_v21 = vcombine.high %v1096_v13, %v1096_v13  ;;  %1118 = vst [vmem:[#allocation2 + $0x13] sm:$0x1] %v1104_v16  ;;  %2331 = vst.sshfl [vmem:[#allocation2 + $0x2b] sm:$0x1 pattern:$0x73625140] %v1075_v9 }
 0x3f3   :  { %2773 = vmatprep.subr.mxu1 %v3278_v0 }
 0x3f4   :  { %2774 = vmatpush3.msra.mxu1 %v3708_v22  ;;  %v1107_v23 = vcombine.high %v1103_v19, %v1103_v19  ;;  %1119 = vst [vmem:[#allocation2 + $0x1b] sm:$0x1] %v1106_v21  ;;  %1122 = vst [vmem:[#allocation2 + $0x33] sm:$0x1] %v1105_v20 }
 0x3f5   :  { %2775 = vmatprep.subr.mxu1 %v3278_v0 }
 0x3f6   :  { %2776 = vmatpush3.msra.mxu1 %v3712_v5  ;;  %1123 = vst [vmem:[#allocation2 + $0x3b] sm:$0x1] %v1107_v23 }
 0x3f7   :  { %2777 = vmatprep.subr.mxu1 %v3278_v0 }
 0x3f8   :  { %2778 = vmatpush3.msra.mxu1 %v3716_v24 }
 0x3f9   :  { %2779 = vmatprep.subr.mxu1 %v3278_v0 }
 0x3fa   :  { %2780 = vmatpush3.msra.mxu1 %v3720_v6 }
 0x3fb   :  { %2781 = vmatprep.subr.mxu1 %v3278_v0 }
 0x3fc   :  { %2782 = vmatpush3.msra.mxu1 %v3724_v7 }
 0x3fd   :  { %2783 = vmatprep.subr.mxu1 %v3278_v0 }
 0x3fe   :  { %2784 = vmatpush3.msra.mxu1 %v3728_v10 }
 0x3ff   :  { %2785 = vmatprep.subr.mxu1 %v3278_v0 }
 0x400   :  { %2786 = vmatpush3.msra.mxu1 %v3732_v25 }
 0x401   :  { %2787 = vmatprep.subr.mxu1 %v3278_v0 }
 0x402   :  { %2788 = vmatpush3.msra.mxu1 %v3736_v11 }
 0x403   :  { %2789 = vmatprep.subr.mxu1 %v3278_v0 }
 0x404   :  { %2790 = vmatpush3.msra.mxu1 %v3740_v14 }
 0x405   :  { %2791 = vmatprep.subr.mxu1 %v3278_v0 }
 0x406   :  { %2792 = vmatpush3.msra.mxu1 %v3744_v15 }
 0x407   :  { %2793 = vmatprep.subr.mxu1 %v3278_v0 }
 0x408   :  { %2794 = vmatpush3.msra.mxu1 %v3748_v18 }
 0x409   :  { %2795 = vmatprep.subr.mxu1 %v3278_v0 }
 0x40a   :  { %2796 = vmatpush3.msra.mxu1 %v3752_v27 }
 0x40b   :  { %2797 = vmatprep.subr.mxu1 %v3278_v0 }
 0x40c   :  { %2798 = vmatpush3.msra.mxu1 %v3756_v28 }
 0x4ac   :  { %v1198_v31 = vpop.f32.mrf.mxu1 }
 0x4ad   :  { %v1203_v32 = vrot.slane %v1198_v31, 1  ;;  %v1204_v33 = vrot.slane %v1198_v31, 2  ;;  %v1205_v34 = vrot.slane %v1198_v31, 3  ;;  %v1206_v35 = vrot.slane %v1198_v31, 4 }
 0x4ae   :  { %v1207_v38 = vrot.slane %v1198_v31, 5  ;;  %v1208_v39 = vrot.slane %v1198_v31, 6  ;;  %v1218_v40 = vadd.f32 %v1198_v31, %v1124_v51  ;;  %v2731_v41 = vpop.f32.mrf.mxu1  ;;  %v1209_v46 = vrot.slane %v1198_v31, 7 }
 0x4af   :  { %v1219_v43 = vadd.f32 %v1203_v32, %v1125_v30  ;;  %v1220_v44 = vadd.f32 %v1204_v33, %v1126_v36  ;;  %v1221_v45 = vadd.f32 %v1205_v34, %v1127_v37  ;;  %v1222_v48 = vadd.f32 %v1206_v35, %v1128_v42 }
 0x4b0   :  { %3002 = vtanh.f32 %v1218_v40  ;;  %v1223_v50 = vadd.f32 %v1207_v38, %v1129_v47  ;;  %v1224_v53 = vadd.f32 %v1208_v39, %v1130_v52  ;;  %v1225_v55 = vadd.f32 %v1209_v46, %v1131_v26 }
 0x4b1   :  { %3004 = vtanh.f32 %v1219_v43  ;;  %v1226_v37 = vmul.f32 0.5, %v3682_v62 }
 0x4b2   :  { %3006 = vtanh.f32 %v1220_v44 }
 0x4b3   :  { %3008 = vtanh.f32 %v1221_v45 }
 0x4b4   :  { %3010 = vtanh.f32 %v1222_v48 }
 0x4b5   :  { %3012 = vtanh.f32 %v1223_v50 }
 0x4b6   :  { %3014 = vtanh.f32 %v1224_v53  ;;  %v1337_v53 = vld [vmem:[#allocation2 + $0x25] sm:$0x1] }
 0x4b7   :  { %3016 = vtanh.f32 %v1225_v55 }
 0x4bd   :  { %v3003_v56 = vpop.eup %3002 }
 0x4be   :  { %v3005_v29 = vpop.eup %3004  ;;  %v1235_v1 = vmul.f32 0.5, %v3003_v56 }
 0x4bf   :  { %v3007_v57 = vpop.eup %3006  ;;  %v1236_v58 = vmul.f32 0.5, %v3005_v29  ;;  %v1338_v29 = vld [vmem:[#allocation2 + $0x2d] sm:$0x1] }
 0x4c0   :  { %v3009_v59 = vpop.eup %3008  ;;  %v1237_v60 = vmul.f32 0.5, %v3007_v57 }
 0x4c1   :  { %v3011_v61 = vpop.eup %3010  ;;  %v1251_v63 = vrot.slane %v1236_v58, 7  ;;  %v1238_v54 = vmul.f32 0.5, %v3009_v59  ;;  %v1339_v58 = vld [vmem:[#allocation2 + $0x35] sm:$0x1]  ;;  %v1340_v59 = vld [vmem:[#allocation2 + $0x3d] sm:$0x1] }
 0x4c2   :  { %v3013_v2 = vpop.eup %3012  ;;  %v1239_v4 = vmul.f32 0.5, %v3011_v61  ;;  %v1253_v9 = vrot.slane %v1237_v60, 6 }
 0x4c3   :  { %v3015_v12 = vpop.eup %3014  ;;  %v1240_v13 = vmul.f32 0.5, %v3013_v2  ;;  %v1252_v16 = vsel %vm409_vm2, %v1251_v63, %v1235_v1  ;;  %v1255_v19 = vrot.slane %v1238_v54, 5 }
 0x4c4   :  { %v3017_v20 = vpop.eup %3016  ;;  %v1241_v21 = vmul.f32 0.5, %v3015_v12  ;;  %v1254_v23 = vsel %vm412_vm3, %v1253_v9, %v1252_v16  ;;  %v1257_v30 = vrot.slane %v1239_v4, 4 }
 0x4c5   :  { %v1242_v31 = vmul.f32 0.5, %v3017_v20  ;;  %v1256_v51 = vsel %vm415_vm4, %v1255_v19, %v1254_v23  ;;  %v1259_v32 = vrot.slane %v1240_v13, 3 }
 0x4c6   :  { %v1258_v33 = vsel %vm418_vm5, %v1257_v30, %v1256_v51  ;;  %v1261_v34 = vrot.slane %v1241_v21, 2 }
 0x4c7   :  { %v1260_v35 = vsel %vm421_vm6, %v1259_v32, %v1258_v33  ;;  %v1263_v36 = vrot.slane %v1242_v31, 1 }
 0x4c8   :  { %v1262_v38 = vsel %vm424_vm7, %v1261_v34, %v1260_v35 }
 0x4c9   :  { %v1264_v39 = vsel %vm427_vm8, %v1263_v36, %v1262_v38 }
 0x4ca   :  { %v3767_v40 = vadd.f32 %v1264_v39, %v1226_v37 }
 0x4cc   :  { %v1268_v41 = vcombine.high %v3767_v40, %v3767_v40  ;;  %v1275_v42 = vrot.slane %v3767_v40, %v3517_v49  ;;  %2765 = vmatmul.mubr.f32.vlgmr.msra.gmra.mxu0 %v3767_v40 }
 0x4cd   :  { %2803 = vmatpush3.msra.mxu0 %v3689_v3  ;;  %2834 = vmatprep.mubr.msk.f32.mxu0 %vm3279_vm0, %v3278_v0 }
 0x4ce   :  { %v1282_v62 = vrot.slane %v1268_v41, %v3517_v49  ;;  %v1283_v43 = vcombine.high %v1275_v42, %v1275_v42  ;;  %v1291_v44 = vrot.slane %v1275_v42, %v3517_v49  ;;  %2332 = vst.sshfl [vmem:[#allocation2 + $0x4] sm:$0x1 pattern:$0x73625140] %v1275_v42  ;;  %2804 = vmatprep.subr.mxu0 %v3278_v0 }
 0x4cf   :  { %2805 = vmatpush3.msra.mxu0 %v3697_v8 }
 0x4d0   :  { %v1284_v45 = vcombine.high %v1282_v62, %v1282_v62  ;;  %v1298_v46 = vrot.slane %v1282_v62, %v3517_v49  ;;  %v1305_v47 = vrot.slane %v1283_v43, %v3517_v49  ;;  %v1313_v48 = vcombine.high %v1291_v44, %v1291_v44  ;;  %2333 = vst.sshfl [vmem:[#allocation2 + $0xc] sm:$0x1 pattern:$0x73625140] %v1283_v43 }
 0x4d1   :  { %2334 = vst.sshfl [vmem:[#allocation2 + $0x24] sm:$0x1 pattern:$0x73625140] %v1282_v62  ;;  %2806 = vmatprep.subr.mxu0 %v3278_v0  ;;  %v1435_v44 = vmul.f32 0.5, %v3767_v40 }
 0x4d2   :  { %2807 = vmatpush3.msra.mxu0 %v3703_v17  ;;  %v1312_v3 = vrot.slane %v1284_v45, %v3517_v49  ;;  %v1314_v50 = vcombine.high %v1298_v46, %v1298_v46  ;;  %v1315_v52 = vcombine.high %v1305_v47, %v1305_v47  ;;  %1327 = vst [vmem:[#allocation2 + $0x14] sm:$0x1] %v1313_v48  ;;  %2335 = vst.sshfl [vmem:[#allocation2 + $0x2c] sm:$0x1 pattern:$0x73625140] %v1284_v45 }
 0x4d3   :  { %2808 = vmatprep.subr.mxu0 %v3278_v0  ;;  %v1334_v17 = vld [vmem:[#allocation2 + $0xd] sm:$0x1] }
 0x4d4   :  { %2809 = vmatpush3.msra.mxu0 %v3708_v22  ;;  %v1316_v8 = vcombine.high %v1312_v3, %v1312_v3  ;;  %1328 = vst [vmem:[#allocation2 + $0x1c] sm:$0x1] %v1315_v52  ;;  %1331 = vst [vmem:[#allocation2 + $0x34] sm:$0x1] %v1314_v50 }
 0x4d5   :  { %2810 = vmatprep.subr.mxu0 %v3278_v0 }
 0x4d6   :  { %2811 = vmatpush3.msra.mxu0 %v3712_v5  ;;  %1332 = vst [vmem:[#allocation2 + $0x3c] sm:$0x1] %v1316_v8  ;;  %v1333_v5 = vld [vmem:[#allocation2 + $0x5] sm:$0x1] }
 0x4d7   :  { %2812 = vmatprep.subr.mxu0 %v3278_v0 }
 0x4d8   :  { %2813 = vmatpush3.msra.mxu0 %v3716_v24 }
 0x4d9   :  { %2814 = vmatprep.subr.mxu0 %v3278_v0 }
 0x4da   :  { %2815 = vmatpush3.msra.mxu0 %v3720_v6 }
 0x4db   :  { %2816 = vmatprep.subr.mxu0 %v3278_v0 }
 0x4dc   :  { %2817 = vmatpush3.msra.mxu0 %v3724_v7 }
 0x4dd   :  { %2818 = vmatprep.subr.mxu0 %v3278_v0 }
 0x4de   :  { %2819 = vmatpush3.msra.mxu0 %v3728_v10 }
 0x4df   :  { %2820 = vmatprep.subr.mxu0 %v3278_v0 }
 0x4e0   :  { %2821 = vmatpush3.msra.mxu0 %v3732_v25  ;;  %v1335_v25 = vld [vmem:[#allocation2 + $0x15] sm:$0x1] }
 0x4e1   :  { %2822 = vmatprep.subr.mxu0 %v3278_v0 }
 0x4e2   :  { %2823 = vmatpush3.msra.mxu0 %v3736_v11  ;;  %v1336_v11 = vld [vmem:[#allocation2 + $0x1d] sm:$0x1] }
 0x4e3   :  { %2824 = vmatprep.subr.mxu0 %v3278_v0 }
 0x4e4   :  { %2825 = vmatpush3.msra.mxu0 %v3740_v14 }
 0x4e5   :  { %2826 = vmatprep.subr.mxu0 %v3278_v0 }
 0x4e6   :  { %2827 = vmatpush3.msra.mxu0 %v3744_v15 }
 0x4e7   :  { %2828 = vmatprep.subr.mxu0 %v3278_v0 }
 0x4e8   :  { %2829 = vmatpush3.msra.mxu0 %v3748_v18 }
 0x4e9   :  { %2830 = vmatprep.subr.mxu0 %v3278_v0 }
 0x4ea   :  { %2831 = vmatpush3.msra.mxu0 %v3752_v27 }
 0x4eb   :  { %2832 = vmatprep.subr.mxu0 %v3278_v0 }
 0x4ec   :  { %2833 = vmatpush3.msra.mxu0 %v3756_v28 }
 0x58c   :  { %v1407_v22 = vpop.f32.mrf.mxu0 }
 0x58d   :  { %v1412_v24 = vrot.slane %v1407_v22, 1  ;;  %v1413_v6 = vrot.slane %v1407_v22, 2  ;;  %v1414_v7 = vrot.slane %v1407_v22, 3  ;;  %v1415_v10 = vrot.slane %v1407_v22, 4 }
 0x58e   :  { %v1416_v14 = vrot.slane %v1407_v22, 5  ;;  %v1417_v15 = vrot.slane %v1407_v22, 6  ;;  %v1427_v18 = vadd.f32 %v1407_v22, %v1333_v5  ;;  %v2766_v26 = vpop.f32.mrf.mxu0  ;;  %v1418_v0 = vrot.slane %v1407_v22, 7 }
 0x58f   :  { %v1428_v55 = vadd.f32 %v1412_v24, %v1334_v17  ;;  %v1429_v27 = vadd.f32 %v1413_v6, %v1335_v25  ;;  %v1430_v56 = vadd.f32 %v1414_v7, %v1336_v11  ;;  %v1431_v28 = vadd.f32 %v1415_v10, %v1337_v53  ;;  %v1542_v25 = vld [vmem:[#allocation2 + $0x6] sm:$0x1] }
 0x590   :  { %3018 = vtanh.f32 %v1427_v18  ;;  %v1432_v57 = vadd.f32 %v1416_v14, %v1338_v29  ;;  %v1433_v60 = vadd.f32 %v1417_v15, %v1339_v58  ;;  %v1434_v61 = vadd.f32 %v1418_v0, %v1340_v59  ;;  %v1543_v14 = vld [vmem:[#allocation2 + $0xe] sm:$0x1] }
 0x591   :  { %3020 = vtanh.f32 %v1428_v55  ;;  %v1544_v55 = vld [vmem:[#allocation2 + $0x16] sm:$0x1] }
 0x592   :  { %3022 = vtanh.f32 %v1429_v27  ;;  %v1545_v27 = vld [vmem:[#allocation2 + $0x1e] sm:$0x1] }
 0x593   :  { %3024 = vtanh.f32 %v1430_v56 }
 0x594   :  { %3026 = vtanh.f32 %v1431_v28 }
 0x595   :  { %3028 = vtanh.f32 %v1432_v57  ;;  %v1546_v57 = vld [vmem:[#allocation2 + $0x26] sm:$0x1] }
 0x596   :  { %3030 = vtanh.f32 %v1433_v60 }
 0x597   :  { %3032 = vtanh.f32 %v1434_v61 }
 0x59d   :  { %v3019_v1 = vpop.eup %3018 }
 0x59e   :  { %v3021_v63 = vpop.eup %3020  ;;  %v1444_v13 = vmul.f32 0.5, %v3019_v1  ;;  %v1547_v1 = vld [vmem:[#allocation2 + $0x2e] sm:$0x1] }
 0x59f   :  { %v3023_v54 = vpop.eup %3022  ;;  %v1445_v2 = vmul.f32 0.5, %v3021_v63 }
 0x5a0   :  { %v3025_v4 = vpop.eup %3024  ;;  %v1446_v9 = vmul.f32 0.5, %v3023_v54 }
 0x5a1   :  { %v3027_v12 = vpop.eup %3026  ;;  %v1460_v16 = vrot.slane %v1445_v2, 7  ;;  %v1447_v19 = vmul.f32 0.5, %v3025_v4  ;;  %v1548_v2 = vld [vmem:[#allocation2 + $0x36] sm:$0x1]  ;;  %v1549_v4 = vld [vmem:[#allocation2 + $0x3e] sm:$0x1] }
 0x5a2   :  { %v3029_v20 = vpop.eup %3028  ;;  %v1448_v21 = vmul.f32 0.5, %v3027_v12  ;;  %v1462_v23 = vrot.slane %v1446_v9, 6 }
 0x5a3   :  { %v3031_v30 = vpop.eup %3030  ;;  %v1449_v31 = vmul.f32 0.5, %v3029_v20  ;;  %v1461_v51 = vsel %vm409_vm2, %v1460_v16, %v1444_v13  ;;  %v1464_v32 = vrot.slane %v1447_v19, 5 }
 0x5a4   :  { %v3033_v33 = vpop.eup %3032  ;;  %v1450_v34 = vmul.f32 0.5, %v3031_v30  ;;  %v1463_v35 = vsel %vm412_vm3, %v1462_v23, %v1461_v51  ;;  %v1466_v36 = vrot.slane %v1448_v21, 4 }
 0x5a5   :  { %v1451_v37 = vmul.f32 0.5, %v3033_v33  ;;  %v1465_v38 = vsel %vm415_vm4, %v1464_v32, %v1463_v35  ;;  %v1468_v39 = vrot.slane %v1449_v31, 3 }
 0x5a6   :  { %v1467_v41 = vsel %vm418_vm5, %v1466_v36, %v1465_v38  ;;  %v1470_v42 = vrot.slane %v1450_v34, 2 }
 0x5a7   :  { %v1469_v62 = vsel %vm421_vm6, %v1468_v39, %v1467_v41  ;;  %v1472_v43 = vrot.slane %v1451_v37, 1 }
 0x5a8   :  { %v1471_v45 = vsel %vm424_vm7, %v1470_v42, %v1469_v62 }
 0x5a9   :  { %v1473_v46 = vsel %vm427_vm8, %v1472_v43, %v1471_v45 }
 0x5aa   :  { %v3820_v47 = vadd.f32 %v1473_v46, %v1435_v44 }
 0x5ac   :  { %v1477_v48 = vcombine.high %v3820_v47, %v3820_v47  ;;  %v1484_v3 = vrot.slane %v3820_v47, %v3517_v49  ;;  %2800 = vmatmul.mubr.f32.vlgmr.msra.gmra.mxu1 %v3820_v47 }
 0x5ae   :  { %v1491_v50 = vrot.slane %v1477_v48, %v3517_v49  ;;  %v1492_v52 = vcombine.high %v1484_v3, %v1484_v3  ;;  %v1500_v8 = vrot.slane %v1484_v3, %v3517_v49  ;;  %2336 = vst.sshfl [vmem:[#allocation2 + $0x5] sm:$0x1 pattern:$0x73625140] %v1484_v3 }
 0x5b0   :  { %v1493_v40 = vcombine.high %v1491_v50, %v1491_v50  ;;  %v1507_v17 = vrot.slane %v1491_v50, %v3517_v49  ;;  %v1514_v22 = vrot.slane %v1492_v52, %v3517_v49  ;;  %v1522_v5 = vcombine.high %v1500_v8, %v1500_v8  ;;  %2337 = vst.sshfl [vmem:[#allocation2 + $0xd] sm:$0x1 pattern:$0x73625140] %v1492_v52 }
 0x5b1   :  { %2338 = vst.sshfl [vmem:[#allocation2 + $0x25] sm:$0x1 pattern:$0x73625140] %v1491_v50  ;;  %v1644_v8 = vmul.f32 0.5, %v3820_v47 }
 0x5b2   :  { %v1521_v24 = vrot.slane %v1493_v40, %v3517_v49  ;;  %v1523_v6 = vcombine.high %v1507_v17, %v1507_v17  ;;  %v1524_v7 = vcombine.high %v1514_v22, %v1514_v22  ;;  %1536 = vst [vmem:[#allocation2 + $0x15] sm:$0x1] %v1522_v5  ;;  %2339 = vst.sshfl [vmem:[#allocation2 + $0x2d] sm:$0x1 pattern:$0x73625140] %v1493_v40 }
 0x5b4   :  { %v1525_v10 = vcombine.high %v1521_v24, %v1521_v24  ;;  %1537 = vst [vmem:[#allocation2 + $0x1d] sm:$0x1] %v1524_v7  ;;  %1540 = vst [vmem:[#allocation2 + $0x35] sm:$0x1] %v1523_v6 }
 0x5b6   :  { %1541 = vst [vmem:[#allocation2 + $0x3d] sm:$0x1] %v1525_v10 }
 0x66c   :  { %v1616_v11 = vpop.f32.mrf.mxu1 }
 0x66d   :  { %v1621_v15 = vrot.slane %v1616_v11, 1  ;;  %v1622_v18 = vrot.slane %v1616_v11, 2  ;;  %v1623_v26 = vrot.slane %v1616_v11, 3  ;;  %v1624_v53 = vrot.slane %v1616_v11, 4 }
 0x66e   :  { %v1625_v56 = vrot.slane %v1616_v11, 5  ;;  %v1626_v0 = vrot.slane %v1616_v11, 6  ;;  %v1636_v29 = vadd.f32 %v1616_v11, %v1542_v25  ;;  %v2801_v28 = vpop.f32.mrf.mxu1  ;;  %v1627_v61 = vrot.slane %v1616_v11, 7 }
 0x66f   :  { %v1637_v58 = vadd.f32 %v1621_v15, %v1543_v14  ;;  %v1638_v59 = vadd.f32 %v1622_v18, %v1544_v55  ;;  %v1639_v60 = vadd.f32 %v1623_v26, %v1545_v27  ;;  %v1640_v63 = vadd.f32 %v1624_v53, %v1546_v57  ;;  %v1984_v55 = vld [vmem:[#allocation11 + $0x78] sm:$0xff]  ;;  %v1983_v27 = vld [vmem:[#allocation11 + $0x70] sm:$0xff]  ;;  %v1978_v57 = vld [vmem:[#allocation11 + $0x48] sm:$0xff] }
 0x670   :  { %3034 = vtanh.f32 %v1636_v29  ;;  %v1641_v54 = vadd.f32 %v1625_v56, %v1547_v1  ;;  %v1642_v9 = vadd.f32 %v1626_v0, %v1548_v2  ;;  %v1643_v12 = vadd.f32 %v1627_v61, %v1549_v4  ;;  %2837 = vmatprep.subr.mxu1 %v1984_v55  ;;  %v1982_v56 = vld [vmem:[#allocation11 + $0x68] sm:$0xff]  ;;  %v1981_v0 = vld [vmem:[#allocation11 + $0x60] sm:$0xff]  ;;  %v1980_v29 = vld [vmem:[#allocation11 + $0x58] sm:$0xff] }
 0x671   :  { %3036 = vtanh.f32 %v1637_v58  ;;  %2838 = vmatpush3.msra.mxu1 %v1984_v55  ;;  %v1979_v28 = vld [vmem:[#allocation11 + $0x50] sm:$0xff]  ;;  %v1977_v58 = vld [vmem:[#allocation11 + $0x40] sm:$0xff]  ;;  %v1974_v61 = vld [vmem:[#allocation11 + $0x28] sm:$0xff] }
 0x672   :  { %3038 = vtanh.f32 %v1638_v59  ;;  %2839 = vmatprep.subr.mxu1 %v1983_v27  ;;  %v1976_v59 = vld [vmem:[#allocation11 + $0x38] sm:$0xff]  ;;  %v1973_v1 = vld [vmem:[#allocation11 + $0x20] sm:$0xff]  ;;  %v1970_v2 = vld [vmem:[#allocation11 + $0x8] sm:$0xff] }
 0x673   :  { %3040 = vtanh.f32 %v1639_v60  ;;  %2840 = vmatpush3.msra.mxu1 %v1983_v27  ;;  %v1975_v60 = vld [vmem:[#allocation11 + $0x30] sm:$0xff]  ;;  %v1969_v4 = vld [vmem:[#allocation11] sm:$0xff] }
 0x674   :  { %3042 = vtanh.f32 %v1640_v63  ;;  %2841 = vmatprep.subr.mxu1 %v1982_v56  ;;  %v1972_v63 = vld [vmem:[#allocation11 + $0x18] sm:$0xff] }
 0x675   :  { %3044 = vtanh.f32 %v1641_v54  ;;  %2842 = vmatpush3.msra.mxu1 %v1982_v56  ;;  %v1971_v54 = vld [vmem:[#allocation11 + $0x10] sm:$0xff] }
 0x676   :  { %3046 = vtanh.f32 %v1642_v9  ;;  %2843 = vmatprep.subr.mxu1 %v1981_v0  ;;  %v2153_v9 = vld [vmem:[#allocation12 + $0x78] sm:$0xff] }
 0x677   :  { %3048 = vtanh.f32 %v1643_v12  ;;  %2844 = vmatpush3.msra.mxu1 %v1981_v0  ;;  %v2152_v12 = vld [vmem:[#allocation12 + $0x70] sm:$0xff]  ;;  %2881 = vmatprep.subr.mxu0 %v2153_v9 }
 0x678   :  { %2845 = vmatprep.subr.mxu1 %v1980_v29 }
 0x679   :  { %2846 = vmatpush3.msra.mxu1 %v1980_v29 }
 0x67a   :  { %2847 = vmatprep.subr.mxu1 %v1979_v28 }
 0x67b   :  { %2848 = vmatpush3.msra.mxu1 %v1979_v28 }
 0x67c   :  { %2849 = vmatprep.subr.mxu1 %v1978_v57 }
 0x67d   :  { %v3035_v13 = vpop.eup %3034  ;;  %2850 = vmatpush3.msra.mxu1 %v1978_v57 }
 0x67e   :  { %v3037_v16 = vpop.eup %3036  ;;  %v1653_v31 = vmul.f32 0.5, %v3035_v13  ;;  %2851 = vmatprep.subr.mxu1 %v1977_v58  ;;  %v2151_v13 = vld [vmem:[#allocation12 + $0x68] sm:$0xff] }
 0x67f   :  { %v3039_v19 = vpop.eup %3038  ;;  %v1654_v20 = vmul.f32 0.5, %v3037_v16  ;;  %2852 = vmatpush3.msra.mxu1 %v1977_v58  ;;  %v1751_v16 = vld [vmem:[#allocation2 + $0x7] sm:$0x1] }
 0x680   :  { %v3041_v21 = vpop.eup %3040  ;;  %v1655_v23 = vmul.f32 0.5, %v3039_v19  ;;  %2853 = vmatprep.subr.mxu1 %v1976_v59 }
 0x681   :  { %v3043_v30 = vpop.eup %3042  ;;  %v1669_v51 = vrot.slane %v1654_v20, 7  ;;  %v1656_v32 = vmul.f32 0.5, %v3041_v21  ;;  %2854 = vmatpush3.msra.mxu1 %v1976_v59  ;;  %v1752_v20 = vld [vmem:[#allocation2 + $0xf] sm:$0x1] }
 0x682   :  { %v3045_v33 = vpop.eup %3044  ;;  %v1657_v34 = vmul.f32 0.5, %v3043_v30  ;;  %v1671_v35 = vrot.slane %v1655_v23, 6  ;;  %2855 = vmatprep.subr.mxu1 %v1975_v60 }
 0x683   :  { %v3047_v36 = vpop.eup %3046  ;;  %v1658_v37 = vmul.f32 0.5, %v3045_v33  ;;  %v1670_v38 = vsel %vm409_vm2, %v1669_v51, %v1653_v31  ;;  %v1673_v39 = vrot.slane %v1656_v32, 5  ;;  %2856 = vmatpush3.msra.mxu1 %v1975_v60  ;;  %v1753_v51 = vld [vmem:[#allocation2 + $0x17] sm:$0x1]  ;;  %v1754_v32 = vld [vmem:[#allocation2 + $0x1f] sm:$0x1] }
 0x684   :  { %v3049_v41 = vpop.eup %3048  ;;  %v1659_v42 = vmul.f32 0.5, %v3047_v36  ;;  %v1672_v62 = vsel %vm412_vm3, %v1671_v35, %v1670_v38  ;;  %v1675_v43 = vrot.slane %v1657_v34, 4  ;;  %2857 = vmatprep.subr.mxu1 %v1974_v61 }
 0x685   :  { %v1660_v44 = vmul.f32 0.5, %v3049_v41  ;;  %v1674_v45 = vsel %vm415_vm4, %v1673_v39, %v1672_v62  ;;  %v1677_v46 = vrot.slane %v1658_v37, 3  ;;  %2858 = vmatpush3.msra.mxu1 %v1974_v61  ;;  %v1755_v37 = vld [vmem:[#allocation2 + $0x27] sm:$0x1]  ;;  %v1756_v62 = vld [vmem:[#allocation2 + $0x2f] sm:$0x1] }
 0x686   :  { %v1676_v48 = vsel %vm418_vm5, %v1675_v43, %v1674_v45  ;;  %v1679_v3 = vrot.slane %v1659_v42, 2  ;;  %2859 = vmatprep.subr.mxu1 %v1973_v1 }
 0x687   :  { %v1678_v50 = vsel %vm421_vm6, %v1677_v46, %v1676_v48  ;;  %v1681_v52 = vrot.slane %v1660_v44, 1  ;;  %2860 = vmatpush3.msra.mxu1 %v1973_v1  ;;  %v1757_v44 = vld [vmem:[#allocation2 + $0x37] sm:$0x1]  ;;  %v1758_v46 = vld [vmem:[#allocation2 + $0x3f] sm:$0x1] }
 0x688   :  { %v1680_v40 = vsel %vm424_vm7, %v1679_v3, %v1678_v50  ;;  %2861 = vmatprep.subr.mxu1 %v1972_v63 }
 0x689   :  { %v1682_v17 = vsel %vm427_vm8, %v1681_v52, %v1680_v40  ;;  %2862 = vmatpush3.msra.mxu1 %v1972_v63 }
 0x68a   :  { %v3840_v22 = vadd.f32 %v1682_v17, %v1644_v8  ;;  %2863 = vmatprep.subr.mxu1 %v1971_v54 }
 0x68b   :  { %2864 = vmatpush3.msra.mxu1 %v1971_v54 }
 0x68c   :  { %v1686_v5 = vcombine.high %v3840_v22, %v3840_v22  ;;  %v1693_v24 = vrot.slane %v3840_v22, %v3517_v49  ;;  %2835 = vmatmul.mubr.f32.vlgmr.msra.gmra.mxu0 %v3840_v22  ;;  %2865 = vmatprep.subr.mxu1 %v1970_v2  ;;  %v1853_v61 = vmul.f32 0.5, %v3840_v22 }
 0x68d   :  { %2866 = vmatpush3.msra.mxu1 %v1970_v2  ;;  %2882 = vmatpush3.msra.mxu0 %v2153_v9 }
 0x68e   :  { %v1700_v6 = vrot.slane %v1686_v5, %v3517_v49  ;;  %v1701_v7 = vcombine.high %v1693_v24, %v1693_v24  ;;  %v1709_v10 = vrot.slane %v1693_v24, %v3517_v49  ;;  %2340 = vst.sshfl [vmem:[#allocation2 + $0x6] sm:$0x1 pattern:$0x73625140] %v1693_v24  ;;  %2867 = vmatprep.subr.mxu1 %v1969_v4 }
 0x68f   :  { %2868 = vmatpush3.msra.mxu1 %v1969_v4  ;;  %2883 = vmatprep.subr.mxu0 %v2152_v12 }
 0x690   :  { %v1702_v47 = vcombine.high %v1700_v6, %v1700_v6  ;;  %v1716_v25 = vrot.slane %v1700_v6, %v3517_v49  ;;  %v1723_v11 = vrot.slane %v1701_v7, %v3517_v49  ;;  %v1731_v14 = vcombine.high %v1709_v10, %v1709_v10  ;;  %2341 = vst.sshfl [vmem:[#allocation2 + $0xe] sm:$0x1 pattern:$0x73625140] %v1701_v7 }
 0x691   :  { %2342 = vst.sshfl [vmem:[#allocation2 + $0x26] sm:$0x1 pattern:$0x73625140] %v1700_v6  ;;  %2884 = vmatpush3.msra.mxu0 %v2152_v12 }
 0x692   :  { %v1730_v15 = vrot.slane %v1702_v47, %v3517_v49  ;;  %v1732_v18 = vcombine.high %v1716_v25, %v1716_v25  ;;  %v1733_v26 = vcombine.high %v1723_v11, %v1723_v11  ;;  %1745 = vst [vmem:[#allocation2 + $0x16] sm:$0x1] %v1731_v14  ;;  %2343 = vst.sshfl [vmem:[#allocation2 + $0x2e] sm:$0x1 pattern:$0x73625140] %v1702_v47  ;;  %2885 = vmatprep.subr.mxu0 %v2151_v13 }
 0x693   :  { %2886 = vmatpush3.msra.mxu0 %v2151_v13 }
 0x694   :  { %v1734_v53 = vcombine.high %v1730_v15, %v1730_v15  ;;  %1746 = vst [vmem:[#allocation2 + $0x1e] sm:$0x1] %v1733_v26  ;;  %1749 = vst [vmem:[#allocation2 + $0x36] sm:$0x1] %v1732_v18 }
 0x696   :  { %1750 = vst [vmem:[#allocation2 + $0x3e] sm:$0x1] %v1734_v53 }
 0x74c   :  { %v1825_v19 = vpop.f32.mrf.mxu0 }
 0x74d   :  { %v1830_v21 = vrot.slane %v1825_v19, 1  ;;  %v1831_v23 = vrot.slane %v1825_v19, 2  ;;  %v1832_v30 = vrot.slane %v1825_v19, 3  ;;  %v1833_v31 = vrot.slane %v1825_v19, 4 }
 0x74e   :  { %v1834_v33 = vrot.slane %v1825_v19, 5  ;;  %v1835_v34 = vrot.slane %v1825_v19, 6  ;;  %v1845_v35 = vadd.f32 %v1825_v19, %v1751_v16  ;;  %v2836_v36 = vpop.f32.mrf.mxu0  ;;  %v1836_v38 = vrot.slane %v1825_v19, 7 }
 0x74f   :  { %v1846_v39 = vadd.f32 %v1830_v21, %v1752_v20  ;;  %v1847_v41 = vadd.f32 %v1831_v23, %v1753_v51  ;;  %v1848_v42 = vadd.f32 %v1832_v30, %v1754_v32  ;;  %v1849_v43 = vadd.f32 %v1833_v31, %v1755_v37 }
 0x750   :  { %3050 = vtanh.f32 %v1845_v35  ;;  %v1850_v45 = vadd.f32 %v1834_v33, %v1756_v62  ;;  %v1851_v48 = vadd.f32 %v1835_v34, %v1757_v44  ;;  %v1852_v3 = vadd.f32 %v1836_v38, %v1758_v46  ;;  %v2150_v38 = vld [vmem:[#allocation12 + $0x60] sm:$0xff]  ;;  %v2144_v44 = vld [vmem:[#allocation12 + $0x30] sm:$0xff] }
 0x751   :  { %3052 = vtanh.f32 %v1846_v39  ;;  %2887 = vmatprep.subr.mxu0 %v2150_v38  ;;  %v2149_v39 = vld [vmem:[#allocation12 + $0x58] sm:$0xff]  ;;  %v2146_v62 = vld [vmem:[#allocation12 + $0x40] sm:$0xff] }
 0x752   :  { %3054 = vtanh.f32 %v1847_v41  ;;  %2888 = vmatpush3.msra.mxu0 %v2150_v38  ;;  %v2148_v41 = vld [vmem:[#allocation12 + $0x50] sm:$0xff]  ;;  %v2142_v46 = vld [vmem:[#allocation12 + $0x20] sm:$0xff] }
 0x753   :  { %3056 = vtanh.f32 %v1848_v42  ;;  %2889 = vmatprep.subr.mxu0 %v2149_v39  ;;  %v2147_v42 = vld [vmem:[#allocation12 + $0x48] sm:$0xff] }
 0x754   :  { %3058 = vtanh.f32 %v1849_v43  ;;  %2890 = vmatpush3.msra.mxu0 %v2149_v39  ;;  %v2145_v43 = vld [vmem:[#allocation12 + $0x38] sm:$0xff] }
 0x755   :  { %3060 = vtanh.f32 %v1850_v45  ;;  %2891 = vmatprep.subr.mxu0 %v2148_v41  ;;  %v2143_v45 = vld [vmem:[#allocation12 + $0x28] sm:$0xff] }
 0x756   :  { %3062 = vtanh.f32 %v1851_v48  ;;  %2892 = vmatpush3.msra.mxu0 %v2148_v41  ;;  %v2141_v48 = vld [vmem:[#allocation12 + $0x18] sm:$0xff] }
 0x757   :  { %3064 = vtanh.f32 %v1852_v3  ;;  %2893 = vmatprep.subr.mxu0 %v2147_v42  ;;  %v2140_v3 = vld [vmem:[#allocation12 + $0x10] sm:$0xff] }
 0x758   :  { %2894 = vmatpush3.msra.mxu0 %v2147_v42 }
 0x759   :  { %2895 = vmatprep.subr.mxu0 %v2146_v62 }
 0x75a   :  { %2896 = vmatpush3.msra.mxu0 %v2146_v62 }
 0x75b   :  { %2897 = vmatprep.subr.mxu0 %v2145_v43 }
 0x75c   :  { %2898 = vmatpush3.msra.mxu0 %v2145_v43 }
 0x75d   :  { %v3051_v50 = vpop.eup %3050  ;;  %2899 = vmatprep.subr.mxu0 %v2144_v44 }
 0x75e   :  { %v3053_v52 = vpop.eup %3052  ;;  %v1862_v6 = vmul.f32 0.5, %v3051_v50  ;;  %2900 = vmatpush3.msra.mxu0 %v2144_v44  ;;  %v2139_v50 = vld [vmem:[#allocation12 + $0x8] sm:$0xff] }
 0x75f   :  { %v3055_v8 = vpop.eup %3054  ;;  %v1863_v40 = vmul.f32 0.5, %v3053_v52  ;;  %2901 = vmatprep.subr.mxu0 %v2143_v45  ;;  %v2138_v52 = vld [vmem:[#allocation12] sm:$0xff] }
 0x760   :  { %v3057_v17 = vpop.eup %3056  ;;  %v1864_v5 = vmul.f32 0.5, %v3055_v8  ;;  %2902 = vmatpush3.msra.mxu0 %v2143_v45  ;;  %v2348_v8 = vld [vmem:[%s3886_s5] ss:$0 sm:$0xff]  ;;  %s3281_s5 = smov [#allocation15]  }
 0x761   :  { %v3059_v24 = vpop.eup %3058  ;;  %v1865_v7 = vmul.f32 0.5, %v3057_v17  ;;  %v1878_v10 = vrot.slane %v1863_v40, 7  ;;  %2903 = vmatprep.subr.mxu0 %v2142_v46  ;;  %s2292_s16 = sshll.u32 %s3281_s5, 4  ;;  %s2293_s16 = int_to_ptr.vmem [resolvable:$true] %s2292_s16 }
 0x762   :  { %v3061_v47 = vpop.eup %3060  ;;  %v1866_v25 = vmul.f32 0.5, %v3059_v24  ;;  %v1880_v11 = vrot.slane %v1864_v5, 6  ;;  %2904 = vmatpush3.msra.mxu0 %v2142_v46  ;;  %s3218_s17 = scalar_lea.vmem %s2293_s16, 128  ;;  %p3223_p3 = scmp.lt.s32.totalorder %s2293_s16, %s2293_s16 }
 0x763   :  { %v3063_v14 = vpop.eup %3062  ;;  %v1867_v15 = vmul.f32 0.5, %v3061_v47  ;;  %v1879_v18 = vsel %vm409_vm2, %v1878_v10, %v1862_v6  ;;  %v1882_v26 = vrot.slane %v1865_v7, 5  ;;  %2905 = vmatprep.subr.mxu0 %v2141_v48  ;;  %p3219_p2 = scmp.ne.s32.totalorder %s2293_s16, %s3218_s17  ;;  %p3224_p4 = scmp.lt.s32.totalorder %s3218_s17, %s3218_s17 }
 0x764   :  { %v3065_v53 = vpop.eup %3064  ;;  %v1868_v55 = vmul.f32 0.5, %v3063_v14  ;;  %v1881_v27 = vsel %vm412_vm3, %v1880_v11, %v1879_v18  ;;  %v1884_v56 = vrot.slane %v1866_v25, 4  ;;  %2906 = vmatpush3.msra.mxu0 %v2141_v48 }
 0x765   :  { %v1869_v0 = vmul.f32 0.5, %v3065_v53  ;;  %v1883_v29 = vsel %vm415_vm4, %v1882_v26, %v1881_v27  ;;  %v1886_v28 = vrot.slane %v1867_v15, 3  ;;  %2907 = vmatprep.subr.mxu0 %v2140_v3  ;;  %p3225_p5 = por %p3224_p4, %p3223_p3 }
 0x766   :  { %v1885_v57 = vsel %vm418_vm5, %v1884_v56, %v1883_v29  ;;  %v1888_v58 = vrot.slane %v1868_v55, 2  ;;  %2908 = vmatpush3.msra.mxu0 %v2140_v3 }
 0x767   :  { %v1887_v59 = vsel %vm421_vm6, %v1886_v28, %v1885_v57  ;;  %v1890_v60 = vrot.slane %v1869_v0, 1  ;;  %2909 = vmatprep.subr.mxu0 %v2139_v50  ;;  %p3226_p6 = pnand %p3225_p5, %p3219_p2 }
 0x768   :  { %v1889_v1 = vsel %vm424_vm7, %v1888_v58, %v1887_v59  ;;  %2910 = vmatpush3.msra.mxu0 %v2139_v50 }
 0x769   :  { %v1891_v63 = vsel %vm427_vm8, %v1890_v60, %v1889_v1  ;;  %2911 = vmatprep.subr.mxu0 %v2138_v52 }
 0x76a   :  { %v1893_v54 = vadd.f32 %v1891_v63, %v1853_v61  ;;  %2912 = vmatpush3.msra.mxu0 %v2138_v52 }
 0x76c   :  { %v1895_v2 = vcombine.high %v1893_v54, %v1893_v54  ;;  %v1902_v4 = vrot.slane %v1893_v54, %v3517_v49  ;;  %1960 = vst [vmem:[#allocation15] sm:$0xff] %v1893_v54 }
 0x76e   :  { %v1909_v9 = vrot.slane %v1895_v2, %v3517_v49  ;;  %v1910_v12 = vcombine.high %v1902_v4, %v1902_v4  ;;  %v1918_v13 = vrot.slane %v1902_v4, %v3517_v49  ;;  %2344 = vst.sshfl [vmem:[#allocation2 + $0x7] sm:$0x1 pattern:$0x73625140] %v1902_v4 }
 0x770   :  { %v1911_v16 = vcombine.high %v1909_v9, %v1909_v9  ;;  %v1925_v19 = vrot.slane %v1909_v9, %v3517_v49  ;;  %v1932_v22 = vrot.slane %v1910_v12, %v3517_v49  ;;  %v1940_v20 = vcombine.high %v1918_v13, %v1918_v13  ;;  %2345 = vst.sshfl [vmem:[#allocation2 + $0xf] sm:$0x1 pattern:$0x73625140] %v1910_v12 }
 0x771   :  { %2346 = vst.sshfl [vmem:[#allocation2 + $0x27] sm:$0x1 pattern:$0x73625140] %v1909_v9 }
 0x772   :  { %v1939_v21 = vrot.slane %v1911_v16, %v3517_v49  ;;  %v1941_v23 = vcombine.high %v1925_v19, %v1925_v19  ;;  %v1942_v30 = vcombine.high %v1932_v22, %v1932_v22  ;;  %1954 = vst [vmem:[#allocation2 + $0x17] sm:$0x1] %v1940_v20  ;;  %2347 = vst.sshfl [vmem:[#allocation2 + $0x2f] sm:$0x1 pattern:$0x73625140] %v1911_v16 }
 0x774   :  { %v1943_v31 = vcombine.high %v1939_v21, %v1939_v21  ;;  %1955 = vst [vmem:[#allocation2 + $0x1f] sm:$0x1] %v1942_v30  ;;  %1958 = vst [vmem:[#allocation2 + $0x37] sm:$0x1] %v1941_v23 }
 0x775   :  { %v1961_v51 = vld [vmem:[#allocation2] sm:$0xff] }
 0x776   :  { %1959 = vst [vmem:[#allocation2 + $0x3f] sm:$0x1] %v1943_v31  ;;  %2869 = vmatprep.mubr.f32.mxu1 %v1961_v51 }
 0x777   :  { %v1962_v32 = vld [vmem:[#allocation2 + $0x8] sm:$0xff] }
 0x778   :  { %2870 = vmatmul.mubr.f32.vlgmr.msra.gmra.mxu1 %v1962_v32  ;;  %v1965_v35 = vld [vmem:[#allocation2 + $0x20] sm:$0xff] }
 0x779   :  { %v1963_v33 = vld [vmem:[#allocation2 + $0x10] sm:$0xff]  ;;  %v1966_v36 = vld [vmem:[#allocation2 + $0x28] sm:$0xff] }
 0x77a   :  { %2872 = vmatprep.mubr.f32.mxu1 %v1963_v33 }
 0x77b   :  { %v1964_v34 = vld [vmem:[#allocation2 + $0x18] sm:$0xff]  ;;  %v1967_v49 = vld [vmem:[#allocation2 + $0x30] sm:$0xff] }
 0x77c   :  { %2873 = vmatmul.mubr.f32.gmra.mxu1 %v1964_v34 }
 0x77d   :  { %2875 = vmatprep.mubr.f32.mxu1 %v1965_v35  ;;  %v1968_v37 = vld [vmem:[#allocation2 + $0x38] sm:$0xff] }
 0x780   :  { %2876 = vmatmul.mubr.f32.gmra.mxu1 %v1966_v36 }
 0x781   :  { %2878 = vmatprep.mubr.f32.mxu1 %v1967_v49 }
 0x784   :  { %2879 = vmatmul.mubr.f32.gmra.mxu1 %v1968_v37 }
 0x838   :  { %v2871_v40 = vpop.f32.mrf.mxu1 }
 0x839   :  { %v2064_v17 = vadd.f32 %v2871_v40, %v2348_v8 }
 0x83a   :  { %v2058_v5 = vpop.f32.mrf.mxu1 }
 0x83b   :  { %v2107_v24 = vmul.f32 0.70710677, %v2064_v17  ;;  %v2059_v6 = vadd.f32 %v2348_v8, %v2058_v5  ;;  %v2098_v4 = vmul.f32 0.5, %v2064_v17 }
 0x83c   :  { %v2874_v7 = vpop.f32.mrf.mxu1 }
 0x83d   :  { %3066 = verf.f32 %v2107_v24  ;;  %v2106_v10 = vmul.f32 0.70710677, %v2059_v6  ;;  %v2074_v47 = vadd.f32 %v2874_v7, %v2348_v8  ;;  %v2097_v63 = vmul.f32 0.5, %v2059_v6 }
 0x83e   :  { %v2068_v25 = vpop.f32.mrf.mxu1 }
 0x83f   :  { %3068 = verf.f32 %v2106_v10  ;;  %v2109_v11 = vmul.f32 0.70710677, %v2074_v47  ;;  %v2069_v14 = vadd.f32 %v2348_v8, %v2068_v25  ;;  %v2100_v21 = vmul.f32 0.5, %v2074_v47 }
 0x840   :  { %v2877_v15 = vpop.f32.mrf.mxu1 }
 0x841   :  { %3070 = verf.f32 %v2109_v11  ;;  %v2108_v18 = vmul.f32 0.70710677, %v2069_v14  ;;  %v2084_v26 = vadd.f32 %v2877_v15, %v2348_v8  ;;  %v2099_v19 = vmul.f32 0.5, %v2069_v14 }
 0x842   :  { %v2078_v53 = vpop.f32.mrf.mxu1 }
 0x843   :  { %3072 = verf.f32 %v2108_v18  ;;  %v2111_v55 = vmul.f32 0.70710677, %v2084_v26  ;;  %v2079_v27 = vadd.f32 %v2348_v8, %v2078_v53  ;;  %v2102_v35 = vmul.f32 0.5, %v2084_v26 }
 0x844   :  { %v2880_v56 = vpop.f32.mrf.mxu1 }
 0x845   :  { %3074 = verf.f32 %v2111_v55  ;;  %v2110_v0 = vmul.f32 0.70710677, %v2079_v27  ;;  %v2094_v29 = vadd.f32 %v2880_v56, %v2348_v8  ;;  %v2101_v32 = vmul.f32 0.5, %v2079_v27 }
 0x846   :  { %v2088_v28 = vpop.f32.mrf.mxu1 }
 0x847   :  { %3076 = verf.f32 %v2110_v0  ;;  %v2113_v57 = vmul.f32 0.70710677, %v2094_v29  ;;  %v2089_v58 = vadd.f32 %v2348_v8, %v2088_v28  ;;  %v2104_v42 = vmul.f32 0.5, %v2094_v29 }
 0x849   :  { %3078 = verf.f32 %v2113_v57  ;;  %v2112_v59 = vmul.f32 0.70710677, %v2089_v58  ;;  %v2103_v39 = vmul.f32 0.5, %v2089_v58 }
 0x84a   :  { %v3067_v60 = vpop.eup %3066 }
 0x84b   :  { %3080 = verf.f32 %v2112_v59  ;;  %v2123_v1 = vadd.f32 1.0, %v3067_v60 }
 0x84c   :  { %v3069_v61 = vpop.eup %3068 }
 0x84d   :  { %v2122_v54 = vadd.f32 1.0, %v3069_v61  ;;  %v2131_v13 = vmul.f32 %v2123_v1, %v2098_v4 }
 0x84e   :  { %v3071_v2 = vpop.eup %3070 }
 0x84f   :  { %v2130_v9 = vmul.f32 %v2122_v54, %v2097_v63  ;;  %v2125_v16 = vadd.f32 1.0, %v3071_v2 }
 0x850   :  { %v3073_v12 = vpop.eup %3072 }
 0x851   :  { %2913 = vmatprep.mubr.f32.mxu0 %v2130_v9  ;;  %v2124_v22 = vadd.f32 1.0, %v3073_v12  ;;  %v2133_v31 = vmul.f32 %v2125_v16, %v2100_v21 }
 0x852   :  { %v3075_v20 = vpop.eup %3074  ;;  %2914 = vmatmul.mubr.f32.vlgmr.msra.gmra.mxu0 %v2131_v13 }
 0x853   :  { %v2132_v23 = vmul.f32 %v2124_v22, %v2099_v19  ;;  %v2127_v51 = vadd.f32 1.0, %v3075_v20 }
 0x854   :  { %v3077_v30 = vpop.eup %3076 }
 0x855   :  { %2916 = vmatprep.mubr.f32.mxu0 %v2132_v23  ;;  %v2126_v33 = vadd.f32 1.0, %v3077_v30  ;;  %v2135_v37 = vmul.f32 %v2127_v51, %v2102_v35 }
 0x856   :  { %v3079_v34 = vpop.eup %3078  ;;  %2917 = vmatmul.mubr.f32.gmra.mxu0 %v2133_v31 }
 0x857   :  { %v2134_v36 = vmul.f32 %v2126_v33, %v2101_v32  ;;  %v2129_v38 = vadd.f32 1.0, %v3079_v34 }
 0x858   :  { %v3081_v49 = vpop.eup %3080 }
 0x859   :  { %2919 = vmatprep.mubr.f32.mxu0 %v2134_v36  ;;  %v2128_v41 = vadd.f32 1.0, %v3081_v49  ;;  %v2137_v43 = vmul.f32 %v2129_v38, %v2104_v42 }
 0x85a   :  { %2920 = vmatmul.mubr.f32.gmra.mxu0 %v2135_v37 }
 0x85b   :  { %v2136_v62 = vmul.f32 %v2128_v41, %v2103_v39 }
 0x85d   :  { %2922 = vmatprep.mubr.f32.mxu0 %v2136_v62 }
 0x85e   :  { %2923 = vmatmul.mubr.f32.gmra.mxu0 %v2137_v43 }
 0x85f   :  { %3229 = shalt.err (!%p3226_p6)
}
 0x860   :  { %2295 = dma.vmem_to_hbm [thread:$0]  %s2293_s16, 128, %s3890_s9, [#allocation16]   ;;  %v2349_v44 = vld [vmem:[%s3888_s7] ss:$0 sm:$0xff] }
 0x861   :  { %s3282_s9 = smov [#allocation14]  }
 0x862   :  { %s2279_s7 = sshll.u32 %s3282_s9, 4  ;;  %s2280_s7 = int_to_ptr.vmem [resolvable:$true] %s2279_s7 }
 0x863   :  { %s3238_s23 = scalar_lea.vmem %s2280_s7, 1024  ;;  %p3243_p8 = scmp.lt.s32.totalorder %s2280_s7, %s2280_s7 }
 0x864   :  { %p3239_p7 = scmp.ne.s32.totalorder %s2280_s7, %s3238_s23  ;;  %p3244_p9 = scmp.lt.s32.totalorder %s3238_s23, %s3238_s23 }
 0x866   :  { %p3245_p10 = por %p3244_p9, %p3243_p8 }
 0x868   :  { %p3246_p11 = pnand %p3245_p10, %p3239_p7 }
 0x912   :  { %v2915_v45 = vpop.f32.mrf.mxu0 }
 0x913   :  { %v2233_v46 = vadd.f32 %v2915_v45, %v2349_v44 }
 0x914   :  { %v2227_v48 = vpop.f32.mrf.mxu0 }
 0x915   :  { %2267 = vst [vmem:[#allocation14 + $0x8] sm:$0xff] %v2233_v46  ;;  %v2228_v3 = vadd.f32 %v2349_v44, %v2227_v48 }
 0x916   :  { %v2918_v50 = vpop.f32.mrf.mxu0 }
 0x917   :  { %2266 = vst [vmem:[#allocation14] sm:$0xff] %v2228_v3  ;;  %v2243_v52 = vadd.f32 %v2918_v50, %v2349_v44 }
 0x918   :  { %v2237_v8 = vpop.f32.mrf.mxu0 }
 0x919   :  { %2269 = vst [vmem:[#allocation14 + $0x18] sm:$0xff] %v2243_v52  ;;  %v2238_v40 = vadd.f32 %v2349_v44, %v2237_v8 }
 0x91a   :  { %v2921_v17 = vpop.f32.mrf.mxu0 }
 0x91b   :  { %2268 = vst [vmem:[#allocation14 + $0x10] sm:$0xff] %v2238_v40  ;;  %v2253_v5 = vadd.f32 %v2921_v17, %v2349_v44 }
 0x91c   :  { %v2247_v24 = vpop.f32.mrf.mxu0 }
 0x91d   :  { %2271 = vst [vmem:[#allocation14 + $0x28] sm:$0xff] %v2253_v5  ;;  %v2248_v6 = vadd.f32 %v2349_v44, %v2247_v24 }
 0x91e   :  { %v2924_v7 = vpop.f32.mrf.mxu0 }
 0x91f   :  { %2270 = vst [vmem:[#allocation14 + $0x20] sm:$0xff] %v2248_v6  ;;  %v2263_v10 = vadd.f32 %v2924_v7, %v2349_v44 }
 0x920   :  { %v2257_v47 = vpop.f32.mrf.mxu0 }
 0x921   :  { %2273 = vst [vmem:[#allocation14 + $0x38] sm:$0xff] %v2263_v10  ;;  %v2258_v25 = vadd.f32 %v2349_v44, %v2257_v47 }
 0x923   :  { %2272 = vst [vmem:[#allocation14 + $0x30] sm:$0xff] %v2258_v25 }
 0x924   :  { %3249 = shalt.err (!%p3246_p11)
}
 0x925   :  { %2285 = dma.vmem_to_hbm [thread:$0]  %s2280_s7, 1024, %s3889_s8, [#allocation5], %s3273_s19, %s3273_s19, %s3274_s20  }
 0x926   :  { %3266 = dma.done.wait [#allocation5], 1024  }
 0x927   :  { %3267 = vsyncadd [#allocation5], 4294966272 }
 0x928   :  { %3268 = dma.done.wait [#allocation16], 128  }
 0x929   :  { %3269 = vsyncadd [#allocation16], 4294967168 }
 0x92a   :  { %2302 = vsyncpa [#allocation4], 1 }
 0x92b   :  { %2303 = vsyncpa [#allocation7], 1 }
 0x92c   :  { %2304 = vsyncpa [#allocation10], 1 }
 0x92d   :  { %2305 = vsyncpa [#allocation13], 1 }
 0x92e   :  { %2306 = vsyncpa [#allocation5], 1 }
 0x92f   :  { %2307 = vsyncpa [#allocation16], 1 }

// kernel: tpu_custom_call.1
= control target key start
LH: loop header
LB: loop body
LE: loop exit
PB: predicated region body
PF: predicated region fallthrough
CT: control target
= control target key end

     0   :  { %15 = vsyncpa [#allocation4], 0  ;;  %s3881_s0 = inlined_call_operand.hbm [shape: f32[8,8,8], index: 0, kind: input, shape index: {}]   ;;  %s3882_s1 = inlined_call_operand.hbm [shape: f32[8,128], index: 1, kind: input, shape index: {}]   ;;  %s3883_s2 = inlined_call_operand.hbm [shape: f32[8,128], index: 2, kind: input, shape index: {}]   ;;  %s3884_s3 = inlined_call_operand.hbm [shape: f32[128,128], index: 3, kind: input, shape index: {}]   ;;  %s3885_s4 = inlined_call_operand.hbm [shape: f32[128,128], index: 4, kind: input, shape index: {}]   ;;  %s3886_s5 = inlined_call_operand.vmem [shape: f32[1,128], index: 5, kind: input, shape index: {}]   ;;  %s3887_s6 = inlined_call_operand.hbm [shape: f32[128,128], index: 6, kind: input, shape index: {}]   ;;  %s3888_s7 = inlined_call_operand.vmem [shape: f32[1,128], index: 7, kind: input, shape index: {}]   ;;  %s3889_s8 = inlined_call_operand.hbm [shape: f32[8,8,128], index: 8, kind: output, shape index: {0}]   ;;  %s3890_s9 = inlined_call_operand.hbm [shape: f32[8,128], index: 9, kind: output, shape index: {1}]  }
   0x1   :  { %16 = vsyncpa [#allocation7], 0 }
   0x2   :  { %17 = vsyncpa [#allocation10], 0 }
   0x3   :  { %18 = vsyncpa [#allocation13], 0 }
   0x4   :  { %19 = vsyncpa [#allocation5], 0 }
   0x5   :  { %20 = vsyncpa [#allocation16], 0  ;;  %s3270_s30 = smov [#allocation6]  }
   0x6   :  { %s39_s10 = sshll.u32 %s3270_s30, 4  ;;  %s40_s10 = int_to_ptr.vmem [resolvable:$true] %s39_s10 }
   0x7   :  { %s3106_s11 = scalar_lea.vmem %s40_s10, 128  ;;  %p3111_p1 = scmp.lt.s32.totalorder %s40_s10, %s40_s10 }
   0x8   :  { %p3107_p0 = scmp.ne.s32.totalorder %s40_s10, %s3106_s11  ;;  %p3112_p2 = scmp.lt.s32.totalorder %s3106_s11, %s3106_s11 }
   0xa   :  { %p3113_p3 = por %p3112_p2, %p3111_p1 }
   0xc   :  { %p3114_p4 = pnand %p3113_p3, %p3107_p0 }
   0xe   :  { %3117 = shalt.err (!%p3114_p4)
}
   0xf   :  { %42 = dma.hbm_to_vmem [thread:$0]  %s3882_s1, 128, %s40_s10, [#allocation7]  }
  0x10   :  { %s3271_s14 = smov [#allocation9]   ;;  %s3272_s16 = smov [#allocation3]  }
  0x11   :  { %s58_s15 = sshll.u32 %s3271_s14, 4  ;;  %s26_s17 = sshll.u32 %s3272_s16, 4  ;;  %s59_s15 = int_to_ptr.vmem [resolvable:$true] %s58_s15  ;;  %s27_s17 = int_to_ptr.vmem [resolvable:$true] %s26_s17 }
  0x12   :  { %s3126_s18 = scalar_lea.vmem %s59_s15, 2048  ;;  %p3131_p6 = scmp.lt.s32.totalorder %s59_s15, %s59_s15 }
  0x13   :  { %p3127_p5 = scmp.ne.s32.totalorder %s59_s15, %s3126_s18  ;;  %p3132_p7 = scmp.lt.s32.totalorder %s3126_s18, %s3126_s18 }
  0x15   :  { %p3133_p8 = por %p3132_p7, %p3131_p6 }
  0x17   :  { %p3134_p9 = pnand %p3133_p8, %p3127_p5 }
  0x19   :  { %3137 = shalt.err (!%p3134_p9)
}
  0x1a   :  { %s3273_s19 = smov 128   ;;  %s3274_s20 = smov 8  }
  0x1b   :  { %64 = dma.hbm_to_vmem [thread:$0]  %s3884_s3, 2048, %s59_s15, [#allocation10], %s3273_s19, %s3273_s19, %s3274_s20  }
  0x1c   :  { %s3146_s1 = scalar_lea.vmem %s27_s17, 1024  ;;  %p3151_p11 = scmp.lt.s32.totalorder %s27_s17, %s27_s17 }
  0x1d   :  { %p3147_p10 = scmp.ne.s32.totalorder %s27_s17, %s3146_s1  ;;  %p3152_p12 = scmp.lt.s32.totalorder %s3146_s1, %s3146_s1 }
  0x1f   :  { %p3153_p13 = por %p3152_p12, %p3151_p11 }
  0x21   :  { %p3154_p0 = pnand %p3153_p13, %p3147_p10 }
  0x23   :  { %3157 = shalt.err (!%p3154_p0)
}
  0x24   :  { %32 = dma.hbm_to_vmem [thread:$0]  %s3881_s0, 1024, %s27_s17, [#allocation4], %s3273_s19, %s3273_s19, %s3274_s20  }
  0x25   :  { %s3275_s25 = smov [#allocation8]   ;;  %s3276_s27 = smov [#allocation11]  }
  0x26   :  { %s49_s26 = sshll.u32 %s3275_s25, 4  ;;  %s70_s3 = sshll.u32 %s3276_s27, 4  ;;  %s50_s26 = int_to_ptr.vmem [resolvable:$true] %s49_s26  ;;  %s71_s3 = int_to_ptr.vmem [resolvable:$true] %s70_s3 }
  0x27   :  { %s3166_s28 = scalar_lea.vmem %s50_s26, 128  ;;  %p3171_p2 = scmp.lt.s32.totalorder %s50_s26, %s50_s26 }
  0x28   :  { %p3167_p1 = scmp.ne.s32.totalorder %s50_s26, %s3166_s28  ;;  %p3172_p3 = scmp.lt.s32.totalorder %s3166_s28, %s3166_s28 }
  0x2a   :  { %p3173_p4 = por %p3172_p3, %p3171_p2 }
  0x2c   :  { %p3174_p5 = pnand %p3173_p4, %p3167_p1 }
  0x2e   :  { %3177 = shalt.err (!%p3174_p5)
}
  0x2f   :  { %52 = dma.hbm_to_vmem [thread:$0]  %s3883_s2, 128, %s50_s26, [#allocation7]  }
  0x30   :  { %s3186_s10 = scalar_lea.vmem %s71_s3, 2048  ;;  %p3191_p7 = scmp.lt.s32.totalorder %s71_s3, %s71_s3 }
  0x31   :  { %p3187_p6 = scmp.ne.s32.totalorder %s71_s3, %s3186_s10  ;;  %p3192_p8 = scmp.lt.s32.totalorder %s3186_s10, %s3186_s10 }
  0x33   :  { %p3193_p9 = por %p3192_p8, %p3191_p7 }
  0x35   :  { %p3194_p10 = pnand %p3193_p9, %p3187_p6 }
  0x37   :  { %3197 = shalt.err (!%p3194_p10)
}
  0x38   :  { %76 = dma.hbm_to_vmem [thread:$0]  %s3885_s4, 2048, %s71_s3, [#allocation10], %s3273_s19, %s3273_s19, %s3274_s20  }
  0x39   :  { %s3277_s12 = smov [#allocation12]  }
  0x3a   :  { %s84_s13 = sshll.u32 %s3277_s12, 4  ;;  %s85_s13 = int_to_ptr.vmem [resolvable:$true] %s84_s13 }
  0x3b   :  { %s3206_s14 = scalar_lea.vmem %s85_s13, 2048  ;;  %p3211_p12 = scmp.lt.s32.totalorder %s85_s13, %s85_s13 }
  0x3c   :  { %p3207_p11 = scmp.ne.s32.totalorder %s85_s13, %s3206_s14  ;;  %p3212_p13 = scmp.lt.s32.totalorder %s3206_s14, %s3206_s14 }
  0x3e   :  { %p3213_p0 = por %p3212_p13, %p3211_p12 }
  0x40   :  { %p3214_p1 = pnand %p3213_p0, %p3207_p11 }
  0x42   :  { %3217 = shalt.err (!%p3214_p1)
}
  0x43   :  { %90 = dma.hbm_to_vmem [thread:$0]  %s3887_s6, 2048, %s85_s13, [#allocation13], %s3273_s19, %s3273_s19, %s3274_s20  }
  0x44   :  { %3258 = dma.done.wait [#allocation4], 1024  }
  0x45   :  { %3259 = vsyncadd [#allocation4], 4294966272 }
  0x46   :  { %3260 = dma.done.wait [#allocation7], 256  }
  0x47   :  { %3261 = vsyncadd [#allocation7], 4294967040 }
  0x48   :  { %3262 = dma.done.wait [#allocation10], 4096  }
  0x49   :  { %3263 = vsyncadd [#allocation10], 4294963200 }
  0x4a   :  { %3264 = dma.done.wait [#allocation13], 2048  }
  0x4b   :  { %3265 = vsyncadd [#allocation13], 4294965248  ;;  %v3278_v0 = vmov 0.0   ;;  %vm3279_vm0 = vmmov 0   ;;  %v3366_v1 = vld [vmem:[#allocation9 + $0x78] sm:$0xff]  ;;  %v3368_v2 = vld [vmem:[#allocation9 + $0x70] sm:$0xff] }
  0x4c   :  { %2557 = vmatprep.subr.mxu1 %v3278_v0  ;;  %2589 = vmatprep.mubr.msk.f32.mxu1 %vm3279_vm0, %v3278_v0  ;;  %v125_v3 = vld [vmem:[#allocation8] sm:$0xff]  ;;  %vm126_vm1 = vcmask 64512   ;;  %v3372_v4 = vld [vmem:[#allocation9 + $0x68] sm:$0xff]  ;;  %v117_v5 = vld [vmem:[#allocation3] sm:$0xff]  ;;  %vm409_vm2 = vcmask 1041409   ;;  %vm412_vm3 = vcmask 1042434  }
  0x4d   :  { %2558 = vmatpush3.msra.mxu1 %v3366_v1  ;;  %2543 = vmatprep.subr.mxu0 %v125_v3  ;;  %v118_v6 = vld [vmem:[#allocation3 + $0x8] sm:$0xff]  ;;  %v119_v7 = vld [vmem:[#allocation3 + $0x10] sm:$0xff]  ;;  %v120_v10 = vld [vmem:[#allocation3 + $0x18] sm:$0xff]  ;;  %vm415_vm4 = vcmask 1043459   ;;  %vm418_vm5 = vcmask 1044484   ;;  %vm421_vm6 = vcmask 1045509  }
  0x4e   :  { %2559 = vmatprep.subr.mxu1 %v3278_v0  ;;  %2544 = vmatpush3.msra.mxu0 %v125_v3  ;;  %v3376_v8 = vld [vmem:[#allocation9 + $0x60] sm:$0xff]  ;;  %v3382_v9 = vld [vmem:[#allocation9 + $0x58] sm:$0xff]  ;;  %v121_v11 = vld [vmem:[#allocation3 + $0x20] sm:$0xff]  ;;  %v3280_v3 = vmov 1966171168   ;;  %vm424_vm7 = vcmask 1046534  }
  0x4f   :  { %2560 = vmatpush3.msra.mxu1 %v3368_v2  ;;  %2545 = vmatprep.mubr.msk.f32.mxu0 %vm126_vm1, %v117_v5  ;;  %v3388_v12 = vld [vmem:[#allocation9 + $0x50] sm:$0xff]  ;;  %v3394_v13 = vld [vmem:[#allocation9 + $0x48] sm:$0xff]  ;;  %v122_v14 = vld [vmem:[#allocation3 + $0x28] sm:$0xff]  ;;  %v434_v5 = vunpack.c.l.s4 %v3280_v3  ;;  %vm427_vm8 = vcmask 1047559  }
  0x50   :  { %2561 = vmatprep.subr.mxu1 %v3278_v0  ;;  %2546 = vmatmul.mubr.msk.f32.vlgmr.msra.gmra.mxu0 %vm126_vm1, %v118_v6  ;;  %v123_v15 = vld [vmem:[#allocation3 + $0x30] sm:$0xff]  ;;  %v3406_v17 = vld [vmem:[#allocation9 + $0x38] sm:$0xff]  ;;  %v124_v18 = vld [vmem:[#allocation3 + $0x38] sm:$0xff] }
  0x51   :  { %2562 = vmatpush3.msra.mxu1 %v3372_v4  ;;  %2548 = vmatprep.mubr.msk.f32.mxu0 %vm126_vm1, %v119_v7  ;;  %v3400_v16 = vld [vmem:[#allocation9 + $0x40] sm:$0xff]  ;;  %v3412_v19 = vld [vmem:[#allocation9 + $0x30] sm:$0xff]  ;;  %v3418_v20 = vld [vmem:[#allocation9 + $0x28] sm:$0xff] }
  0x52   :  { %2563 = vmatprep.subr.mxu1 %v3278_v0  ;;  %2592 = vmatprep.subr.mxu0 %v3278_v0  ;;  %v3424_v21 = vld [vmem:[#allocation9 + $0x20] sm:$0xff]  ;;  %v3430_v22 = vld [vmem:[#allocation9 + $0x18] sm:$0xff]  ;;  %v3436_v23 = vld [vmem:[#allocation9 + $0x10] sm:$0xff] }
  0x53   :  { %2564 = vmatpush3.msra.mxu1 %v3376_v8  ;;  %2593 = vmatpush3.msra.mxu0 %v3366_v1  ;;  %v3442_v24 = vld [vmem:[#allocation9 + $0x8] sm:$0xff]  ;;  %v3448_v25 = vld [vmem:[#allocation9] sm:$0xff]  ;;  %v3452_v26 = vld [vmem:[#allocation6] sm:$0xff] }
  0x54   :  { %2565 = vmatprep.subr.mxu1 %v3278_v0  ;;  %2549 = vmatmul.mubr.msk.f32.gmra.mxu0 %vm126_vm1, %v120_v10  ;;  %v436_v10 = vlaneseq }
  0x55   :  { %2566 = vmatpush3.msra.mxu1 %v3382_v9  ;;  %2551 = vmatprep.mubr.msk.f32.mxu0 %vm126_vm1, %v121_v11 }
  0x56   :  { %2567 = vmatprep.subr.mxu1 %v3278_v0  ;;  %2594 = vmatprep.subr.mxu0 %v3278_v0 }
  0x57   :  { %2568 = vmatpush3.msra.mxu1 %v3388_v12  ;;  %2595 = vmatpush3.msra.mxu0 %v3368_v2 }
  0x58   :  { %2569 = vmatprep.subr.mxu1 %v3278_v0  ;;  %2552 = vmatmul.mubr.msk.f32.gmra.mxu0 %vm126_vm1, %v122_v14 }
  0x59   :  { %2570 = vmatpush3.msra.mxu1 %v3394_v13  ;;  %2554 = vmatprep.mubr.msk.f32.mxu0 %vm126_vm1, %v123_v15 }
  0x5a   :  { %2571 = vmatprep.subr.mxu1 %v3278_v0  ;;  %2596 = vmatprep.subr.mxu0 %v3278_v0 }
  0x5b   :  { %2572 = vmatpush3.msra.mxu1 %v3400_v16  ;;  %2597 = vmatpush3.msra.mxu0 %v3372_v4 }
  0x5c   :  { %2573 = vmatprep.subr.mxu1 %v3278_v0  ;;  %2555 = vmatmul.mubr.msk.f32.gmra.mxu0 %vm126_vm1, %v124_v18 }
  0x5d   :  { %2574 = vmatpush3.msra.mxu1 %v3406_v17  ;;  %2598 = vmatprep.subr.mxu0 %v3278_v0 }
  0x5e   :  { %2575 = vmatprep.subr.mxu1 %v3278_v0  ;;  %2599 = vmatpush3.msra.mxu0 %v3376_v8 }
  0x5f   :  { %2576 = vmatpush3.msra.mxu1 %v3412_v19  ;;  %2600 = vmatprep.subr.mxu0 %v3278_v0 }
  0x60   :  { %2577 = vmatprep.subr.mxu1 %v3278_v0  ;;  %2601 = vmatpush3.msra.mxu0 %v3382_v9 }
  0x61   :  { %2578 = vmatpush3.msra.mxu1 %v3418_v20  ;;  %2602 = vmatprep.subr.mxu0 %v3278_v0 }
  0x62   :  { %2579 = vmatprep.subr.mxu1 %v3278_v0  ;;  %2603 = vmatpush3.msra.mxu0 %v3388_v12 }
  0x63   :  { %2580 = vmatpush3.msra.mxu1 %v3424_v21  ;;  %2604 = vmatprep.subr.mxu0 %v3278_v0 }
  0x64   :  { %2581 = vmatprep.subr.mxu1 %v3278_v0  ;;  %2605 = vmatpush3.msra.mxu0 %v3394_v13 }
  0x65   :  { %2582 = vmatpush3.msra.mxu1 %v3430_v22  ;;  %2606 = vmatprep.subr.mxu0 %v3278_v0 }
  0x66   :  { %2583 = vmatprep.subr.mxu1 %v3278_v0  ;;  %2607 = vmatpush3.msra.mxu0 %v3400_v16 }
  0x67   :  { %2584 = vmatpush3.msra.mxu1 %v3436_v23  ;;  %2608 = vmatprep.subr.mxu0 %v3278_v0 }
  0x68   :  { %2585 = vmatprep.subr.mxu1 %v3278_v0  ;;  %2609 = vmatpush3.msra.mxu0 %v3406_v17 }
  0x69   :  { %2586 = vmatpush3.msra.mxu1 %v3442_v24  ;;  %2610 = vmatprep.subr.mxu0 %v3278_v0 }
  0x6a   :  { %2587 = vmatprep.subr.mxu1 %v3278_v0  ;;  %2611 = vmatpush3.msra.mxu0 %v3412_v19 }
  0x6b   :  { %2588 = vmatpush3.msra.mxu1 %v3448_v25  ;;  %2612 = vmatprep.subr.mxu0 %v3278_v0 }
  0x6c   :  { %2590 = vmatmul.mubr.f32.vlgmr.msra.gmra.mxu1 %v3452_v26  ;;  %2613 = vmatpush3.msra.mxu0 %v3418_v20 }
  0x6d   :  { %2624 = vmatprep.mubr.msk.f32.mxu0 %vm3279_vm0, %v3278_v0  ;;  %2614 = vmatprep.subr.mxu0 %v3278_v0 }
  0x6e   :  { %2627 = vmatprep.subr.mxu1 %v3278_v0  ;;  %2615 = vmatpush3.msra.mxu0 %v3424_v21 }
  0x6f   :  { %2628 = vmatpush3.msra.mxu1 %v3366_v1  ;;  %2616 = vmatprep.subr.mxu0 %v3278_v0 }
  0x70   :  { %2629 = vmatprep.subr.mxu1 %v3278_v0  ;;  %2617 = vmatpush3.msra.mxu0 %v3430_v22 }
  0x71   :  { %2630 = vmatpush3.msra.mxu1 %v3368_v2  ;;  %2618 = vmatprep.subr.mxu0 %v3278_v0 }
  0x72   :  { %2631 = vmatprep.subr.mxu1 %v3278_v0  ;;  %2619 = vmatpush3.msra.mxu0 %v3436_v23 }
  0x73   :  { %2632 = vmatpush3.msra.mxu1 %v3372_v4  ;;  %2620 = vmatprep.subr.mxu0 %v3278_v0 }
  0x74   :  { %2633 = vmatprep.subr.mxu1 %v3278_v0  ;;  %2621 = vmatpush3.msra.mxu0 %v3442_v24 }
  0x75   :  { %2634 = vmatpush3.msra.mxu1 %v3376_v8  ;;  %2622 = vmatprep.subr.mxu0 %v3278_v0 }
  0x76   :  { %2635 = vmatprep.subr.mxu1 %v3278_v0  ;;  %2623 = vmatpush3.msra.mxu0 %v3448_v25 }
  0x77   :  { %2636 = vmatpush3.msra.mxu1 %v3382_v9  ;;  %2659 = vmatprep.mubr.msk.f32.mxu1 %vm3279_vm0, %v3278_v0 }
  0x78   :  { %2637 = vmatprep.subr.mxu1 %v3278_v0  ;;  %2662 = vmatprep.subr.mxu0 %v3278_v0 }
  0x79   :  { %2638 = vmatpush3.msra.mxu1 %v3388_v12 }
  0x7a   :  { %2639 = vmatprep.subr.mxu1 %v3278_v0 }
  0x7b   :  { %2640 = vmatpush3.msra.mxu1 %v3394_v13 }
  0x7c   :  { %2641 = vmatprep.subr.mxu1 %v3278_v0 }
  0x7d   :  { %2642 = vmatpush3.msra.mxu1 %v3400_v16 }
  0x7e   :  { %2643 = vmatprep.subr.mxu1 %v3278_v0 }
  0x7f   :  { %2644 = vmatpush3.msra.mxu1 %v3406_v17 }
  0x80   :  { %2645 = vmatprep.subr.mxu1 %v3278_v0 }
  0x81   :  { %2646 = vmatpush3.msra.mxu1 %v3412_v19 }
  0x82   :  { %2647 = vmatprep.subr.mxu1 %v3278_v0 }
  0x83   :  { %2648 = vmatpush3.msra.mxu1 %v3418_v20 }
  0x84   :  { %2649 = vmatprep.subr.mxu1 %v3278_v0 }
  0x85   :  { %2650 = vmatpush3.msra.mxu1 %v3424_v21 }
  0x86   :  { %2651 = vmatprep.subr.mxu1 %v3278_v0 }
  0x87   :  { %2652 = vmatpush3.msra.mxu1 %v3430_v22 }
  0x88   :  { %2653 = vmatprep.subr.mxu1 %v3278_v0 }
  0x89   :  { %2654 = vmatpush3.msra.mxu1 %v3436_v23 }
  0x8a   :  { %2655 = vmatprep.subr.mxu1 %v3278_v0 }
  0x8b   :  { %2656 = vmatpush3.msra.mxu1 %v3442_v24 }
  0x8c   :  { %2657 = vmatprep.subr.mxu1 %v3278_v0 }
  0x8d   :  { %2658 = vmatpush3.msra.mxu1 %v3448_v25 }
  0x8e   :  { %2697 = vmatprep.subr.mxu1 %v3278_v0 }
 0x110   :  { %v2547_v27 = vpop.f32.mrf.mxu0 }
 0x111   :  { %257 = vst [vmem:[#allocation2 + $0x8] sm:$0xff] %v2547_v27 }
 0x112   :  { %v217_v28 = vpop.f32.mrf.mxu0 }
 0x113   :  { %256 = vst [vmem:[#allocation2] sm:$0xff] %v217_v28 }
 0x114   :  { %v2550_v29 = vpop.f32.mrf.mxu0 }
 0x115   :  { %259 = vst [vmem:[#allocation2 + $0x18] sm:$0xff] %v2550_v29 }
 0x116   :  { %v227_v30 = vpop.f32.mrf.mxu0 }
 0x117   :  { %258 = vst [vmem:[#allocation2 + $0x10] sm:$0xff] %v227_v30 }
 0x118   :  { %v2553_v31 = vpop.f32.mrf.mxu0  ;;  %v282_v36 = vld [vmem:[#allocation2 + $0x8] sm:$0x1]  ;;  %v498_v3 = vld [vmem:[#allocation2 + $0x9] sm:$0x1] }
 0x119   :  { %261 = vst [vmem:[#allocation2 + $0x28] sm:$0xff] %v2553_v31 }
 0x11a   :  { %v237_v32 = vpop.f32.mrf.mxu0  ;;  %v281_v35 = vld [vmem:[#allocation2] sm:$0x1] }
 0x11b   :  { %260 = vst [vmem:[#allocation2 + $0x20] sm:$0xff] %v237_v32 }
 0x11c   :  { %v2556_v33 = vpop.f32.mrf.mxu0  ;;  %v284_v37 = vld [vmem:[#allocation2 + $0x18] sm:$0x1] }
 0x11d   :  { %263 = vst [vmem:[#allocation2 + $0x38] sm:$0xff] %v2556_v33 }
 0x11e   :  { %v247_v34 = vpop.f32.mrf.mxu0  ;;  %v283_v44 = vld [vmem:[#allocation2 + $0x10] sm:$0x1] }
 0x11f   :  { %262 = vst [vmem:[#allocation2 + $0x30] sm:$0xff] %v247_v34  ;;  %v435_v34 = vunpack.c.0.s8 %v434_v5 }
 0x120   :  { %v286_v45 = vld [vmem:[#allocation2 + $0x28] sm:$0x1] }
 0x122   :  { %v285_v39 = vld [vmem:[#allocation2 + $0x20] sm:$0x1] }
 0x124   :  { %v288_v55 = vld [vmem:[#allocation2 + $0x38] sm:$0x1] }
 0x126   :  { %v287_v50 = vld [vmem:[#allocation2 + $0x30] sm:$0x1] }
 0x12c   :  { %v355_v38 = vpop.f32.mrf.mxu1 }
 0x12d   :  { %v360_v40 = vrot.slane %v355_v38, 1  ;;  %v361_v41 = vrot.slane %v355_v38, 2  ;;  %v362_v42 = vrot.slane %v355_v38, 3  ;;  %v363_v43 = vrot.slane %v355_v38, 4 }
 0x12e   :  { %v364_v46 = vrot.slane %v355_v38, 5  ;;  %v365_v47 = vrot.slane %v355_v38, 6  ;;  %v375_v48 = vadd.f32 %v355_v38, %v281_v35  ;;  %v2591_v49 = vpop.f32.mrf.mxu1  ;;  %v366_v51 = vrot.slane %v355_v38, 7 }
 0x12f   :  { %v376_v52 = vadd.f32 %v360_v40, %v282_v36  ;;  %v377_v53 = vadd.f32 %v361_v41, %v283_v44  ;;  %v378_v54 = vadd.f32 %v362_v42, %v284_v37  ;;  %v379_v56 = vadd.f32 %v363_v43, %v285_v39 }
 0x130   :  { %2938 = vtanh.f32 %v375_v48  ;;  %v380_v57 = vadd.f32 %v364_v46, %v286_v45  ;;  %v381_v58 = vadd.f32 %v365_v47, %v287_v50  ;;  %v382_v59 = vadd.f32 %v366_v51, %v288_v55 }
 0x131   :  { %2940 = vtanh.f32 %v376_v52  ;;  %v437_v39 = vshrl.u32 %v436_v10, 7  ;;  %v383_v43 = vmul.f32 0.5, %v3452_v26 }
 0x132   :  { %2942 = vtanh.f32 %v377_v53 }
 0x133   :  { %2944 = vtanh.f32 %v378_v54  ;;  %v3517_v49 = vsub.s32 %v435_v34, %v437_v39  ;;  %v503_v39 = vld [vmem:[#allocation2 + $0x31] sm:$0x1] }
 0x134   :  { %2946 = vtanh.f32 %v379_v56 }
 0x135   :  { %2948 = vtanh.f32 %v380_v57 }
 0x136   :  { %2950 = vtanh.f32 %v381_v58 }
 0x137   :  { %2952 = vtanh.f32 %v382_v59 }
 0x13d   :  { %v2939_v60 = vpop.eup %2938 }
 0x13e   :  { %v2941_v61 = vpop.eup %2940  ;;  %v392_v14 = vmul.f32 0.5, %v2939_v60 }
 0x13f   :  { %v2943_v62 = vpop.eup %2942  ;;  %v393_v63 = vmul.f32 0.5, %v2941_v61 }
 0x140   :  { %v2945_v6 = vpop.eup %2944  ;;  %v394_v7 = vmul.f32 0.5, %v2943_v62 }
 0x141   :  { %v2947_v11 = vpop.eup %2946  ;;  %v395_v15 = vmul.f32 0.5, %v2945_v6  ;;  %v408_v18 = vrot.slane %v393_v63, 7  ;;  %v497_v6 = vld [vmem:[#allocation2 + $0x1] sm:$0x1] }
 0x142   :  { %v2949_v27 = vpop.eup %2948  ;;  %v411_v28 = vrot.slane %v394_v7, 6  ;;  %v396_v29 = vmul.f32 0.5, %v2947_v11 }
 0x143   :  { %v2951_v30 = vpop.eup %2950  ;;  %v414_v31 = vrot.slane %v395_v15, 5  ;;  %v397_v32 = vmul.f32 0.5, %v2949_v27  ;;  %v410_v33 = vsel %vm409_vm2, %v408_v18, %v392_v14  ;;  %v499_v15 = vld [vmem:[#allocation2 + $0x11] sm:$0x1]  ;;  %v500_v18 = vld [vmem:[#allocation2 + $0x19] sm:$0x1] }
 0x144   :  { %v2953_v35 = vpop.eup %2952  ;;  %v398_v36 = vmul.f32 0.5, %v2951_v30  ;;  %v413_v37 = vsel %vm412_vm3, %v411_v28, %v410_v33  ;;  %v417_v38 = vrot.slane %v396_v29, 4 }
 0x145   :  { %v399_v40 = vmul.f32 0.5, %v2953_v35  ;;  %v416_v41 = vsel %vm415_vm4, %v414_v31, %v413_v37  ;;  %v420_v42 = vrot.slane %v397_v32, 3  ;;  %v501_v31 = vld [vmem:[#allocation2 + $0x21] sm:$0x1] }
 0x146   :  { %v419_v44 = vsel %vm418_vm5, %v417_v38, %v416_v41  ;;  %v423_v45 = vrot.slane %v398_v36, 2  ;;  %v502_v36 = vld [vmem:[#allocation2 + $0x29] sm:$0x1] }
 0x147   :  { %v422_v46 = vsel %vm421_vm6, %v420_v42, %v419_v44  ;;  %v426_v47 = vrot.slane %v399_v40, 1  ;;  %v504_v40 = vld [vmem:[#allocation2 + $0x39] sm:$0x1] }
 0x148   :  { %v425_v48 = vsel %vm424_vm7, %v423_v45, %v422_v46 }
 0x149   :  { %v428_v50 = vsel %vm427_vm8, %v426_v47, %v425_v48 }
 0x14a   :  { %v3520_v51 = vadd.f32 %v428_v50, %v383_v43 }
 0x14c   :  { %v432_v52 = vcombine.high %v3520_v51, %v3520_v51  ;;  %v439_v26 = vrot.slane %v3520_v51, %v3517_v49  ;;  %2625 = vmatmul.mubr.f32.vlgmr.msra.gmra.mxu0 %v3520_v51 }
 0x14d   :  { %2663 = vmatpush3.msra.mxu0 %v3366_v1  ;;  %2694 = vmatprep.mubr.msk.f32.mxu0 %vm3279_vm0, %v3278_v0 }
 0x14e   :  { %v446_v53 = vrot.slane %v432_v52, %v3517_v49  ;;  %v447_v54 = vcombine.high %v439_v26, %v439_v26  ;;  %v455_v55 = vrot.slane %v439_v26, %v3517_v49  ;;  %2316 = vst.sshfl [vmem:[#allocation2] sm:$0x1 pattern:$0x73625140] %v439_v26  ;;  %2664 = vmatprep.subr.mxu0 %v3278_v0 }
 0x14f   :  { %2665 = vmatpush3.msra.mxu0 %v3368_v2 }
 0x150   :  { %v448_v56 = vcombine.high %v446_v53, %v446_v53  ;;  %v462_v57 = vrot.slane %v446_v53, %v3517_v49  ;;  %v469_v58 = vrot.slane %v447_v54, %v3517_v49  ;;  %v477_v59 = vcombine.high %v455_v55, %v455_v55  ;;  %2317 = vst.sshfl [vmem:[#allocation2 + $0x8] sm:$0x1 pattern:$0x73625140] %v447_v54 }
 0x151   :  { %2318 = vst.sshfl [vmem:[#allocation2 + $0x20] sm:$0x1 pattern:$0x73625140] %v446_v53  ;;  %2666 = vmatprep.subr.mxu0 %v3278_v0 }
 0x152   :  { %2667 = vmatpush3.msra.mxu0 %v3372_v4  ;;  %v476_v60 = vrot.slane %v448_v56, %v3517_v49  ;;  %v478_v61 = vcombine.high %v462_v57, %v462_v57  ;;  %v479_v62 = vcombine.high %v469_v58, %v469_v58  ;;  %491 = vst [vmem:[#allocation2 + $0x10] sm:$0x1] %v477_v59  ;;  %2319 = vst.sshfl [vmem:[#allocation2 + $0x28] sm:$0x1 pattern:$0x73625140] %v448_v56 }
 0x153   :  { %2668 = vmatprep.subr.mxu0 %v3278_v0 }
 0x154   :  { %2669 = vmatpush3.msra.mxu0 %v3376_v8  ;;  %v480_v63 = vcombine.high %v476_v60, %v476_v60  ;;  %492 = vst [vmem:[#allocation2 + $0x18] sm:$0x1] %v479_v62  ;;  %495 = vst [vmem:[#allocation2 + $0x30] sm:$0x1] %v478_v61 }
 0x155   :  { %2670 = vmatprep.subr.mxu0 %v3278_v0 }
 0x156   :  { %2671 = vmatpush3.msra.mxu0 %v3382_v9  ;;  %496 = vst [vmem:[#allocation2 + $0x38] sm:$0x1] %v480_v63 }
 0x157   :  { %2672 = vmatprep.subr.mxu0 %v3278_v0 }
 0x158   :  { %2673 = vmatpush3.msra.mxu0 %v3388_v12 }
 0x159   :  { %2674 = vmatprep.subr.mxu0 %v3278_v0 }
 0x15a   :  { %2675 = vmatpush3.msra.mxu0 %v3394_v13 }
 0x15b   :  { %2676 = vmatprep.subr.mxu0 %v3278_v0 }
 0x15c   :  { %2677 = vmatpush3.msra.mxu0 %v3400_v16 }
 0x15d   :  { %2678 = vmatprep.subr.mxu0 %v3278_v0 }
 0x15e   :  { %2679 = vmatpush3.msra.mxu0 %v3406_v17 }
 0x15f   :  { %2680 = vmatprep.subr.mxu0 %v3278_v0 }
 0x160   :  { %2681 = vmatpush3.msra.mxu0 %v3412_v19 }
 0x161   :  { %2682 = vmatprep.subr.mxu0 %v3278_v0 }
 0x162   :  { %2683 = vmatpush3.msra.mxu0 %v3418_v20 }
 0x163   :  { %2684 = vmatprep.subr.mxu0 %v3278_v0 }
 0x164   :  { %2685 = vmatpush3.msra.mxu0 %v3424_v21 }
 0x165   :  { %2686 = vmatprep.subr.mxu0 %v3278_v0 }
 0x166   :  { %2687 = vmatpush3.msra.mxu0 %v3430_v22 }
 0x167   :  { %2688 = vmatprep.subr.mxu0 %v3278_v0 }
 0x168   :  { %2689 = vmatpush3.msra.mxu0 %v3436_v23 }
 0x169   :  { %2690 = vmatprep.subr.mxu0 %v3278_v0 }
 0x16a   :  { %2691 = vmatpush3.msra.mxu0 %v3442_v24 }
 0x16b   :  { %2692 = vmatprep.subr.mxu0 %v3278_v0 }
 0x16c   :  { %2693 = vmatpush3.msra.mxu0 %v3448_v25 }
 0x16d   :  { %2732 = vmatprep.subr.mxu0 %v3278_v0 }
 0x20c   :  { %v571_v5 = vpop.f32.mrf.mxu0 }
 0x20d   :  { %v576_v7 = vrot.slane %v571_v5, 1  ;;  %v577_v10 = vrot.slane %v571_v5, 2  ;;  %v578_v11 = vrot.slane %v571_v5, 3  ;;  %v579_v14 = vrot.slane %v571_v5, 4 }
 0x20e   :  { %v580_v27 = vrot.slane %v571_v5, 5  ;;  %v581_v28 = vrot.slane %v571_v5, 6  ;;  %v591_v29 = vadd.f32 %v571_v5, %v497_v6  ;;  %v2626_v30 = vpop.f32.mrf.mxu0  ;;  %v582_v35 = vrot.slane %v571_v5, 7 }
 0x20f   :  { %v592_v32 = vadd.f32 %v576_v7, %v498_v3  ;;  %v593_v33 = vadd.f32 %v577_v10, %v499_v15  ;;  %v594_v34 = vadd.f32 %v578_v11, %v500_v18  ;;  %v595_v37 = vadd.f32 %v579_v14, %v501_v31 }
 0x210   :  { %2954 = vtanh.f32 %v591_v29  ;;  %v596_v38 = vadd.f32 %v580_v27, %v502_v36  ;;  %v597_v41 = vadd.f32 %v581_v28, %v503_v39  ;;  %v598_v42 = vadd.f32 %v582_v35, %v504_v40 }
 0x211   :  { %2956 = vtanh.f32 %v592_v32  ;;  %v599_v18 = vmul.f32 0.5, %v3520_v51 }
 0x212   :  { %2958 = vtanh.f32 %v593_v33 }
 0x213   :  { %2960 = vtanh.f32 %v594_v34 }
 0x214   :  { %2962 = vtanh.f32 %v595_v37 }
 0x215   :  { %2964 = vtanh.f32 %v596_v38 }
 0x216   :  { %2966 = vtanh.f32 %v597_v41 }
 0x217   :  { %2968 = vtanh.f32 %v598_v42  ;;  %v707_v42 = vld [vmem:[#allocation2 + $0xa] sm:$0x1] }
 0x21d   :  { %v2955_v43 = vpop.eup %2954 }
 0x21e   :  { %v2957_v44 = vpop.eup %2956  ;;  %v608_v52 = vmul.f32 0.5, %v2955_v43 }
 0x21f   :  { %v2959_v45 = vpop.eup %2958  ;;  %v609_v46 = vmul.f32 0.5, %v2957_v44  ;;  %v706_v44 = vld [vmem:[#allocation2 + $0x2] sm:$0x1] }
 0x220   :  { %v2961_v47 = vpop.eup %2960  ;;  %v610_v48 = vmul.f32 0.5, %v2959_v45 }
 0x221   :  { %v2963_v50 = vpop.eup %2962  ;;  %v624_v26 = vrot.slane %v609_v46, 7  ;;  %v611_v53 = vmul.f32 0.5, %v2961_v47 }
 0x222   :  { %v2965_v54 = vpop.eup %2964  ;;  %v612_v55 = vmul.f32 0.5, %v2963_v50  ;;  %v626_v56 = vrot.slane %v610_v48, 6  ;;  %v708_v50 = vld [vmem:[#allocation2 + $0x12] sm:$0x1] }
 0x223   :  { %v2967_v57 = vpop.eup %2966  ;;  %v613_v58 = vmul.f32 0.5, %v2965_v54  ;;  %v625_v59 = vsel %vm409_vm2, %v624_v26, %v608_v52  ;;  %v628_v60 = vrot.slane %v611_v53, 5  ;;  %v709_v52 = vld [vmem:[#allocation2 + $0x1a] sm:$0x1] }
 0x224   :  { %v2969_v61 = vpop.eup %2968  ;;  %v614_v62 = vmul.f32 0.5, %v2967_v57  ;;  %v627_v63 = vsel %vm412_vm3, %v626_v56, %v625_v59  ;;  %v630_v3 = vrot.slane %v612_v55, 4  ;;  %v710_v56 = vld [vmem:[#allocation2 + $0x22] sm:$0x1] }
 0x225   :  { %v615_v5 = vmul.f32 0.5, %v2969_v61  ;;  %v629_v6 = vsel %vm415_vm4, %v628_v60, %v627_v63  ;;  %v632_v7 = vrot.slane %v613_v58, 3  ;;  %v711_v61 = vld [vmem:[#allocation2 + $0x2a] sm:$0x1] }
 0x226   :  { %v631_v10 = vsel %vm418_vm5, %v630_v3, %v629_v6  ;;  %v634_v11 = vrot.slane %v614_v62, 2  ;;  %v712_v3 = vld [vmem:[#allocation2 + $0x32] sm:$0x1] }
 0x227   :  { %v633_v14 = vsel %vm421_vm6, %v632_v7, %v631_v10  ;;  %v636_v15 = vrot.slane %v615_v5, 1  ;;  %v713_v5 = vld [vmem:[#allocation2 + $0x3a] sm:$0x1] }
 0x228   :  { %v635_v27 = vsel %vm424_vm7, %v634_v11, %v633_v14 }
 0x229   :  { %v637_v28 = vsel %vm427_vm8, %v636_v15, %v635_v27 }
 0x22a   :  { %v3574_v29 = vadd.f32 %v637_v28, %v599_v18 }
 0x22c   :  { %v641_v30 = vcombine.high %v3574_v29, %v3574_v29  ;;  %v648_v31 = vrot.slane %v3574_v29, %v3517_v49  ;;  %2660 = vmatmul.mubr.f32.vlgmr.msra.gmra.mxu1 %v3574_v29 }
 0x22d   :  { %2698 = vmatpush3.msra.mxu1 %v3366_v1  ;;  %2729 = vmatprep.mubr.msk.f32.mxu1 %vm3279_vm0, %v3278_v0 }
 0x22e   :  { %v655_v51 = vrot.slane %v641_v30, %v3517_v49  ;;  %v656_v32 = vcombine.high %v648_v31, %v648_v31  ;;  %v664_v33 = vrot.slane %v648_v31, %v3517_v49  ;;  %2320 = vst.sshfl [vmem:[#allocation2 + $0x1] sm:$0x1 pattern:$0x73625140] %v648_v31  ;;  %2699 = vmatprep.subr.mxu1 %v3278_v0 }
 0x22f   :  { %2700 = vmatpush3.msra.mxu1 %v3368_v2 }
 0x230   :  { %v657_v34 = vcombine.high %v655_v51, %v655_v51  ;;  %v671_v35 = vrot.slane %v655_v51, %v3517_v49  ;;  %v678_v36 = vrot.slane %v656_v32, %v3517_v49  ;;  %v686_v37 = vcombine.high %v664_v33, %v664_v33  ;;  %2321 = vst.sshfl [vmem:[#allocation2 + $0x9] sm:$0x1 pattern:$0x73625140] %v656_v32 }
 0x231   :  { %2322 = vst.sshfl [vmem:[#allocation2 + $0x21] sm:$0x1 pattern:$0x73625140] %v655_v51  ;;  %2701 = vmatprep.subr.mxu1 %v3278_v0 }
 0x232   :  { %2702 = vmatpush3.msra.mxu1 %v3372_v4  ;;  %v685_v38 = vrot.slane %v657_v34, %v3517_v49  ;;  %v687_v39 = vcombine.high %v671_v35, %v671_v35  ;;  %v688_v40 = vcombine.high %v678_v36, %v678_v36  ;;  %700 = vst [vmem:[#allocation2 + $0x11] sm:$0x1] %v686_v37  ;;  %2323 = vst.sshfl [vmem:[#allocation2 + $0x29] sm:$0x1 pattern:$0x73625140] %v657_v34 }
 0x233   :  { %2703 = vmatprep.subr.mxu1 %v3278_v0 }
 0x234   :  { %2704 = vmatpush3.msra.mxu1 %v3376_v8  ;;  %v689_v41 = vcombine.high %v685_v38, %v685_v38  ;;  %701 = vst [vmem:[#allocation2 + $0x19] sm:$0x1] %v688_v40  ;;  %704 = vst [vmem:[#allocation2 + $0x31] sm:$0x1] %v687_v39 }
 0x235   :  { %2705 = vmatprep.subr.mxu1 %v3278_v0 }
 0x236   :  { %2706 = vmatpush3.msra.mxu1 %v3382_v9  ;;  %705 = vst [vmem:[#allocation2 + $0x39] sm:$0x1] %v689_v41 }
 0x237   :  { %2707 = vmatprep.subr.mxu1 %v3278_v0 }
 0x238   :  { %2708 = vmatpush3.msra.mxu1 %v3388_v12 }
 0x239   :  { %2709 = vmatprep.subr.mxu1 %v3278_v0 }
 0x23a   :  { %2710 = vmatpush3.msra.mxu1 %v3394_v13 }
 0x23b   :  { %2711 = vmatprep.subr.mxu1 %v3278_v0 }
 0x23c   :  { %2712 = vmatpush3.msra.mxu1 %v3400_v16 }
 0x23d   :  { %2713 = vmatprep.subr.mxu1 %v3278_v0 }
 0x23e   :  { %2714 = vmatpush3.msra.mxu1 %v3406_v17 }
 0x23f   :  { %2715 = vmatprep.subr.mxu1 %v3278_v0 }
 0x240   :  { %2716 = vmatpush3.msra.mxu1 %v3412_v19 }
 0x241   :  { %2717 = vmatprep.subr.mxu1 %v3278_v0 }
 0x242   :  { %2718 = vmatpush3.msra.mxu1 %v3418_v20 }
 0x243   :  { %2719 = vmatprep.subr.mxu1 %v3278_v0 }
 0x244   :  { %2720 = vmatpush3.msra.mxu1 %v3424_v21 }
 0x245   :  { %2721 = vmatprep.subr.mxu1 %v3278_v0 }
 0x246   :  { %2722 = vmatpush3.msra.mxu1 %v3430_v22 }
 0x247   :  { %2723 = vmatprep.subr.mxu1 %v3278_v0 }
 0x248   :  { %2724 = vmatpush3.msra.mxu1 %v3436_v23 }
 0x249   :  { %2725 = vmatprep.subr.mxu1 %v3278_v0 }
 0x24a   :  { %2726 = vmatpush3.msra.mxu1 %v3442_v24 }
 0x24b   :  { %2727 = vmatprep.subr.mxu1 %v3278_v0 }
 0x24c   :  { %2728 = vmatpush3.msra.mxu1 %v3448_v25 }
 0x24d   :  { %2767 = vmatprep.subr.mxu1 %v3278_v0 }
 0x2ec   :  { %v780_v43 = vpop.f32.mrf.mxu1 }
 0x2ed   :  { %v785_v45 = vrot.slane %v780_v43, 1  ;;  %v786_v46 = vrot.slane %v780_v43, 2  ;;  %v787_v47 = vrot.slane %v780_v43, 3  ;;  %v788_v48 = vrot.slane %v780_v43, 4 }
 0x2ee   :  { %v789_v26 = vrot.slane %v780_v43, 5  ;;  %v790_v53 = vrot.slane %v780_v43, 6  ;;  %v800_v54 = vadd.f32 %v780_v43, %v706_v44  ;;  %v2661_v55 = vpop.f32.mrf.mxu1  ;;  %v791_v60 = vrot.slane %v780_v43, 7 }
 0x2ef   :  { %v801_v57 = vadd.f32 %v785_v45, %v707_v42  ;;  %v802_v58 = vadd.f32 %v786_v46, %v708_v50  ;;  %v803_v59 = vadd.f32 %v787_v47, %v709_v52  ;;  %v804_v62 = vadd.f32 %v788_v48, %v710_v56 }
 0x2f0   :  { %2970 = vtanh.f32 %v800_v54  ;;  %v805_v63 = vadd.f32 %v789_v26, %v711_v61  ;;  %v806_v6 = vadd.f32 %v790_v53, %v712_v3  ;;  %v807_v7 = vadd.f32 %v791_v60, %v713_v5 }
 0x2f1   :  { %2972 = vtanh.f32 %v801_v57  ;;  %v808_v52 = vmul.f32 0.5, %v3574_v29 }
 0x2f2   :  { %2974 = vtanh.f32 %v802_v58 }
 0x2f3   :  { %2976 = vtanh.f32 %v803_v59 }
 0x2f4   :  { %2978 = vtanh.f32 %v804_v62 }
 0x2f5   :  { %2980 = vtanh.f32 %v805_v63 }
 0x2f6   :  { %2982 = vtanh.f32 %v806_v6 }
 0x2f7   :  { %2984 = vtanh.f32 %v807_v7 }
 0x2fd   :  { %v2971_v10 = vpop.eup %2970 }
 0x2fe   :  { %v2973_v11 = vpop.eup %2972  ;;  %v817_v30 = vmul.f32 0.5, %v2971_v10 }
 0x2ff   :  { %v2975_v14 = vpop.eup %2974  ;;  %v818_v15 = vmul.f32 0.5, %v2973_v11  ;;  %v920_v11 = vld [vmem:[#allocation2 + $0x2b] sm:$0x1] }
 0x300   :  { %v2977_v18 = vpop.eup %2976  ;;  %v819_v27 = vmul.f32 0.5, %v2975_v14 }
 0x301   :  { %v2979_v28 = vpop.eup %2978  ;;  %v833_v31 = vrot.slane %v818_v15, 7  ;;  %v820_v51 = vmul.f32 0.5, %v2977_v18  ;;  %v921_v18 = vld [vmem:[#allocation2 + $0x33] sm:$0x1] }
 0x302   :  { %v2981_v32 = vpop.eup %2980  ;;  %v821_v33 = vmul.f32 0.5, %v2979_v28  ;;  %v835_v34 = vrot.slane %v819_v27, 6  ;;  %v922_v27 = vld [vmem:[#allocation2 + $0x3b] sm:$0x1] }
 0x303   :  { %v2983_v35 = vpop.eup %2982  ;;  %v822_v36 = vmul.f32 0.5, %v2981_v32  ;;  %v834_v37 = vsel %vm409_vm2, %v833_v31, %v817_v30  ;;  %v837_v38 = vrot.slane %v820_v51, 5 }
 0x304   :  { %v2985_v39 = vpop.eup %2984  ;;  %v823_v40 = vmul.f32 0.5, %v2983_v35  ;;  %v836_v41 = vsel %vm412_vm3, %v835_v34, %v834_v37  ;;  %v839_v42 = vrot.slane %v821_v33, 4 }
 0x305   :  { %v824_v43 = vmul.f32 0.5, %v2985_v39  ;;  %v838_v44 = vsel %vm415_vm4, %v837_v38, %v836_v41  ;;  %v841_v45 = vrot.slane %v822_v36, 3 }
 0x306   :  { %v840_v46 = vsel %vm418_vm5, %v839_v42, %v838_v44  ;;  %v843_v47 = vrot.slane %v823_v40, 2 }
 0x307   :  { %v842_v48 = vsel %vm421_vm6, %v841_v45, %v840_v46  ;;  %v845_v50 = vrot.slane %v824_v43, 1 }
 0x308   :  { %v844_v26 = vsel %vm424_vm7, %v843_v47, %v842_v48 }
 0x309   :  { %v846_v53 = vsel %vm427_vm8, %v845_v50, %v844_v26 }
 0x30a   :  { %v3628_v54 = vadd.f32 %v846_v53, %v808_v52 }
 0x30c   :  { %v850_v55 = vcombine.high %v3628_v54, %v3628_v54  ;;  %v857_v56 = vrot.slane %v3628_v54, %v3517_v49  ;;  %2695 = vmatmul.mubr.f32.vlgmr.msra.gmra.mxu0 %v3628_v54 }
 0x30d   :  { %2733 = vmatpush3.msra.mxu0 %v3366_v1  ;;  %2764 = vmatprep.mubr.msk.f32.mxu0 %vm3279_vm0, %v3278_v0 }
 0x30e   :  { %v864_v29 = vrot.slane %v850_v55, %v3517_v49  ;;  %v865_v57 = vcombine.high %v857_v56, %v857_v56  ;;  %v873_v58 = vrot.slane %v857_v56, %v3517_v49  ;;  %2324 = vst.sshfl [vmem:[#allocation2 + $0x2] sm:$0x1 pattern:$0x73625140] %v857_v56  ;;  %2734 = vmatprep.subr.mxu0 %v3278_v0 }
 0x30f   :  { %2735 = vmatpush3.msra.mxu0 %v3368_v2 }
 0x310   :  { %v866_v59 = vcombine.high %v864_v29, %v864_v29  ;;  %v880_v60 = vrot.slane %v864_v29, %v3517_v49  ;;  %v887_v61 = vrot.slane %v865_v57, %v3517_v49  ;;  %v895_v62 = vcombine.high %v873_v58, %v873_v58  ;;  %2325 = vst.sshfl [vmem:[#allocation2 + $0xa] sm:$0x1 pattern:$0x73625140] %v865_v57 }
 0x311   :  { %2326 = vst.sshfl [vmem:[#allocation2 + $0x22] sm:$0x1 pattern:$0x73625140] %v864_v29  ;;  %2736 = vmatprep.subr.mxu0 %v3278_v0 }
 0x312   :  { %2737 = vmatpush3.msra.mxu0 %v3372_v4  ;;  %v894_v1 = vrot.slane %v866_v59, %v3517_v49  ;;  %v896_v63 = vcombine.high %v880_v60, %v880_v60  ;;  %v897_v3 = vcombine.high %v887_v61, %v887_v61  ;;  %909 = vst [vmem:[#allocation2 + $0x12] sm:$0x1] %v895_v62  ;;  %2327 = vst.sshfl [vmem:[#allocation2 + $0x2a] sm:$0x1 pattern:$0x73625140] %v866_v59 }
 0x313   :  { %2738 = vmatprep.subr.mxu0 %v3278_v0  ;;  %v916_v4 = vld [vmem:[#allocation2 + $0xb] sm:$0x1]  ;;  %v1017_v59 = vmul.f32 0.5, %v3628_v54 }
 0x314   :  { %2739 = vmatpush3.msra.mxu0 %v3376_v8  ;;  %v898_v2 = vcombine.high %v894_v1, %v894_v1  ;;  %910 = vst [vmem:[#allocation2 + $0x1a] sm:$0x1] %v897_v3  ;;  %913 = vst [vmem:[#allocation2 + $0x32] sm:$0x1] %v896_v63  ;;  %v3689_v3 = vld [vmem:[#allocation9 + $0x78] sm:$0xff] }
 0x315   :  { %2740 = vmatprep.subr.mxu0 %v3278_v0 }
 0x316   :  { %2741 = vmatpush3.msra.mxu0 %v3382_v9  ;;  %914 = vst [vmem:[#allocation2 + $0x3a] sm:$0x1] %v898_v2  ;;  %v915_v9 = vld [vmem:[#allocation2 + $0x3] sm:$0x1] }
 0x317   :  { %2742 = vmatprep.subr.mxu0 %v3278_v0 }
 0x318   :  { %2743 = vmatpush3.msra.mxu0 %v3388_v12 }
 0x319   :  { %2744 = vmatprep.subr.mxu0 %v3278_v0 }
 0x31a   :  { %2745 = vmatpush3.msra.mxu0 %v3394_v13 }
 0x31b   :  { %2746 = vmatprep.subr.mxu0 %v3278_v0 }
 0x31c   :  { %2747 = vmatpush3.msra.mxu0 %v3400_v16 }
 0x31d   :  { %2748 = vmatprep.subr.mxu0 %v3278_v0 }
 0x31e   :  { %2749 = vmatpush3.msra.mxu0 %v3406_v17 }
 0x31f   :  { %2750 = vmatprep.subr.mxu0 %v3278_v0 }
 0x320   :  { %2751 = vmatpush3.msra.mxu0 %v3412_v19  ;;  %v917_v19 = vld [vmem:[#allocation2 + $0x13] sm:$0x1] }
 0x321   :  { %2752 = vmatprep.subr.mxu0 %v3278_v0 }
 0x322   :  { %2753 = vmatpush3.msra.mxu0 %v3418_v20  ;;  %v918_v20 = vld [vmem:[#allocation2 + $0x1b] sm:$0x1] }
 0x323   :  { %2754 = vmatprep.subr.mxu0 %v3278_v0 }
 0x324   :  { %2755 = vmatpush3.msra.mxu0 %v3424_v21 }
 0x325   :  { %2756 = vmatprep.subr.mxu0 %v3278_v0 }
 0x326   :  { %2757 = vmatpush3.msra.mxu0 %v3430_v22 }
 0x327   :  { %2758 = vmatprep.subr.mxu0 %v3278_v0 }
 0x328   :  { %2759 = vmatpush3.msra.mxu0 %v3436_v23 }
 0x329   :  { %2760 = vmatprep.subr.mxu0 %v3278_v0 }
 0x32a   :  { %2761 = vmatpush3.msra.mxu0 %v3442_v24  ;;  %v919_v24 = vld [vmem:[#allocation2 + $0x23] sm:$0x1] }
 0x32b   :  { %2762 = vmatprep.subr.mxu0 %v3278_v0 }
 0x32c   :  { %2763 = vmatpush3.msra.mxu0 %v3448_v25 }
 0x32d   :  { %2802 = vmatprep.subr.mxu0 %v3278_v0 }
 0x3cc   :  { %v989_v8 = vpop.f32.mrf.mxu0 }
 0x3cd   :  { %v994_v12 = vrot.slane %v989_v8, 1  ;;  %v995_v13 = vrot.slane %v989_v8, 2  ;;  %v996_v16 = vrot.slane %v989_v8, 3  ;;  %v997_v17 = vrot.slane %v989_v8, 4 }
 0x3ce   :  { %v998_v21 = vrot.slane %v989_v8, 5  ;;  %v999_v22 = vrot.slane %v989_v8, 6  ;;  %v1009_v23 = vadd.f32 %v989_v8, %v915_v9  ;;  %v2696_v5 = vpop.f32.mrf.mxu0  ;;  %v1000_v25 = vrot.slane %v989_v8, 7  ;;  %v3697_v8 = vld [vmem:[#allocation9 + $0x70] sm:$0xff] }
 0x3cf   :  { %v1010_v6 = vadd.f32 %v994_v12, %v916_v4  ;;  %v1011_v7 = vadd.f32 %v995_v13, %v917_v19  ;;  %v1012_v10 = vadd.f32 %v996_v16, %v918_v20  ;;  %v1013_v14 = vadd.f32 %v997_v17, %v919_v24  ;;  %v3703_v17 = vld [vmem:[#allocation9 + $0x68] sm:$0xff]  ;;  %v3712_v5 = vld [vmem:[#allocation9 + $0x58] sm:$0xff]  ;;  %v3716_v24 = vld [vmem:[#allocation9 + $0x50] sm:$0xff] }
 0x3d0   :  { %2986 = vtanh.f32 %v1009_v23  ;;  %v1014_v15 = vadd.f32 %v998_v21, %v920_v11  ;;  %v1015_v28 = vadd.f32 %v999_v22, %v921_v18  ;;  %v1016_v30 = vadd.f32 %v1000_v25, %v922_v27  ;;  %v3708_v22 = vld [vmem:[#allocation9 + $0x60] sm:$0xff]  ;;  %v3732_v25 = vld [vmem:[#allocation9 + $0x30] sm:$0xff]  ;;  %v3736_v11 = vld [vmem:[#allocation9 + $0x28] sm:$0xff] }
 0x3d1   :  { %2988 = vtanh.f32 %v1010_v6  ;;  %v3720_v6 = vld [vmem:[#allocation9 + $0x48] sm:$0xff]  ;;  %v3748_v18 = vld [vmem:[#allocation9 + $0x10] sm:$0xff] }
 0x3d2   :  { %2990 = vtanh.f32 %v1011_v7  ;;  %v3724_v7 = vld [vmem:[#allocation9 + $0x40] sm:$0xff]  ;;  %v3752_v27 = vld [vmem:[#allocation9 + $0x8] sm:$0xff] }
 0x3d3   :  { %2992 = vtanh.f32 %v1012_v10  ;;  %v3728_v10 = vld [vmem:[#allocation9 + $0x38] sm:$0xff] }
 0x3d4   :  { %2994 = vtanh.f32 %v1013_v14  ;;  %v3740_v14 = vld [vmem:[#allocation9 + $0x20] sm:$0xff] }
 0x3d5   :  { %2996 = vtanh.f32 %v1014_v15  ;;  %v3744_v15 = vld [vmem:[#allocation9 + $0x18] sm:$0xff] }
 0x3d6   :  { %2998 = vtanh.f32 %v1015_v28  ;;  %v3756_v28 = vld [vmem:[#allocation9] sm:$0xff] }
 0x3d7   :  { %3000 = vtanh.f32 %v1016_v30  ;;  %v1125_v30 = vld [vmem:[#allocation2 + $0xc] sm:$0x1] }
 0x3dd   :  { %v2987_v31 = vpop.eup %2986 }
 0x3de   :  { %v2989_v51 = vpop.eup %2988  ;;  %v1026_v37 = vmul.f32 0.5, %v2987_v31 }
 0x3df   :  { %v2991_v32 = vpop.eup %2990  ;;  %v1027_v33 = vmul.f32 0.5, %v2989_v51  ;;  %v1124_v51 = vld [vmem:[#allocation2 + $0x4] sm:$0x1] }
 0x3e0   :  { %v2993_v34 = vpop.eup %2992  ;;  %v1028_v35 = vmul.f32 0.5, %v2991_v32 }
 0x3e1   :  { %v2995_v36 = vpop.eup %2994  ;;  %v1042_v38 = vrot.slane %v1027_v33, 7  ;;  %v1029_v39 = vmul.f32 0.5, %v2993_v34 }
 0x3e2   :  { %v2997_v40 = vpop.eup %2996  ;;  %v1030_v41 = vmul.f32 0.5, %v2995_v36  ;;  %v1044_v42 = vrot.slane %v1028_v35, 6  ;;  %v1126_v36 = vld [vmem:[#allocation2 + $0x14] sm:$0x1] }
 0x3e3   :  { %v2999_v43 = vpop.eup %2998  ;;  %v1031_v44 = vmul.f32 0.5, %v2997_v40  ;;  %v1043_v45 = vsel %vm409_vm2, %v1042_v38, %v1026_v37  ;;  %v1046_v46 = vrot.slane %v1029_v39, 5  ;;  %v1127_v37 = vld [vmem:[#allocation2 + $0x1c] sm:$0x1] }
 0x3e4   :  { %v3001_v47 = vpop.eup %3000  ;;  %v1032_v48 = vmul.f32 0.5, %v2999_v43  ;;  %v1045_v50 = vsel %vm412_vm3, %v1044_v42, %v1043_v45  ;;  %v1048_v52 = vrot.slane %v1030_v41, 4  ;;  %v1128_v42 = vld [vmem:[#allocation2 + $0x24] sm:$0x1] }
 0x3e5   :  { %v1033_v26 = vmul.f32 0.5, %v3001_v47  ;;  %v1047_v53 = vsel %vm415_vm4, %v1046_v46, %v1045_v50  ;;  %v1050_v55 = vrot.slane %v1031_v44, 3  ;;  %v1129_v47 = vld [vmem:[#allocation2 + $0x2c] sm:$0x1] }
 0x3e6   :  { %v1049_v56 = vsel %vm418_vm5, %v1048_v52, %v1047_v53  ;;  %v1052_v29 = vrot.slane %v1032_v48, 2  ;;  %v1130_v52 = vld [vmem:[#allocation2 + $0x34] sm:$0x1] }
 0x3e7   :  { %v1051_v57 = vsel %vm421_vm6, %v1050_v55, %v1049_v56  ;;  %v1054_v58 = vrot.slane %v1033_v26, 1  ;;  %v1131_v26 = vld [vmem:[#allocation2 + $0x3c] sm:$0x1] }
 0x3e8   :  { %v1053_v60 = vsel %vm424_vm7, %v1052_v29, %v1051_v57 }
 0x3e9   :  { %v1055_v61 = vsel %vm427_vm8, %v1054_v58, %v1053_v60 }
 0x3ea   :  { %v3682_v62 = vadd.f32 %v1055_v61, %v1017_v59 }
 0x3ec   :  { %v1059_v1 = vcombine.high %v3682_v62, %v3682_v62  ;;  %v1066_v63 = vrot.slane %v3682_v62, %v3517_v49  ;;  %2730 = vmatmul.mubr.f32.vlgmr.msra.gmra.mxu1 %v3682_v62 }
 0x3ed   :  { %2768 = vmatpush3.msra.mxu1 %v3689_v3  ;;  %2799 = vmatprep.mubr.msk.f32.mxu1 %vm3279_vm0, %v3278_v0 }
 0x3ee   :  { %v1073_v54 = vrot.slane %v1059_v1, %v3517_v49  ;;  %v1074_v2 = vcombine.high %v1066_v63, %v1066_v63  ;;  %v1082_v4 = vrot.slane %v1066_v63, %v3517_v49  ;;  %2328 = vst.sshfl [vmem:[#allocation2 + $0x3] sm:$0x1 pattern:$0x73625140] %v1066_v63  ;;  %2769 = vmatprep.subr.mxu1 %v3278_v0 }
 0x3ef   :  { %2770 = vmatpush3.msra.mxu1 %v3697_v8 }
 0x3f0   :  { %v1075_v9 = vcombine.high %v1073_v54, %v1073_v54  ;;  %v1089_v12 = vrot.slane %v1073_v54, %v3517_v49  ;;  %v1096_v13 = vrot.slane %v1074_v2, %v3517_v49  ;;  %v1104_v16 = vcombine.high %v1082_v4, %v1082_v4  ;;  %2329 = vst.sshfl [vmem:[#allocation2 + $0xb] sm:$0x1 pattern:$0x73625140] %v1074_v2 }
 0x3f1   :  { %2330 = vst.sshfl [vmem:[#allocation2 + $0x23] sm:$0x1 pattern:$0x73625140] %v1073_v54  ;;  %2771 = vmatprep.subr.mxu1 %v3278_v0 }
 0x3f2   :  { %2772 = vmatpush3.msra.mxu1 %v3703_v17  ;;  %v1103_v19 = vrot.slane %v1075_v9, %v3517_v49  ;;  %v1105_v20 = vcombine.high %v1089_v12, %v1089_v12  ;;  %v1106_v21 = vcombine.high %v1096_v13, %v1096_v13  ;;  %1118 = vst [vmem:[#allocation2 + $0x13] sm:$0x1] %v1104_v16  ;;  %2331 = vst.sshfl [vmem:[#allocation2 + $0x2b] sm:$0x1 pattern:$0x73625140] %v1075_v9 }
 0x3f3   :  { %2773 = vmatprep.subr.mxu1 %v3278_v0 }
 0x3f4   :  { %2774 = vmatpush3.msra.mxu1 %v3708_v22  ;;  %v1107_v23 = vcombine.high %v1103_v19, %v1103_v19  ;;  %1119 = vst [vmem:[#allocation2 + $0x1b] sm:$0x1] %v1106_v21  ;;  %1122 = vst [vmem:[#allocation2 + $0x33] sm:$0x1] %v1105_v20 }
 0x3f5   :  { %2775 = vmatprep.subr.mxu1 %v3278_v0 }
 0x3f6   :  { %2776 = vmatpush3.msra.mxu1 %v3712_v5  ;;  %1123 = vst [vmem:[#allocation2 + $0x3b] sm:$0x1] %v1107_v23 }
 0x3f7   :  { %2777 = vmatprep.subr.mxu1 %v3278_v0 }
 0x3f8   :  { %2778 = vmatpush3.msra.mxu1 %v3716_v24 }
 0x3f9   :  { %2779 = vmatprep.subr.mxu1 %v3278_v0 }
 0x3fa   :  { %2780 = vmatpush3.msra.mxu1 %v3720_v6 }
 0x3fb   :  { %2781 = vmatprep.subr.mxu1 %v3278_v0 }
 0x3fc   :  { %2782 = vmatpush3.msra.mxu1 %v3724_v7 }
 0x3fd   :  { %2783 = vmatprep.subr.mxu1 %v3278_v0 }
 0x3fe   :  { %2784 = vmatpush3.msra.mxu1 %v3728_v10 }
 0x3ff   :  { %2785 = vmatprep.subr.mxu1 %v3278_v0 }
 0x400   :  { %2786 = vmatpush3.msra.mxu1 %v3732_v25 }
 0x401   :  { %2787 = vmatprep.subr.mxu1 %v3278_v0 }
 0x402   :  { %2788 = vmatpush3.msra.mxu1 %v3736_v11 }
 0x403   :  { %2789 = vmatprep.subr.mxu1 %v3278_v0 }
 0x404   :  { %2790 = vmatpush3.msra.mxu1 %v3740_v14 }
 0x405   :  { %2791 = vmatprep.subr.mxu1 %v3278_v0 }
 0x406   :  { %2792 = vmatpush3.msra.mxu1 %v3744_v15 }
 0x407   :  { %2793 = vmatprep.subr.mxu1 %v3278_v0 }
 0x408   :  { %2794 = vmatpush3.msra.mxu1 %v3748_v18 }
 0x409   :  { %2795 = vmatprep.subr.mxu1 %v3278_v0 }
 0x40a   :  { %2796 = vmatpush3.msra.mxu1 %v3752_v27 }
 0x40b   :  { %2797 = vmatprep.subr.mxu1 %v3278_v0 }
 0x40c   :  { %2798 = vmatpush3.msra.mxu1 %v3756_v28 }
 0x4ac   :  { %v1198_v31 = vpop.f32.mrf.mxu1 }
 0x4ad   :  { %v1203_v32 = vrot.slane %v1198_v31, 1  ;;  %v1204_v33 = vrot.slane %v1198_v31, 2  ;;  %v1205_v34 = vrot.slane %v1198_v31, 3  ;;  %v1206_v35 = vrot.slane %v1198_v31, 4 }
 0x4ae   :  { %v1207_v38 = vrot.slane %v1198_v31, 5  ;;  %v1208_v39 = vrot.slane %v1198_v31, 6  ;;  %v1218_v40 = vadd.f32 %v1198_v31, %v1124_v51  ;;  %v2731_v41 = vpop.f32.mrf.mxu1  ;;  %v1209_v46 = vrot.slane %v1198_v31, 7 }
 0x4af   :  { %v1219_v43 = vadd.f32 %v1203_v32, %v1125_v30  ;;  %v1220_v44 = vadd.f32 %v1204_v33, %v1126_v36  ;;  %v1221_v45 = vadd.f32 %v1205_v34, %v1127_v37  ;;  %v1222_v48 = vadd.f32 %v1206_v35, %v1128_v42 }
 0x4b0   :  { %3002 = vtanh.f32 %v1218_v40  ;;  %v1223_v50 = vadd.f32 %v1207_v38, %v1129_v47  ;;  %v1224_v53 = vadd.f32 %v1208_v39, %v1130_v52  ;;  %v1225_v55 = vadd.f32 %v1209_v46, %v1131_v26 }
 0x4b1   :  { %3004 = vtanh.f32 %v1219_v43  ;;  %v1226_v37 = vmul.f32 0.5, %v3682_v62 }
 0x4b2   :  { %3006 = vtanh.f32 %v1220_v44 }
 0x4b3   :  { %3008 = vtanh.f32 %v1221_v45 }
 0x4b4   :  { %3010 = vtanh.f32 %v1222_v48 }
 0x4b5   :  { %3012 = vtanh.f32 %v1223_v50 }
 0x4b6   :  { %3014 = vtanh.f32 %v1224_v53  ;;  %v1337_v53 = vld [vmem:[#allocation2 + $0x25] sm:$0x1] }
 0x4b7   :  { %3016 = vtanh.f32 %v1225_v55 }
 0x4bd   :  { %v3003_v56 = vpop.eup %3002 }
 0x4be   :  { %v3005_v29 = vpop.eup %3004  ;;  %v1235_v1 = vmul.f32 0.5, %v3003_v56 }
 0x4bf   :  { %v3007_v57 = vpop.eup %3006  ;;  %v1236_v58 = vmul.f32 0.5, %v3005_v29  ;;  %v1338_v29 = vld [vmem:[#allocation2 + $0x2d] sm:$0x1] }
 0x4c0   :  { %v3009_v59 = vpop.eup %3008  ;;  %v1237_v60 = vmul.f32 0.5, %v3007_v57 }
 0x4c1   :  { %v3011_v61 = vpop.eup %3010  ;;  %v1251_v63 = vrot.slane %v1236_v58, 7  ;;  %v1238_v54 = vmul.f32 0.5, %v3009_v59  ;;  %v1339_v58 = vld [vmem:[#allocation2 + $0x35] sm:$0x1]  ;;  %v1340_v59 = vld [vmem:[#allocation2 + $0x3d] sm:$0x1] }
 0x4c2   :  { %v3013_v2 = vpop.eup %3012  ;;  %v1239_v4 = vmul.f32 0.5, %v3011_v61  ;;  %v1253_v9 = vrot.slane %v1237_v60, 6 }
 0x4c3   :  { %v3015_v12 = vpop.eup %3014  ;;  %v1240_v13 = vmul.f32 0.5, %v3013_v2  ;;  %v1252_v16 = vsel %vm409_vm2, %v1251_v63, %v1235_v1  ;;  %v1255_v19 = vrot.slane %v1238_v54, 5 }
 0x4c4   :  { %v3017_v20 = vpop.eup %3016  ;;  %v1241_v21 = vmul.f32 0.5, %v3015_v12  ;;  %v1254_v23 = vsel %vm412_vm3, %v1253_v9, %v1252_v16  ;;  %v1257_v30 = vrot.slane %v1239_v4, 4 }
 0x4c5   :  { %v1242_v31 = vmul.f32 0.5, %v3017_v20  ;;  %v1256_v51 = vsel %vm415_vm4, %v1255_v19, %v1254_v23  ;;  %v1259_v32 = vrot.slane %v1240_v13, 3 }
 0x4c6   :  { %v1258_v33 = vsel %vm418_vm5, %v1257_v30, %v1256_v51  ;;  %v1261_v34 = vrot.slane %v1241_v21, 2 }
 0x4c7   :  { %v1260_v35 = vsel %vm421_vm6, %v1259_v32, %v1258_v33  ;;  %v1263_v36 = vrot.slane %v1242_v31, 1 }
 0x4c8   :  { %v1262_v38 = vsel %vm424_vm7, %v1261_v34, %v1260_v35 }
 0x4c9   :  { %v1264_v39 = vsel %vm427_vm8, %v1263_v36, %v1262_v38 }
 0x4ca   :  { %v3767_v40 = vadd.f32 %v1264_v39, %v1226_v37 }
 0x4cc   :  { %v1268_v41 = vcombine.high %v3767_v40, %v3767_v40  ;;  %v1275_v42 = vrot.slane %v3767_v40, %v3517_v49  ;;  %2765 = vmatmul.mubr.f32.vlgmr.msra.gmra.mxu0 %v3767_v40 }
 0x4cd   :  { %2803 = vmatpush3.msra.mxu0 %v3689_v3  ;;  %2834 = vmatprep.mubr.msk.f32.mxu0 %vm3279_vm0, %v3278_v0 }
 0x4ce   :  { %v1282_v62 = vrot.slane %v1268_v41, %v3517_v49  ;;  %v1283_v43 = vcombine.high %v1275_v42, %v1275_v42  ;;  %v1291_v44 = vrot.slane %v1275_v42, %v3517_v49  ;;  %2332 = vst.sshfl [vmem:[#allocation2 + $0x4] sm:$0x1 pattern:$0x73625140] %v1275_v42  ;;  %2804 = vmatprep.subr.mxu0 %v3278_v0 }
 0x4cf   :  { %2805 = vmatpush3.msra.mxu0 %v3697_v8 }
 0x4d0   :  { %v1284_v45 = vcombine.high %v1282_v62, %v1282_v62  ;;  %v1298_v46 = vrot.slane %v1282_v62, %v3517_v49  ;;  %v1305_v47 = vrot.slane %v1283_v43, %v3517_v49  ;;  %v1313_v48 = vcombine.high %v1291_v44, %v1291_v44  ;;  %2333 = vst.sshfl [vmem:[#allocation2 + $0xc] sm:$0x1 pattern:$0x73625140] %v1283_v43 }
 0x4d1   :  { %2334 = vst.sshfl [vmem:[#allocation2 + $0x24] sm:$0x1 pattern:$0x73625140] %v1282_v62  ;;  %2806 = vmatprep.subr.mxu0 %v3278_v0  ;;  %v1435_v44 = vmul.f32 0.5, %v3767_v40 }
 0x4d2   :  { %2807 = vmatpush3.msra.mxu0 %v3703_v17  ;;  %v1312_v3 = vrot.slane %v1284_v45, %v3517_v49  ;;  %v1314_v50 = vcombine.high %v1298_v46, %v1298_v46  ;;  %v1315_v52 = vcombine.high %v1305_v47, %v1305_v47  ;;  %1327 = vst [vmem:[#allocation2 + $0x14] sm:$0x1] %v1313_v48  ;;  %2335 = vst.sshfl [vmem:[#allocation2 + $0x2c] sm:$0x1 pattern:$0x73625140] %v1284_v45 }
 0x4d3   :  { %2808 = vmatprep.subr.mxu0 %v3278_v0  ;;  %v1334_v17 = vld [vmem:[#allocation2 + $0xd] sm:$0x1] }
 0x4d4   :  { %2809 = vmatpush3.msra.mxu0 %v3708_v22  ;;  %v1316_v8 = vcombine.high %v1312_v3, %v1312_v3  ;;  %1328 = vst [vmem:[#allocation2 + $0x1c] sm:$0x1] %v1315_v52  ;;  %1331 = vst [vmem:[#allocation2 + $0x34] sm:$0x1] %v1314_v50 }
 0x4d5   :  { %2810 = vmatprep.subr.mxu0 %v3278_v0 }
 0x4d6   :  { %2811 = vmatpush3.msra.mxu0 %v3712_v5  ;;  %1332 = vst [vmem:[#allocation2 + $0x3c] sm:$0x1] %v1316_v8  ;;  %v1333_v5 = vld [vmem:[#allocation2 + $0x5] sm:$0x1] }
 0x4d7   :  { %2812 = vmatprep.subr.mxu0 %v3278_v0 }
 0x4d8   :  { %2813 = vmatpush3.msra.mxu0 %v3716_v24 }
 0x4d9   :  { %2814 = vmatprep.subr.mxu0 %v3278_v0 }
 0x4da   :  { %2815 = vmatpush3.msra.mxu0 %v3720_v6 }
 0x4db   :  { %2816 = vmatprep.subr.mxu0 %v3278_v0 }
 0x4dc   :  { %2817 = vmatpush3.msra.mxu0 %v3724_v7 }
 0x4dd   :  { %2818 = vmatprep.subr.mxu0 %v3278_v0 }
 0x4de   :  { %2819 = vmatpush3.msra.mxu0 %v3728_v10 }
 0x4df   :  { %2820 = vmatprep.subr.mxu0 %v3278_v0 }
 0x4e0   :  { %2821 = vmatpush3.msra.mxu0 %v3732_v25  ;;  %v1335_v25 = vld [vmem:[#allocation2 + $0x15] sm:$0x1] }
 0x4e1   :  { %2822 = vmatprep.subr.mxu0 %v3278_v0 }
 0x4e2   :  { %2823 = vmatpush3.msra.mxu0 %v3736_v11  ;;  %v1336_v11 = vld [vmem:[#allocation2 + $0x1d] sm:$0x1] }
 0x4e3   :  { %2824 = vmatprep.subr.mxu0 %v3278_v0 }
 0x4e4   :  { %2825 = vmatpush3.msra.mxu0 %v3740_v14 }
 0x4e5   :  { %2826 = vmatprep.subr.mxu0 %v3278_v0 }
 0x4e6   :  { %2827 = vmatpush3.msra.mxu0 %v3744_v15 }
 0x4e7   :  { %2828 = vmatprep.subr.mxu0 %v3278_v0 }
 0x4e8   :  { %2829 = vmatpush3.msra.mxu0 %v3748_v18 }
 0x4e9   :  { %2830 = vmatprep.subr.mxu0 %v3278_v0 }
 0x4ea   :  { %2831 = vmatpush3.msra.mxu0 %v3752_v27 }
 0x4eb   :  { %2832 = vmatprep.subr.mxu0 %v3278_v0 }
 0x4ec   :  { %2833 = vmatpush3.msra.mxu0 %v3756_v28 }
 0x58c   :  { %v1407_v22 = vpop.f32.mrf.mxu0 }
 0x58d   :  { %v1412_v24 = vrot.slane %v1407_v22, 1  ;;  %v1413_v6 = vrot.slane %v1407_v22, 2  ;;  %v1414_v7 = vrot.slane %v1407_v22, 3  ;;  %v1415_v10 = vrot.slane %v1407_v22, 4 }
 0x58e   :  { %v1416_v14 = vrot.slane %v1407_v22, 5  ;;  %v1417_v15 = vrot.slane %v1407_v22, 6  ;;  %v1427_v18 = vadd.f32 %v1407_v22, %v1333_v5  ;;  %v2766_v26 = vpop.f32.mrf.mxu0  ;;  %v1418_v0 = vrot.slane %v1407_v22, 7 }
 0x58f   :  { %v1428_v55 = vadd.f32 %v1412_v24, %v1334_v17  ;;  %v1429_v27 = vadd.f32 %v1413_v6, %v1335_v25  ;;  %v1430_v56 = vadd.f32 %v1414_v7, %v1336_v11  ;;  %v1431_v28 = vadd.f32 %v1415_v10, %v1337_v53  ;;  %v1542_v25 = vld [vmem:[#allocation2 + $0x6] sm:$0x1] }
 0x590   :  { %3018 = vtanh.f32 %v1427_v18  ;;  %v1432_v57 = vadd.f32 %v1416_v14, %v1338_v29  ;;  %v1433_v60 = vadd.f32 %v1417_v15, %v1339_v58  ;;  %v1434_v61 = vadd.f32 %v1418_v0, %v1340_v59  ;;  %v1543_v14 = vld [vmem:[#allocation2 + $0xe] sm:$0x1] }
 0x591   :  { %3020 = vtanh.f32 %v1428_v55  ;;  %v1544_v55 = vld [vmem:[#allocation2 + $0x16] sm:$0x1] }
 0x592   :  { %3022 = vtanh.f32 %v1429_v27  ;;  %v1545_v27 = vld [vmem:[#allocation2 + $0x1e] sm:$0x1] }
 0x593   :  { %3024 = vtanh.f32 %v1430_v56 }
 0x594   :  { %3026 = vtanh.f32 %v1431_v28 }
 0x595   :  { %3028 = vtanh.f32 %v1432_v57  ;;  %v1546_v57 = vld [vmem:[#allocation2 + $0x26] sm:$0x1] }
 0x596   :  { %3030 = vtanh.f32 %v1433_v60 }
 0x597   :  { %3032 = vtanh.f32 %v1434_v61 }
 0x59d   :  { %v3019_v1 = vpop.eup %3018 }
 0x59e   :  { %v3021_v63 = vpop.eup %3020  ;;  %v1444_v13 = vmul.f32 0.5, %v3019_v1  ;;  %v1547_v1 = vld [vmem:[#allocation2 + $0x2e] sm:$0x1] }
 0x59f   :  { %v3023_v54 = vpop.eup %3022  ;;  %v1445_v2 = vmul.f32 0.5, %v3021_v63 }
 0x5a0   :  { %v3025_v4 = vpop.eup %3024  ;;  %v1446_v9 = vmul.f32 0.5, %v3023_v54 }
 0x5a1   :  { %v3027_v12 = vpop.eup %3026  ;;  %v1460_v16 = vrot.slane %v1445_v2, 7  ;;  %v1447_v19 = vmul.f32 0.5, %v3025_v4  ;;  %v1548_v2 = vld [vmem:[#allocation2 + $0x36] sm:$0x1]  ;;  %v1549_v4 = vld [vmem:[#allocation2 + $0x3e] sm:$0x1] }
 0x5a2   :  { %v3029_v20 = vpop.eup %3028  ;;  %v1448_v21 = vmul.f32 0.5, %v3027_v12  ;;  %v1462_v23 = vrot.slane %v1446_v9, 6 }
 0x5a3   :  { %v3031_v30 = vpop.eup %3030  ;;  %v1449_v31 = vmul.f32 0.5, %v3029_v20  ;;  %v1461_v51 = vsel %vm409_vm2, %v1460_v16, %v1444_v13  ;;  %v1464_v32 = vrot.slane %v1447_v19, 5 }
 0x5a4   :  { %v3033_v33 = vpop.eup %3032  ;;  %v1450_v34 = vmul.f32 0.5, %v3031_v30  ;;  %v1463_v35 = vsel %vm412_vm3, %v1462_v23, %v1461_v51  ;;  %v1466_v36 = vrot.slane %v1448_v21, 4 }
 0x5a5   :  { %v1451_v37 = vmul.f32 0.5, %v3033_v33  ;;  %v1465_v38 = vsel %vm415_vm4, %v1464_v32, %v1463_v35  ;;  %v1468_v39 = vrot.slane %v1449_v31, 3 }
 0x5a6   :  { %v1467_v41 = vsel %vm418_vm5, %v1466_v36, %v1465_v38  ;;  %v1470_v42 = vrot.slane %v1450_v34, 2 }
 0x5a7   :  { %v1469_v62 = vsel %vm421_vm6, %v1468_v39, %v1467_v41  ;;  %v1472_v43 = vrot.slane %v1451_v37, 1 }
 0x5a8   :  { %v1471_v45 = vsel %vm424_vm7, %v1470_v42, %v1469_v62 }
 0x5a9   :  { %v1473_v46 = vsel %vm427_vm8, %v1472_v43, %v1471_v45 }
 0x5aa   :  { %v3820_v47 = vadd.f32 %v1473_v46, %v1435_v44 }
 0x5ac   :  { %v1477_v48 = vcombine.high %v3820_v47, %v3820_v47  ;;  %v1484_v3 = vrot.slane %v3820_v47, %v3517_v49  ;;  %2800 = vmatmul.mubr.f32.vlgmr.msra.gmra.mxu1 %v3820_v47 }
 0x5ae   :  { %v1491_v50 = vrot.slane %v1477_v48, %v3517_v49  ;;  %v1492_v52 = vcombine.high %v1484_v3, %v1484_v3  ;;  %v1500_v8 = vrot.slane %v1484_v3, %v3517_v49  ;;  %2336 = vst.sshfl [vmem:[#allocation2 + $0x5] sm:$0x1 pattern:$0x73625140] %v1484_v3 }
 0x5b0   :  { %v1493_v40 = vcombine.high %v1491_v50, %v1491_v50  ;;  %v1507_v17 = vrot.slane %v1491_v50, %v3517_v49  ;;  %v1514_v22 = vrot.slane %v1492_v52, %v3517_v49  ;;  %v1522_v5 = vcombine.high %v1500_v8, %v1500_v8  ;;  %2337 = vst.sshfl [vmem:[#allocation2 + $0xd] sm:$0x1 pattern:$0x73625140] %v1492_v52 }
 0x5b1   :  { %2338 = vst.sshfl [vmem:[#allocation2 + $0x25] sm:$0x1 pattern:$0x73625140] %v1491_v50  ;;  %v1644_v8 = vmul.f32 0.5, %v3820_v47 }
 0x5b2   :  { %v1521_v24 = vrot.slane %v1493_v40, %v3517_v49  ;;  %v1523_v6 = vcombine.high %v1507_v17, %v1507_v17  ;;  %v1524_v7 = vcombine.high %v1514_v22, %v1514_v22  ;;  %1536 = vst [vmem:[#allocation2 + $0x15] sm:$0x1] %v1522_v5  ;;  %2339 = vst.sshfl [vmem:[#allocation2 + $0x2d] sm:$0x1 pattern:$0x73625140] %v1493_v40 }
 0x5b4   :  { %v1525_v10 = vcombine.high %v1521_v24, %v1521_v24  ;;  %1537 = vst [vmem:[#allocation2 + $0x1d] sm:$0x1] %v1524_v7  ;;  %1540 = vst [vmem:[#allocation2 + $0x35] sm:$0x1] %v1523_v6 }
 0x5b6   :  { %1541 = vst [vmem:[#allocation2 + $0x3d] sm:$0x1] %v1525_v10 }
 0x66c   :  { %v1616_v11 = vpop.f32.mrf.mxu1 }
 0x66d   :  { %v1621_v15 = vrot.slane %v1616_v11, 1  ;;  %v1622_v18 = vrot.slane %v1616_v11, 2  ;;  %v1623_v26 = vrot.slane %v1616_v11, 3  ;;  %v1624_v53 = vrot.slane %v1616_v11, 4 }
 0x66e   :  { %v1625_v56 = vrot.slane %v1616_v11, 5  ;;  %v1626_v0 = vrot.slane %v1616_v11, 6  ;;  %v1636_v29 = vadd.f32 %v1616_v11, %v1542_v25  ;;  %v2801_v28 = vpop.f32.mrf.mxu1  ;;  %v1627_v61 = vrot.slane %v1616_v11, 7 }
 0x66f   :  { %v1637_v58 = vadd.f32 %v1621_v15, %v1543_v14  ;;  %v1638_v59 = vadd.f32 %v1622_v18, %v1544_v55  ;;  %v1639_v60 = vadd.f32 %v1623_v26, %v1545_v27  ;;  %v1640_v63 = vadd.f32 %v1624_v53, %v1546_v57  ;;  %v1984_v55 = vld [vmem:[#allocation11 + $0x78] sm:$0xff]  ;;  %v1983_v27 = vld [vmem:[#allocation11 + $0x70] sm:$0xff]  ;;  %v1978_v57 = vld [vmem:[#allocation11 + $0x48] sm:$0xff] }
 0x670   :  { %3034 = vtanh.f32 %v1636_v29  ;;  %v1641_v54 = vadd.f32 %v1625_v56, %v1547_v1  ;;  %v1642_v9 = vadd.f32 %v1626_v0, %v1548_v2  ;;  %v1643_v12 = vadd.f32 %v1627_v61, %v1549_v4  ;;  %2837 = vmatprep.subr.mxu1 %v1984_v55  ;;  %v1982_v56 = vld [vmem:[#allocation11 + $0x68] sm:$0xff]  ;;  %v1981_v0 = vld [vmem:[#allocation11 + $0x60] sm:$0xff]  ;;  %v1980_v29 = vld [vmem:[#allocation11 + $0x58] sm:$0xff] }
 0x671   :  { %3036 = vtanh.f32 %v1637_v58  ;;  %2838 = vmatpush3.msra.mxu1 %v1984_v55  ;;  %v1979_v28 = vld [vmem:[#allocation11 + $0x50] sm:$0xff]  ;;  %v1977_v58 = vld [vmem:[#allocation11 + $0x40] sm:$0xff]  ;;  %v1974_v61 = vld [vmem:[#allocation11 + $0x28] sm:$0xff] }
 0x672   :  { %3038 = vtanh.f32 %v1638_v59  ;;  %2839 = vmatprep.subr.mxu1 %v1983_v27  ;;  %v1976_v59 = vld [vmem:[#allocation11 + $0x38] sm:$0xff]  ;;  %v1973_v1 = vld [vmem:[#allocation11 + $0x20] sm:$0xff]  ;;  %v1970_v2 = vld [vmem:[#allocation11 + $0x8] sm:$0xff] }
 0x673   :  { %3040 = vtanh.f32 %v1639_v60  ;;  %2840 = vmatpush3.msra.mxu1 %v1983_v27  ;;  %v1975_v60 = vld [vmem:[#allocation11 + $0x30] sm:$0xff]  ;;  %v1969_v4 = vld [vmem:[#allocation11] sm:$0xff] }
 0x674   :  { %3042 = vtanh.f32 %v1640_v63  ;;  %2841 = vmatprep.subr.mxu1 %v1982_v56  ;;  %v1972_v63 = vld [vmem:[#allocation11 + $0x18] sm:$0xff] }
 0x675   :  { %3044 = vtanh.f32 %v1641_v54  ;;  %2842 = vmatpush3.msra.mxu1 %v1982_v56  ;;  %v1971_v54 = vld [vmem:[#allocation11 + $0x10] sm:$0xff] }
 0x676   :  { %3046 = vtanh.f32 %v1642_v9  ;;  %2843 = vmatprep.subr.mxu1 %v1981_v0  ;;  %v2153_v9 = vld [vmem:[#allocation12 + $0x78] sm:$0xff] }
 0x677   :  { %3048 = vtanh.f32 %v1643_v12  ;;  %2844 = vmatpush3.msra.mxu1 %v1981_v0  ;;  %v2152_v12 = vld [vmem:[#allocation12 + $0x70] sm:$0xff]  ;;  %2881 = vmatprep.subr.mxu0 %v2153_v9 }
 0x678   :  { %2845 = vmatprep.subr.mxu1 %v1980_v29 }
 0x679   :  { %2846 = vmatpush3.msra.mxu1 %v1980_v29 }
 0x67a   :  { %2847 = vmatprep.subr.mxu1 %v1979_v28 }
 0x67b   :  { %2848 = vmatpush3.msra.mxu1 %v1979_v28 }
 0x67c   :  { %2849 = vmatprep.subr.mxu1 %v1978_v57 }
 0x67d   :  { %v3035_v13 = vpop.eup %3034  ;;  %2850 = vmatpush3.msra.mxu1 %v1978_v57 }
 0x67e   :  { %v3037_v16 = vpop.eup %3036  ;;  %v1653_v31 = vmul.f32 0.5, %v3035_v13  ;;  %2851 = vmatprep.subr.mxu1 %v1977_v58  ;;  %v2151_v13 = vld [vmem:[#allocation12 + $0x68] sm:$0xff] }
 0x67f   :  { %v3039_v19 = vpop.eup %3038  ;;  %v1654_v20 = vmul.f32 0.5, %v3037_v16  ;;  %2852 = vmatpush3.msra.mxu1 %v1977_v58  ;;  %v1751_v16 = vld [vmem:[#allocation2 + $0x7] sm:$0x1] }
 0x680   :  { %v3041_v21 = vpop.eup %3040  ;;  %v1655_v23 = vmul.f32 0.5, %v3039_v19  ;;  %2853 = vmatprep.subr.mxu1 %v1976_v59 }
 0x681   :  { %v3043_v30 = vpop.eup %3042  ;;  %v1669_v51 = vrot.slane %v1654_v20, 7  ;;  %v1656_v32 = vmul.f32 0.5, %v3041_v21  ;;  %2854 = vmatpush3.msra.mxu1 %v1976_v59  ;;  %v1752_v20 = vld [vmem:[#allocation2 + $0xf] sm:$0x1] }
 0x682   :  { %v3045_v33 = vpop.eup %3044  ;;  %v1657_v34 = vmul.f32 0.5, %v3043_v30  ;;  %v1671_v35 = vrot.slane %v1655_v23, 6  ;;  %2855 = vmatprep.subr.mxu1 %v1975_v60 }
 0x683   :  { %v3047_v36 = vpop.eup %3046  ;;  %v1658_v37 = vmul.f32 0.5, %v3045_v33  ;;  %v1670_v38 = vsel %vm409_vm2, %v1669_v51, %v1653_v31  ;;  %v1673_v39 = vrot.slane %v1656_v32, 5  ;;  %2856 = vmatpush3.msra.mxu1 %v1975_v60  ;;  %v1753_v51 = vld [vmem:[#allocation2 + $0x17] sm:$0x1]  ;;  %v1754_v32 = vld [vmem:[#allocation2 + $0x1f] sm:$0x1] }
 0x684   :  { %v3049_v41 = vpop.eup %3048  ;;  %v1659_v42 = vmul.f32 0.5, %v3047_v36  ;;  %v1672_v62 = vsel %vm412_vm3, %v1671_v35, %v1670_v38  ;;  %v1675_v43 = vrot.slane %v1657_v34, 4  ;;  %2857 = vmatprep.subr.mxu1 %v1974_v61 }
 0x685   :  { %v1660_v44 = vmul.f32 0.5, %v3049_v41  ;;  %v1674_v45 = vsel %vm415_vm4, %v1673_v39, %v1672_v62  ;;  %v1677_v46 = vrot.slane %v1658_v37, 3  ;;  %2858 = vmatpush3.msra.mxu1 %v1974_v61  ;;  %v1755_v37 = vld [vmem:[#allocation2 + $0x27] sm:$0x1]  ;;  %v1756_v62 = vld [vmem:[#allocation2 + $0x2f] sm:$0x1] }
 0x686   :  { %v1676_v48 = vsel %vm418_vm5, %v1675_v43, %v1674_v45  ;;  %v1679_v3 = vrot.slane %v1659_v42, 2  ;;  %2859 = vmatprep.subr.mxu1 %v1973_v1 }
 0x687   :  { %v1678_v50 = vsel %vm421_vm6, %v1677_v46, %v1676_v48  ;;  %v1681_v52 = vrot.slane %v1660_v44, 1  ;;  %2860 = vmatpush3.msra.mxu1 %v1973_v1  ;;  %v1757_v44 = vld [vmem:[#allocation2 + $0x37] sm:$0x1]  ;;  %v1758_v46 = vld [vmem:[#allocation2 + $0x3f] sm:$0x1] }
 0x688   :  { %v1680_v40 = vsel %vm424_vm7, %v1679_v3, %v1678_v50  ;;  %2861 = vmatprep.subr.mxu1 %v1972_v63 }
 0x689   :  { %v1682_v17 = vsel %vm427_vm8, %v1681_v52, %v1680_v40  ;;  %2862 = vmatpush3.msra.mxu1 %v1972_v63 }
 0x68a   :  { %v3840_v22 = vadd.f32 %v1682_v17, %v1644_v8  ;;  %2863 = vmatprep.subr.mxu1 %v1971_v54 }
 0x68b   :  { %2864 = vmatpush3.msra.mxu1 %v1971_v54 }
 0x68c   :  { %v1686_v5 = vcombine.high %v3840_v22, %v3840_v22  ;;  %v1693_v24 = vrot.slane %v3840_v22, %v3517_v49  ;;  %2835 = vmatmul.mubr.f32.vlgmr.msra.gmra.mxu0 %v3840_v22  ;;  %2865 = vmatprep.subr.mxu1 %v1970_v2  ;;  %v1853_v61 = vmul.f32 0.5, %v3840_v22 }
 0x68d   :  { %2866 = vmatpush3.msra.mxu1 %v1970_v2  ;;  %2882 = vmatpush3.msra.mxu0 %v2153_v9 }
 0x68e   :  { %v1700_v6 = vrot.slane %v1686_v5, %v3517_v49  ;;  %v1701_v7 = vcombine.high %v1693_v24, %v1693_v24  ;;  %v1709_v10 = vrot.slane %v1693_v24, %v3517_v49  ;;  %2340 = vst.sshfl [vmem:[#allocation2 + $0x6] sm:$0x1 pattern:$0x73625140] %v1693_v24  ;;  %2867 = vmatprep.subr.mxu1 %v1969_v4 }
 0x68f   :  { %2868 = vmatpush3.msra.mxu1 %v1969_v4  ;;  %2883 = vmatprep.subr.mxu0 %v2152_v12 }
 0x690   :  { %v1702_v47 = vcombine.high %v1700_v6, %v1700_v6  ;;  %v1716_v25 = vrot.slane %v1700_v6, %v3517_v49  ;;  %v1723_v11 = vrot.slane %v1701_v7, %v3517_v49  ;;  %v1731_v14 = vcombine.high %v1709_v10, %v1709_v10  ;;  %2341 = vst.sshfl [vmem:[#allocation2 + $0xe] sm:$0x1 pattern:$0x73625140] %v1701_v7 }
 0x691   :  { %2342 = vst.sshfl [vmem:[#allocation2 + $0x26] sm:$0x1 pattern:$0x73625140] %v1700_v6  ;;  %2884 = vmatpush3.msra.mxu0 %v2152_v12 }
 0x692   :  { %v1730_v15 = vrot.slane %v1702_v47, %v3517_v49  ;;  %v1732_v18 = vcombine.high %v1716_v25, %v1716_v25  ;;  %v1733_v26 = vcombine.high %v1723_v11, %v1723_v11  ;;  %1745 = vst [vmem:[#allocation2 + $0x16] sm:$0x1] %v1731_v14  ;;  %2343 = vst.sshfl [vmem:[#allocation2 + $0x2e] sm:$0x1 pattern:$0x73625140] %v1702_v47  ;;  %2885 = vmatprep.subr.mxu0 %v2151_v13 }
 0x693   :  { %2886 = vmatpush3.msra.mxu0 %v2151_v13 }
 0x694   :  { %v1734_v53 = vcombine.high %v1730_v15, %v1730_v15  ;;  %1746 = vst [vmem:[#allocation2 + $0x1e] sm:$0x1] %v1733_v26  ;;  %1749 = vst [vmem:[#allocation2 + $0x36] sm:$0x1] %v1732_v18 }
 0x696   :  { %1750 = vst [vmem:[#allocation2 + $0x3e] sm:$0x1] %v1734_v53 }
 0x74c   :  { %v1825_v19 = vpop.f32.mrf.mxu0 }
 0x74d   :  { %v1830_v21 = vrot.slane %v1825_v19, 1  ;;  %v1831_v23 = vrot.slane %v1825_v19, 2  ;;  %v1832_v30 = vrot.slane %v1825_v19, 3  ;;  %v1833_v31 = vrot.slane %v1825_v19, 4 }
 0x74e   :  { %v1834_v33 = vrot.slane %v1825_v19, 5  ;;  %v1835_v34 = vrot.slane %v1825_v19, 6  ;;  %v1845_v35 = vadd.f32 %v1825_v19, %v1751_v16  ;;  %v2836_v36 = vpop.f32.mrf.mxu0  ;;  %v1836_v38 = vrot.slane %v1825_v19, 7 }
 0x74f   :  { %v1846_v39 = vadd.f32 %v1830_v21, %v1752_v20  ;;  %v1847_v41 = vadd.f32 %v1831_v23, %v1753_v51  ;;  %v1848_v42 = vadd.f32 %v1832_v30, %v1754_v32  ;;  %v1849_v43 = vadd.f32 %v1833_v31, %v1755_v37 }
 0x750   :  { %3050 = vtanh.f32 %v1845_v35  ;;  %v1850_v45 = vadd.f32 %v1834_v33, %v1756_v62  ;;  %v1851_v48 = vadd.f32 %v1835_v34, %v1757_v44  ;;  %v1852_v3 = vadd.f32 %v1836_v38, %v1758_v46  ;;  %v2150_v38 = vld [vmem:[#allocation12 + $0x60] sm:$0xff]  ;;  %v2144_v44 = vld [vmem:[#allocation12 + $0x30] sm:$0xff] }
 0x751   :  { %3052 = vtanh.f32 %v1846_v39  ;;  %2887 = vmatprep.subr.mxu0 %v2150_v38  ;;  %v2149_v39 = vld [vmem:[#allocation12 + $0x58] sm:$0xff]  ;;  %v2146_v62 = vld [vmem:[#allocation12 + $0x40] sm:$0xff] }
 0x752   :  { %3054 = vtanh.f32 %v1847_v41  ;;  %2888 = vmatpush3.msra.mxu0 %v2150_v38  ;;  %v2148_v41 = vld [vmem:[#allocation12 + $0x50] sm:$0xff]  ;;  %v2142_v46 = vld [vmem:[#allocation12 + $0x20] sm:$0xff] }
 0x753   :  { %3056 = vtanh.f32 %v1848_v42  ;;  %2889 = vmatprep.subr.mxu0 %v2149_v39  ;;  %v2147_v42 = vld [vmem:[#allocation12 + $0x48] sm:$0xff] }
 0x754   :  { %3058 = vtanh.f32 %v1849_v43  ;;  %2890 = vmatpush3.msra.mxu0 %v2149_v39  ;;  %v2145_v43 = vld [vmem:[#allocation12 + $0x38] sm:$0xff] }
 0x755   :  { %3060 = vtanh.f32 %v1850_v45  ;;  %2891 = vmatprep.subr.mxu0 %v2148_v41  ;;  %v2143_v45 = vld [vmem:[#allocation12 + $0x28] sm:$0xff] }
 0x756   :  { %3062 = vtanh.f32 %v1851_v48  ;;  %2892 = vmatpush3.msra.mxu0 %v2148_v41  ;;  %v2141_v48 = vld [vmem:[#allocation12 + $0x18] sm:$0xff] }
 0x757   :  { %3064 = vtanh.f32 %v1852_v3  ;;  %2893 = vmatprep.subr.mxu0 %v2147_v42  ;;  %v2140_v3 = vld [vmem:[#allocation12 + $0x10] sm:$0xff] }
 0x758   :  { %2894 = vmatpush3.msra.mxu0 %v2147_v42 }
 0x759   :  { %2895 = vmatprep.subr.mxu0 %v2146_v62 }
 0x75a   :  { %2896 = vmatpush3.msra.mxu0 %v2146_v62 }
 0x75b   :  { %2897 = vmatprep.subr.mxu0 %v2145_v43 }
 0x75c   :  { %2898 = vmatpush3.msra.mxu0 %v2145_v43 }
 0x75d   :  { %v3051_v50 = vpop.eup %3050  ;;  %2899 = vmatprep.subr.mxu0 %v2144_v44 }
 0x75e   :  { %v3053_v52 = vpop.eup %3052  ;;  %v1862_v6 = vmul.f32 0.5, %v3051_v50  ;;  %2900 = vmatpush3.msra.mxu0 %v2144_v44  ;;  %v2139_v50 = vld [vmem:[#allocation12 + $0x8] sm:$0xff] }
 0x75f   :  { %v3055_v8 = vpop.eup %3054  ;;  %v1863_v40 = vmul.f32 0.5, %v3053_v52  ;;  %2901 = vmatprep.subr.mxu0 %v2143_v45  ;;  %v2138_v52 = vld [vmem:[#allocation12] sm:$0xff] }
 0x760   :  { %v3057_v17 = vpop.eup %3056  ;;  %v1864_v5 = vmul.f32 0.5, %v3055_v8  ;;  %2902 = vmatpush3.msra.mxu0 %v2143_v45  ;;  %v2348_v8 = vld [vmem:[%s3886_s5] ss:$0 sm:$0xff]  ;;  %s3281_s5 = smov [#allocation15]  }
 0x761   :  { %v3059_v24 = vpop.eup %3058  ;;  %v1865_v7 = vmul.f32 0.5, %v3057_v17  ;;  %v1878_v10 = vrot.slane %v1863_v40, 7  ;;  %2903 = vmatprep.subr.mxu0 %v2142_v46  ;;  %s2292_s16 = sshll.u32 %s3281_s5, 4  ;;  %s2293_s16 = int_to_ptr.vmem [resolvable:$true] %s2292_s16 }
 0x762   :  { %v3061_v47 = vpop.eup %3060  ;;  %v1866_v25 = vmul.f32 0.5, %v3059_v24  ;;  %v1880_v11 = vrot.slane %v1864_v5, 6  ;;  %2904 = vmatpush3.msra.mxu0 %v2142_v46  ;;  %s3218_s17 = scalar_lea.vmem %s2293_s16, 128  ;;  %p3223_p3 = scmp.lt.s32.totalorder %s2293_s16, %s2293_s16 }
 0x763   :  { %v3063_v14 = vpop.eup %3062  ;;  %v1867_v15 = vmul.f32 0.5, %v3061_v47  ;;  %v1879_v18 = vsel %vm409_vm2, %v1878_v10, %v1862_v6  ;;  %v1882_v26 = vrot.slane %v1865_v7, 5  ;;  %2905 = vmatprep.subr.mxu0 %v2141_v48  ;;  %p3219_p2 = scmp.ne.s32.totalorder %s2293_s16, %s3218_s17  ;;  %p3224_p4 = scmp.lt.s32.totalorder %s3218_s17, %s3218_s17 }
 0x764   :  { %v3065_v53 = vpop.eup %3064  ;;  %v1868_v55 = vmul.f32 0.5, %v3063_v14  ;;  %v1881_v27 = vsel %vm412_vm3, %v1880_v11, %v1879_v18  ;;  %v1884_v56 = vrot.slane %v1866_v25, 4  ;;  %2906 = vmatpush3.msra.mxu0 %v2141_v48 }
 0x765   :  { %v1869_v0 = vmul.f32 0.5, %v3065_v53  ;;  %v1883_v29 = vsel %vm415_vm4, %v1882_v26, %v1881_v27  ;;  %v1886_v28 = vrot.slane %v1867_v15, 3  ;;  %2907 = vmatprep.subr.mxu0 %v2140_v3  ;;  %p3225_p5 = por %p3224_p4, %p3223_p3 }
 0x766   :  { %v1885_v57 = vsel %vm418_vm5, %v1884_v56, %v1883_v29  ;;  %v1888_v58 = vrot.slane %v1868_v55, 2  ;;  %2908 = vmatpush3.msra.mxu0 %v2140_v3 }
 0x767   :  { %v1887_v59 = vsel %vm421_vm6, %v1886_v28, %v1885_v57  ;;  %v1890_v60 = vrot.slane %v1869_v0, 1  ;;  %2909 = vmatprep.subr.mxu0 %v2139_v50  ;;  %p3226_p6 = pnand %p3225_p5, %p3219_p2 }
 0x768   :  { %v1889_v1 = vsel %vm424_vm7, %v1888_v58, %v1887_v59  ;;  %2910 = vmatpush3.msra.mxu0 %v2139_v50 }
 0x769   :  { %v1891_v63 = vsel %vm427_vm8, %v1890_v60, %v1889_v1  ;;  %2911 = vmatprep.subr.mxu0 %v2138_v52 }
 0x76a   :  { %v1893_v54 = vadd.f32 %v1891_v63, %v1853_v61  ;;  %2912 = vmatpush3.msra.mxu0 %v2138_v52 }
 0x76c   :  { %v1895_v2 = vcombine.high %v1893_v54, %v1893_v54  ;;  %v1902_v4 = vrot.slane %v1893_v54, %v3517_v49  ;;  %1960 = vst [vmem:[#allocation15] sm:$0xff] %v1893_v54 }
 0x76e   :  { %v1909_v9 = vrot.slane %v1895_v2, %v3517_v49  ;;  %v1910_v12 = vcombine.high %v1902_v4, %v1902_v4  ;;  %v1918_v13 = vrot.slane %v1902_v4, %v3517_v49  ;;  %2344 = vst.sshfl [vmem:[#allocation2 + $0x7] sm:$0x1 pattern:$0x73625140] %v1902_v4 }
 0x770   :  { %v1911_v16 = vcombine.high %v1909_v9, %v1909_v9  ;;  %v1925_v19 = vrot.slane %v1909_v9, %v3517_v49  ;;  %v1932_v22 = vrot.slane %v1910_v12, %v3517_v49  ;;  %v1940_v20 = vcombine.high %v1918_v13, %v1918_v13  ;;  %2345 = vst.sshfl [vmem:[#allocation2 + $0xf] sm:$0x1 pattern:$0x73625140] %v1910_v12 }
 0x771   :  { %2346 = vst.sshfl [vmem:[#allocation2 + $0x27] sm:$0x1 pattern:$0x73625140] %v1909_v9 }
 0x772   :  { %v1939_v21 = vrot.slane %v1911_v16, %v3517_v49  ;;  %v1941_v23 = vcombine.high %v1925_v19, %v1925_v19  ;;  %v1942_v30 = vcombine.high %v1932_v22, %v1932_v22  ;;  %1954 = vst [vmem:[#allocation2 + $0x17] sm:$0x1] %v1940_v20  ;;  %2347 = vst.sshfl [vmem:[#allocation2 + $0x2f] sm:$0x1 pattern:$0x73625140] %v1911_v16 }
 0x774   :  { %v1943_v31 = vcombine.high %v1939_v21, %v1939_v21  ;;  %1955 = vst [vmem:[#allocation2 + $0x1f] sm:$0x1] %v1942_v30  ;;  %1958 = vst [vmem:[#allocation2 + $0x37] sm:$0x1] %v1941_v23 }
 0x775   :  { %v1961_v51 = vld [vmem:[#allocation2] sm:$0xff] }
 0x776   :  { %1959 = vst [vmem:[#allocation2 + $0x3f] sm:$0x1] %v1943_v31  ;;  %2869 = vmatprep.mubr.f32.mxu1 %v1961_v51 }
 0x777   :  { %v1962_v32 = vld [vmem:[#allocation2 + $0x8] sm:$0xff] }
 0x778   :  { %2870 = vmatmul.mubr.f32.vlgmr.msra.gmra.mxu1 %v1962_v32  ;;  %v1965_v35 = vld [vmem:[#allocation2 + $0x20] sm:$0xff] }
 0x779   :  { %v1963_v33 = vld [vmem:[#allocation2 + $0x10] sm:$0xff]  ;;  %v1966_v36 = vld [vmem:[#allocation2 + $0x28] sm:$0xff] }
 0x77a   :  { %2872 = vmatprep.mubr.f32.mxu1 %v1963_v33 }
 0x77b   :  { %v1964_v34 = vld [vmem:[#allocation2 + $0x18] sm:$0xff]  ;;  %v1967_v49 = vld [vmem:[#allocation2 + $0x30] sm:$0xff] }
 0x77c   :  { %2873 = vmatmul.mubr.f32.gmra.mxu1 %v1964_v34 }
 0x77d   :  { %2875 = vmatprep.mubr.f32.mxu1 %v1965_v35  ;;  %v1968_v37 = vld [vmem:[#allocation2 + $0x38] sm:$0xff] }
 0x780   :  { %2876 = vmatmul.mubr.f32.gmra.mxu1 %v1966_v36 }
 0x781   :  { %2878 = vmatprep.mubr.f32.mxu1 %v1967_v49 }
 0x784   :  { %2879 = vmatmul.mubr.f32.gmra.mxu1 %v1968_v37 }
 0x838   :  { %v2871_v40 = vpop.f32.mrf.mxu1 }
 0x839   :  { %v2064_v17 = vadd.f32 %v2871_v40, %v2348_v8 }
 0x83a   :  { %v2058_v5 = vpop.f32.mrf.mxu1 }
 0x83b   :  { %v2107_v24 = vmul.f32 0.70710677, %v2064_v17  ;;  %v2059_v6 = vadd.f32 %v2348_v8, %v2058_v5  ;;  %v2098_v4 = vmul.f32 0.5, %v2064_v17 }
 0x83c   :  { %v2874_v7 = vpop.f32.mrf.mxu1 }
 0x83d   :  { %3066 = verf.f32 %v2107_v24  ;;  %v2106_v10 = vmul.f32 0.70710677, %v2059_v6  ;;  %v2074_v47 = vadd.f32 %v2874_v7, %v2348_v8  ;;  %v2097_v63 = vmul.f32 0.5, %v2059_v6 }
 0x83e   :  { %v2068_v25 = vpop.f32.mrf.mxu1 }
 0x83f   :  { %3068 = verf.f32 %v2106_v10  ;;  %v2109_v11 = vmul.f32 0.70710677, %v2074_v47  ;;  %v2069_v14 = vadd.f32 %v2348_v8, %v2068_v25  ;;  %v2100_v21 = vmul.f32 0.5, %v2074_v47 }
 0x840   :  { %v2877_v15 = vpop.f32.mrf.mxu1 }
 0x841   :  { %3070 = verf.f32 %v2109_v11  ;;  %v2108_v18 = vmul.f32 0.70710677, %v2069_v14  ;;  %v2084_v26 = vadd.f32 %v2877_v15, %v2348_v8  ;;  %v2099_v19 = vmul.f32 0.5, %v2069_v14 }
 0x842   :  { %v2078_v53 = vpop.f32.mrf.mxu1 }
 0x843   :  { %3072 = verf.f32 %v2108_v18  ;;  %v2111_v55 = vmul.f32 0.70710677, %v2084_v26  ;;  %v2079_v27 = vadd.f32 %v2348_v8, %v2078_v53  ;;  %v2102_v35 = vmul.f32 0.5, %v2084_v26 }
 0x844   :  { %v2880_v56 = vpop.f32.mrf.mxu1 }
 0x845   :  { %3074 = verf.f32 %v2111_v55  ;;  %v2110_v0 = vmul.f32 0.70710677, %v2079_v27  ;;  %v2094_v29 = vadd.f32 %v2880_v56, %v2348_v8  ;;  %v2101_v32 = vmul.f32 0.5, %v2079_v27 }
 0x846   :  { %v2088_v28 = vpop.f32.mrf.mxu1 }
 0x847   :  { %3076 = verf.f32 %v2110_v0  ;;  %v2113_v57 = vmul.f32 0.70710677, %v2094_v29  ;;  %v2089_v58 = vadd.f32 %v2348_v8, %v2088_v28  ;;  %v2104_v42 = vmul.f32 0.5, %v2094_v29 }
 0x849   :  { %3078 = verf.f32 %v2113_v57  ;;  %v2112_v59 = vmul.f32 0.70710677, %v2089_v58  ;;  %v2103_v39 = vmul.f32 0.5, %v2089_v58 }
 0x84a   :  { %v3067_v60 = vpop.eup %3066 }
 0x84b   :  { %3080 = verf.f32 %v2112_v59  ;;  %v2123_v1 = vadd.f32 1.0, %v3067_v60 }
 0x84c   :  { %v3069_v61 = vpop.eup %3068 }
 0x84d   :  { %v2122_v54 = vadd.f32 1.0, %v3069_v61  ;;  %v2131_v13 = vmul.f32 %v2123_v1, %v2098_v4 }
 0x84e   :  { %v3071_v2 = vpop.eup %3070 }
 0x84f   :  { %v2130_v9 = vmul.f32 %v2122_v54, %v2097_v63  ;;  %v2125_v16 = vadd.f32 1.0, %v3071_v2 }
 0x850   :  { %v3073_v12 = vpop.eup %3072 }
 0x851   :  { %2913 = vmatprep.mubr.f32.mxu0 %v2130_v9  ;;  %v2124_v22 = vadd.f32 1.0, %v3073_v12  ;;  %v2133_v31 = vmul.f32 %v2125_v16, %v2100_v21 }
 0x852   :  { %v3075_v20 = vpop.eup %3074  ;;  %2914 = vmatmul.mubr.f32.vlgmr.msra.gmra.mxu0 %v2131_v13 }
 0x853   :  { %v2132_v23 = vmul.f32 %v2124_v22, %v2099_v19  ;;  %v2127_v51 = vadd.f32 1.0, %v3075_v20 }
 0x854   :  { %v3077_v30 = vpop.eup %3076 }
 0x855   :  { %2916 = vmatprep.mubr.f32.mxu0 %v2132_v23  ;;  %v2126_v33 = vadd.f32 1.0, %v3077_v30  ;;  %v2135_v37 = vmul.f32 %v2127_v51, %v2102_v35 }
 0x856   :  { %v3079_v34 = vpop.eup %3078  ;;  %2917 = vmatmul.mubr.f32.gmra.mxu0 %v2133_v31 }
 0x857   :  { %v2134_v36 = vmul.f32 %v2126_v33, %v2101_v32  ;;  %v2129_v38 = vadd.f32 1.0, %v3079_v34 }
 0x858   :  { %v3081_v49 = vpop.eup %3080 }
 0x859   :  { %2919 = vmatprep.mubr.f32.mxu0 %v2134_v36  ;;  %v2128_v41 = vadd.f32 1.0, %v3081_v49  ;;  %v2137_v43 = vmul.f32 %v2129_v38, %v2104_v42 }
 0x85a   :  { %2920 = vmatmul.mubr.f32.gmra.mxu0 %v2135_v37 }
 0x85b   :  { %v2136_v62 = vmul.f32 %v2128_v41, %v2103_v39 }
 0x85d   :  { %2922 = vmatprep.mubr.f32.mxu0 %v2136_v62 }
 0x85e   :  { %2923 = vmatmul.mubr.f32.gmra.mxu0 %v2137_v43 }
 0x85f   :  { %3229 = shalt.err (!%p3226_p6)
}
 0x860   :  { %2295 = dma.vmem_to_hbm [thread:$0]  %s2293_s16, 128, %s3890_s9, [#allocation16]   ;;  %v2349_v44 = vld [vmem:[%s3888_s7] ss:$0 sm:$0xff] }
 0x861   :  { %s3282_s9 = smov [#allocation14]  }
 0x862   :  { %s2279_s7 = sshll.u32 %s3282_s9, 4  ;;  %s2280_s7 = int_to_ptr.vmem [resolvable:$true] %s2279_s7 }
 0x863   :  { %s3238_s23 = scalar_lea.vmem %s2280_s7, 1024  ;;  %p3243_p8 = scmp.lt.s32.totalorder %s2280_s7, %s2280_s7 }
 0x864   :  { %p3239_p7 = scmp.ne.s32.totalorder %s2280_s7, %s3238_s23  ;;  %p3244_p9 = scmp.lt.s32.totalorder %s3238_s23, %s3238_s23 }
 0x866   :  { %p3245_p10 = por %p3244_p9, %p3243_p8 }
 0x868   :  { %p3246_p11 = pnand %p3245_p10, %p3239_p7 }
 0x912   :  { %v2915_v45 = vpop.f32.mrf.mxu0 }
 0x913   :  { %v2233_v46 = vadd.f32 %v2915_v45, %v2349_v44 }
 0x914   :  { %v2227_v48 = vpop.f32.mrf.mxu0 }
 0x915   :  { %2267 = vst [vmem:[#allocation14 + $0x8] sm:$0xff] %v2233_v46  ;;  %v2228_v3 = vadd.f32 %v2349_v44, %v2227_v48 }
 0x916   :  { %v2918_v50 = vpop.f32.mrf.mxu0 }
 0x917   :  { %2266 = vst [vmem:[#allocation14] sm:$0xff] %v2228_v3  ;;  %v2243_v52 = vadd.f32 %v2918_v50, %v2349_v44 }
 0x918   :  { %v2237_v8 = vpop.f32.mrf.mxu0 }
 0x919   :  { %2269 = vst [vmem:[#allocation14 + $0x18] sm:$0xff] %v2243_v52  ;;  %v2238_v40 = vadd.f32 %v2349_v44, %v2237_v8 }
 0x91a   :  { %v2921_v17 = vpop.f32.mrf.mxu0 }
 0x91b   :  { %2268 = vst [vmem:[#allocation14 + $0x10] sm:$0xff] %v2238_v40  ;;  %v2253_v5 = vadd.f32 %v2921_v17, %v2349_v44 }
 0x91c   :  { %v2247_v24 = vpop.f32.mrf.mxu0 }
 0x91d   :  { %2271 = vst [vmem:[#allocation14 + $0x28] sm:$0xff] %v2253_v5  ;;  %v2248_v6 = vadd.f32 %v2349_v44, %v2247_v24 }
 0x91e   :  { %v2924_v7 = vpop.f32.mrf.mxu0 }
 0x91f   :  { %2270 = vst [vmem:[#allocation14 + $0x20] sm:$0xff] %v2248_v6  ;;  %v2263_v10 = vadd.f32 %v2924_v7, %v2349_v44 }
 0x920   :  { %v2257_v47 = vpop.f32.mrf.mxu0 }
 0x921   :  { %2273 = vst [vmem:[#allocation14 + $0x38] sm:$0xff] %v2263_v10  ;;  %v2258_v25 = vadd.f32 %v2349_v44, %v2257_v47 }
 0x923   :  { %2272 = vst [vmem:[#allocation14 + $0x30] sm:$0xff] %v2258_v25 }
 0x924   :  { %3249 = shalt.err (!%p3246_p11)
}
 0x925   :  { %2285 = dma.vmem_to_hbm [thread:$0]  %s2280_s7, 1024, %s3889_s8, [#allocation5], %s3273_s19, %s3273_s19, %s3274_s20  }
 0x926   :  { %3266 = dma.done.wait [#allocation5], 1024  }
 0x927   :  { %3267 = vsyncadd [#allocation5], 4294966272 }
 0x928   :  { %3268 = dma.done.wait [#allocation16], 128  }
 0x929   :  { %3269 = vsyncadd [#allocation16], 4294967168 }
 0x92a   :  { %2302 = vsyncpa [#allocation4], 1 }
 0x92b   :  { %2303 = vsyncpa [#allocation7], 1 }
 0x92c   :  { %2304 = vsyncpa [#allocation10], 1 }
 0x92d   :  { %2305 = vsyncpa [#allocation13], 1 }
 0x92e   :  { %2306 = vsyncpa [#allocation5], 1 }
 0x92f   :  { %2307 = vsyncpa [#allocation16], 1 }

</bundles_post_ra>
